<compile_context>
chip_gen: v5e
topology: v5e:2x2
jax: 0.10.0
libtpu: 0.0.40
codegen_flags: <defaults>
</compile_context>

<pallas_src>
import jax
import jax.numpy as jnp
from jax.experimental import pallas as pl
from jax.experimental.pallas import tpu as pltpu

P_NODES = 16      # number of graph nodes
NODE_CH = 6       # node_channels
EDGE_CH = 5       # edge_channels
MID = 32          # mid_channels
NODE_OUT = 16     # node_out_channels
EDGE_OUT = 8      # edge_out_channels
NUM_CONVS = 2     # len(node_layers) == len(edge_layers) == 2
LN_EPS = 1e-5
NEG = -1e30       # masked-max sentinel; safe because h is post-ReLU (>= 0)
OUT_LANES = 128   # lane-dense output slab width (sliced back in the wrapper)


# ---------------------------------------------------------------------------
# static layout of the single packed weight slab  [W_ROWS, 128] f32
# ---------------------------------------------------------------------------
def _align8(n):
    return -(-n // 8) * 8


def _make_layout():
    off = {}
    r = 0

    def mat(name, rows):
        nonlocal r
        off[name] = r
        r += _align8(rows)          # every matrix starts on a (8,128)-tile row

    def vec(name):
        nonlocal r
        off[name] = r
        r += 1                      # one row per bias / gamma / beta vector

    mat('w_nm', NODE_CH)
    mat('w_em', EDGE_CH)
    for i in range(NUM_CONVS):
        mat(f'w1ab_{i}', MID)       # [MID, 2*MID] = [w1a - w1b | w1b]
        mat(f'w1c_{i}', MID)        # [MID, MID]
        mat(f'w2_{i}', MID)         # [MID, MID]
    mat('w_no1', MID)
    mat('w_no2', MID)               # [MID, OUT_LANES]  (padded from NODE_OUT)
    mat('w_eo1a', MID)
    mat('w_eo1b', MID)
    mat('w_eo2', MID)               # [MID, OUT_LANES]  (padded from EDGE_OUT)
    for n in ('b_nm', 'b_em'):
        vec(n)
    for i in range(NUM_CONVS):
        for n in ('b1', 'g1', 'be1', 'b2', 'g2', 'be2'):
            vec(f'{n}_{i}')
    for n in ('b_no1', 'g_no', 'be_no', 'b_no2', 'b_eo1', 'g_eo', 'be_eo', 'b_eo2'):
        vec(n)
    return off, _align8(r)


W_OFF, W_ROWS = _make_layout()


# ---------------------------------------------------------------------------
# in-kernel helpers
# ---------------------------------------------------------------------------
def _dot(a, b):
    return jnp.dot(a, b, preferred_element_type=jnp.float32)


def _ln(h, g, b):
    """nn.LayerNorm over the last dim (biased variance, eps=1e-5)."""
    mu = jnp.mean(h, axis=-1, keepdims=True)
    var = jnp.mean((h - mu) ** 2, axis=-1, keepdims=True)
    return (h - mu) * jax.lax.rsqrt(var + LN_EPS) * g + b


# ---------------------------------------------------------------------------
# fused per-graph kernel (one grid step == one graph of the batch)
# ---------------------------------------------------------------------------
def fused_kernel(nf_ref, ef_ref, src_ref, tar_ref, mask_ref, w_ref,
                 node_out_ref, edge_out_ref):
    def W(name, rows, cols=MID):
        r = W_OFF[name]
        return w_ref[r:r + rows, 0:cols]

    def V(name, cols=MID):
        r = W_OFF[name]
        return w_ref[r:r + 1, 0:cols]

    nf = nf_ref[0]                               # [P, NODE_CH]
    efr = ef_ref[0]                              # [E, EDGE_CH]
    src_col = src_ref[...]                       # [E, 1] int32  (j / source)
    tar_col = tar_ref[...]                       # [E, 1] int32  (i / target)
    has_edge = mask_ref[...] > 0.5               # [P, 1]  precomputed in-degree > 0

    P = nf.shape[0]
    E = efr.shape[0]

    # one-hot gather matrices rebuilt in-kernel from the int indices (cheap VPU)
    lane_node = jax.lax.broadcasted_iota(jnp.int32, (E, P), 1)
    oh_src = (src_col == lane_node).astype(jnp.float32)     # [E, P]
    oh_tar = (tar_col == lane_node).astype(jnp.float32)     # [E, P]

    # feature mappings (Linear)
    x = _dot(nf, W('w_nm', NODE_CH)) + V('b_nm')            # [P, MID]
    ef = _dot(efr, W('w_em', EDGE_CH)) + V('b_em')          # [E, MID]

    # EdgeConv stack: node_mlp = 2 x (Linear + LN + ReLU); edge_mlp = None,
    # so (residual=True) edge features pass through unchanged.
    for i in range(NUM_CONVS):
        # message = node_mlp(cat([x_i, x_j - x_i, ef])); the x_i algebra is folded
        # into the weights and the gather is reassociated:
        #   y = x @ [w1a - w1b | w1b]   (small dense matmul, M = P)
        #   h = oh_tar @ y[:, :M] + oh_src @ y[:, M:] + ef @ w1c + b1
        y = _dot(x, W(f'w1ab_{i}', MID, 2 * MID))           # [P, 2*MID]
        h = (_dot(oh_tar, y[:, 0:MID]) + _dot(oh_src, y[:, MID:2 * MID])
             + _dot(ef, W(f'w1c_{i}', MID)) + V(f'b1_{i}'))
        h = jnp.maximum(_ln(h, V(f'g1_{i}'), V(f'be1_{i}')), 0.0)
        h = _dot(h, W(f'w2_{i}', MID)) + V(f'b2_{i}')
        h = jnp.maximum(_ln(h, V(f'g2_{i}'), V(f'be2_{i}')), 0.0)   # [E, MID]

        # scatter-max over target nodes: P independent masked maxes, row-stacked,
        # then one vectorized zero-fill for isolated nodes (reference semantics).
        # TODO(synk): sorted-by-target / fixed in-degree graphs could use a single
        # reshape [P, E//P, MID] + max(axis=1) here.
        rows = [jnp.max(jnp.where(tar_col == p, h, NEG), axis=0, keepdims=True)
                for p in range(P)]
        agg = jnp.concatenate(rows, axis=0)                  # [P, MID]
        agg = jnp.where(has_edge, agg, 0.0)
        x = x + agg                                          # outer residual

    # node_out_layer: Linear + LN + ReLU + Linear(MID, NODE_OUT padded to 128)
    hn = _dot(x, W('w_no1', MID)) + V('b_no1')
    hn = jnp.maximum(_ln(hn, V('g_no'), V('be_no')), 0.0)
    node_out_ref[0] = _dot(hn, W('w_no2', MID, OUT_LANES)) + V('b_no2', OUT_LANES)

    # edge_out_layer on cat([x_j - x_i, ef]) as a split matmul;
    # x_j - x_i via one gather matmul (oh_src - oh_tar) @ x.
    dif = _dot(oh_src - oh_tar, x)                           # [E, MID]
    he = _dot(dif, W('w_eo1a', MID)) + _dot(ef, W('w_eo1b', MID)) + V('b_eo1')
    he = jnp.maximum(_ln(he, V('g_eo'), V('be_eo')), 0.0)
    edge_out_ref[0] = _dot(he, W('w_eo2', MID, OUT_LANES)) + V('b_eo2', OUT_LANES)


# ---------------------------------------------------------------------------
# one-time preparation (hoisted out of the per-call path)
# ---------------------------------------------------------------------------
def pack_params(p):
    """Pack all weights/biases/LN params into one [W_ROWS, 128] f32 slab."""
    slab = jnp.zeros((W_ROWS, OUT_LANES), jnp.float32)

    def put(slab, name, a):
        a = jnp.asarray(a, jnp.float32)
        r = W_OFF[name]
        return slab.at[r:r + a.shape[0], 0:a.shape[1]].set(a)

    slab = put(slab, 'w_nm', p['w_nm']); slab = put(slab, 'b_nm', p['b_nm'])
    slab = put(slab, 'w_em', p['w_em']); slab = put(slab, 'b_em', p['b_em'])
    for i in range(NUM_CONVS):
        c = p[f'conv_{i}']
        w1a, w1b, w1c = c['w1'][:MID], c['w1'][MID:2 * MID], c['w1'][2 * MID:]
        slab = put(slab, f'w1ab_{i}', jnp.concatenate([w1a - w1b, w1b], axis=1))
        slab = put(slab, f'w1c_{i}', w1c)
        slab = put(slab, f'w2_{i}', c['w2'])
        for n in ('b1', 'g1', 'be1', 'b2', 'g2', 'be2'):
            slab = put(slab, f'{n}_{i}', c[n])
    slab = put(slab, 'w_no1', p['w_no1']); slab = put(slab, 'b_no1', p['b_no1'])
    slab = put(slab, 'g_no', p['g_no']);   slab = put(slab, 'be_no', p['be_no'])
    slab = put(slab, 'w_no2', p['w_no2']); slab = put(slab, 'b_no2', p['b_no2'])
    slab = put(slab, 'w_eo1a', p['w_eo1'][:MID])
    slab = put(slab, 'w_eo1b', p['w_eo1'][MID:])
    slab = put(slab, 'b_eo1', p['b_eo1']); slab = put(slab, 'g_eo', p['g_eo'])
    slab = put(slab, 'be_eo', p['be_eo'])
    slab = put(slab, 'w_eo2', p['w_eo2']); slab = put(slab, 'b_eo2', p['b_eo2'])
    return slab


def prepare_topology(edge_indices, num_nodes):
    """Once per graph topology: int edge indices + isolated-node mask."""
    ei = jnp.asarray(edge_indices)
    if ei.shape[0] != 2:
        ei = ei.T
    src = ei[0].astype(jnp.int32)
    tar = ei[1].astype(jnp.int32)
    deg = jnp.sum((tar[:, None] == jnp.arange(num_nodes, dtype=jnp.int32)[None, :])
                  .astype(jnp.float32), axis=0)
    has_edge = (deg > 0).astype(jnp.float32)[:, None]        # [P, 1]
    return src[:, None], tar[:, None], has_edge


# ---------------------------------------------------------------------------
# EdgeConvLayers batched forward (single pallas_call, grid over graphs)
# ---------------------------------------------------------------------------
def edge_conv_layers_forward(w_slab, src_idx, tar_idx, has_edge,
                             node_features, edge_features):
    squeeze = node_features.ndim == 2
    if squeeze:
        node_features = node_features[None]
        edge_features = edge_features[None]

    B, P, nc = node_features.shape
    E, ec = edge_features.shape[1], edge_features.shape[2]

    node_pad, edge_pad = pl.pallas_call(
        fused_kernel,
        grid=(B,),
        in_specs=[
            pl.BlockSpec((1, P, nc), lambda b: (b, 0, 0)),          # per-graph nodes
            pl.BlockSpec((1, E, ec), lambda b: (b, 0, 0)),          # per-graph edges
            pl.BlockSpec((E, 1), lambda b: (0, 0)),                 # src ids (resident)
            pl.BlockSpec((E, 1), lambda b: (0, 0)),                 # tar ids (resident)
            pl.BlockSpec((P, 1), lambda b: (0, 0)),                 # isolated-node mask
            pl.BlockSpec((W_ROWS, OUT_LANES), lambda b: (0, 0)),    # weight slab (resident)
        ],
        out_specs=(
            pl.BlockSpec((1, P, OUT_LANES), lambda b: (b, 0, 0)),
            pl.BlockSpec((1, E, OUT_LANES), lambda b: (b, 0, 0)),
        ),
        out_shape=(jax.ShapeDtypeStruct((B, P, OUT_LANES), jnp.float32),
                   jax.ShapeDtypeStruct((B, E, OUT_LANES), jnp.float32)),
        compiler_params=pltpu.CompilerParams(
            dimension_semantics=("parallel",)),          # v7x: 2 TCs split the batch
        cost_estimate=pl.CostEstimate(
            flops=1_500_000 * B, transcendentals=260 * B,
            bytes_accessed=W_ROWS * OUT_LANES * 4 + 35_000 * B),
    )(node_features, edge_features, src_idx, tar_idx, has_edge, w_slab)

    node_out = node_pad[:, :, :NODE_OUT]
    edge_out = edge_pad[:, :, :EDGE_OUT]
    if squeeze:
        return node_out[0], edge_out[0]
    return node_out, edge_out


# ---------------------------------------------------------------------------
# pure-JAX reference (per-graph; vmapped over the batch in the test)
# ---------------------------------------------------------------------------
def reference_forward(params, node_features, edge_indices, edge_features):
    if edge_indices.shape[0] != 2:
        edge_indices = edge_indices.T
    src, tar = edge_indices[0], edge_indices[1]
    P = node_features.shape[0]
    tmask = (tar[:, None] == jnp.arange(P)[None, :])          # [E, P]

    x = node_features @ params['w_nm'] + params['b_nm']
    ef = edge_features @ params['w_em'] + params['b_em']
    for i in range(NUM_CONVS):
        c = params[f'conv_{i}']
        x_j, x_i = x[src], x[tar]
        tmp = jnp.concatenate([x_i, x_j - x_i, ef], axis=1)
        h = jnp.maximum(_ln(tmp @ c['w1'] + c['b1'], c['g1'], c['be1']), 0.0)
        h = jnp.maximum(_ln(h @ c['w2'] + c['b2'], c['g2'], c['be2']), 0.0)
        agg = jnp.max(jnp.where(tmask[:, :, None], h[:, None, :], -jnp.inf), axis=0)
        agg = jnp.where(jnp.isfinite(agg), agg, 0.0)
        x = x + agg
    h = jnp.maximum(_ln(x @ params['w_no1'] + params['b_no1'],
                        params['g_no'], params['be_no']), 0.0)
    node_out = h @ params['w_no2'] + params['b_no2']
    x_j, x_i = x[src], x[tar]
    tmp = jnp.concatenate([x_j - x_i, ef], axis=1)
    h = jnp.maximum(_ln(tmp @ params['w_eo1'] + params['b_eo1'],
                        params['g_eo'], params['be_eo']), 0.0)
    edge_out = h @ params['w_eo2'] + params['b_eo2']
    return node_out, edge_out


# ---------------------------------------------------------------------------
# deterministic parameter init (shapes follow the module's __init__)
# ---------------------------------------------------------------------------
def init_params(key):
    def lin(k, cin, cout, scale=0.2):
        k1, k2 = jax.random.split(k)
        w = jax.random.normal(k1, (cin, cout), jnp.float32) * scale
        b = jax.random.normal(k2, (1, cout), jnp.float32) * 0.1
        return w, b

    keys = jax.random.split(key, 12)
    p = {}
    p['w_nm'], p['b_nm'] = lin(keys[0], NODE_CH, MID)          # node_feature_mapping
    p['w_em'], p['b_em'] = lin(keys[1], EDGE_CH, MID)          # edge_feature_mapping
    for i in range(NUM_CONVS):                                 # conv_i.node_mlp (2 blocks)
        c = {}
        c['w1'], c['b1'] = lin(keys[2 + 2 * i], 3 * MID, MID)  # Linear(3*mid, mid)
        c['g1'] = jnp.ones((1, MID), jnp.float32)
        c['be1'] = jnp.zeros((1, MID), jnp.float32)
        c['w2'], c['b2'] = lin(keys[3 + 2 * i], MID, MID)      # Linear(mid, mid)
        c['g2'] = jnp.ones((1, MID), jnp.float32)
        c['be2'] = jnp.zeros((1, MID), jnp.float32)
        p[f'conv_{i}'] = c
    p['w_no1'], p['b_no1'] = lin(keys[6], MID, MID)            # node_out_layer
    p['g_no'] = jnp.ones((1, MID), jnp.float32)
    p['be_no'] = jnp.zeros((1, MID), jnp.float32)
    p['w_no2'], p['b_no2'] = lin(keys[7], MID, NODE_OUT)
    p['w_eo1'], p['b_eo1'] = lin(keys[8], 2 * MID, MID)        # edge_out_layer
    p['g_eo'] = jnp.ones((1, MID), jnp.float32)
    p['be_eo'] = jnp.zeros((1, MID), jnp.float32)
    p['w_eo2'], p['b_eo2'] = lin(keys[9], MID, EDGE_OUT)
    return p


if __name__ == "__main__":
    key = jax.random.PRNGKey(0)
    kp, kn, ke = jax.random.split(key, 3)
    params = init_params(kp)
    w_slab = pack_params(params)            # once at load time (hoisted)

    B = 4                                   # batch / multi-view dimension
    node_features = jax.random.normal(kn, (B, P_NODES, NODE_CH), jnp.float32)

    # ring-style graph: every node has 3 incoming edges -> every target covered
    offsets = jnp.array([1, 2, 5], dtype=jnp.int32)
    tar = jnp.repeat(jnp.arange(P_NODES, dtype=jnp.int32), 3)
    src = (tar + jnp.tile(offsets, P_NODES)) % P_NODES
    edge_indices = jnp.stack([src, tar], axis=1)                # [E, 2]
    E = edge_indices.shape[0]
    edge_features = jax.random.normal(ke, (B, E, EDGE_CH), jnp.float32)

    src_idx, tar_idx, has_edge = prepare_topology(edge_indices, P_NODES)  # once per topology

    fwd = jax.jit(edge_conv_layers_forward)
    node_out, edge_out = fwd(w_slab, src_idx, tar_idx, has_edge,
                             node_features, edge_features)
    jax.block_until_ready((node_out, edge_out))

    ref_node, ref_edge = jax.vmap(reference_forward, in_axes=(None, 0, None, 0))(
        params, node_features, edge_indices, edge_features)

    assert node_out.shape == (B, P_NODES, NODE_OUT)
    assert edge_out.shape == (B, E, EDGE_OUT)
    # tolerance covers TPU default (bf16-pass) matmul precision + the weight folding
    assert bool(jnp.allclose(node_out, ref_node, rtol=3e-2, atol=3e-2))
    assert bool(jnp.allclose(edge_out, ref_edge, rtol=3e-2, atol=3e-2))

    print("KERNEL_OK")
</pallas_src>

<mosaic_0001>
module attributes {stable_mosaic.version = 11 : i64} {
  func.func @fused_kernel(%arg0: i32, %arg1: memref<1x16x6xf32, #tpu.memory_space<vmem>>, %arg2: memref<1x48x5xf32, #tpu.memory_space<vmem>>, %arg3: memref<48x1xi32, #tpu.memory_space<vmem>>, %arg4: memref<48x1xi32, #tpu.memory_space<vmem>>, %arg5: memref<16x1xf32, #tpu.memory_space<vmem>>, %arg6: memref<392x128xf32, #tpu.memory_space<vmem>>, %arg7: memref<1x16x128xf32, #tpu.memory_space<vmem>>, %arg8: memref<1x48x128xf32, #tpu.memory_space<vmem>>) attributes {dimension_semantics = [#tpu.dimension_semantics<parallel>], iteration_bounds = array<i64: 4>, scalar_prefetch = 0 : i64, scratch_operands = 0 : i64, tpu.core_type = #tpu.core_type<tc>, window_params = [{transform_indices = @transform_0, window_bounds = array<i64: 1, 16, 6>}, {transform_indices = @transform_1, window_bounds = array<i64: 1, 48, 5>}, {pipeline_mode = #tpu.pipeline_mode<synchronous>, transform_indices = @transform_2, window_bounds = array<i64: 48, 1>}, {pipeline_mode = #tpu.pipeline_mode<synchronous>, transform_indices = @transform_3, window_bounds = array<i64: 48, 1>}, {pipeline_mode = #tpu.pipeline_mode<synchronous>, transform_indices = @transform_4, window_bounds = array<i64: 16, 1>}, {pipeline_mode = #tpu.pipeline_mode<synchronous>, transform_indices = @transform_5, window_bounds = array<i64: 392, 128>}, {transform_indices = @transform_6, window_bounds = array<i64: 1, 16, 128>}, {transform_indices = @transform_7, window_bounds = array<i64: 1, 48, 128>}]} {
    %c0 = arith.constant 0 : index
    %c0_0 = arith.constant 0 : index
    %c0_1 = arith.constant 0 : index
    %0 = vector.load %arg1[%c0, %c0_0, %c0_1] : memref<1x16x6xf32, #tpu.memory_space<vmem>>, vector<1x16x6xf32>
    %1 = vector.shape_cast %0 : vector<1x16x6xf32> to vector<16x6xf32>
    %c0_2 = arith.constant 0 : index
    %c0_3 = arith.constant 0 : index
    %c0_4 = arith.constant 0 : index
    %2 = vector.load %arg2[%c0_2, %c0_3, %c0_4] : memref<1x48x5xf32, #tpu.memory_space<vmem>>, vector<1x48x5xf32>
    %3 = vector.shape_cast %2 : vector<1x48x5xf32> to vector<48x5xf32>
    %c0_5 = arith.constant 0 : index
    %c0_6 = arith.constant 0 : index
    %4 = vector.load %arg3[%c0_5, %c0_6] : memref<48x1xi32, #tpu.memory_space<vmem>>, vector<48x1xi32>
    %c0_7 = arith.constant 0 : index
    %c0_8 = arith.constant 0 : index
    %5 = vector.load %arg4[%c0_7, %c0_8] : memref<48x1xi32, #tpu.memory_space<vmem>>, vector<48x1xi32>
    %c0_9 = arith.constant 0 : index
    %c0_10 = arith.constant 0 : index
    %6 = vector.load %arg5[%c0_9, %c0_10] : memref<16x1xf32, #tpu.memory_space<vmem>>, vector<16x1xf32>
    %cst = arith.constant 5.000000e-01 : f32
    %7 = vector.broadcast %cst : f32 to vector<16x1xf32>
    %8 = arith.cmpf ogt, %6, %7 : vector<16x1xf32>
    %9 = tpu.iota {dimensions = array<i32: 1>} : vector<48x16xi32>
    %10 = vector.broadcast %4 : vector<48x1xi32> to vector<48x16xi32>
    %11 = arith.cmpi eq, %10, %9 : vector<48x16xi32>
    %12 = arith.extui %11 : vector<48x16xi1> to vector<48x16xi32>
    %13 = arith.sitofp %12 : vector<48x16xi32> to vector<48x16xf32>
    %14 = vector.broadcast %5 : vector<48x1xi32> to vector<48x16xi32>
    %15 = arith.cmpi eq, %14, %9 : vector<48x16xi32>
    %16 = arith.extui %15 : vector<48x16xi1> to vector<48x16xi32>
    %17 = arith.sitofp %16 : vector<48x16xi32> to vector<48x16xf32>
    %c0_11 = arith.constant 0 : index
    %c0_12 = arith.constant 0 : index
    %18 = vector.load %arg6[%c0_11, %c0_12] : memref<392x128xf32, #tpu.memory_space<vmem>>, vector<6x32xf32>
    %cst_13 = arith.constant dense<0.000000e+00> : vector<16x32xf32>
    %19 = tpu.matmul %1, %18, %cst_13 {dimension_numbers = #tpu.dot_dimension_numbers<[1], [0], [0], [1], [0, 0, 1, 1], [], []>} : vector<16x6xf32>, vector<6x32xf32>, vector<16x32xf32> -> vector<16x32xf32>
    %c368 = arith.constant 368 : index
    %c0_14 = arith.constant 0 : index
    %20 = vector.load %arg6[%c368, %c0_14] : memref<392x128xf32, #tpu.memory_space<vmem>>, vector<1x32xf32>
    %21 = vector.broadcast %20 : vector<1x32xf32> to vector<16x32xf32>
    %22 = arith.addf %19, %21 : vector<16x32xf32>
    %c8 = arith.constant 8 : index
    %c0_15 = arith.constant 0 : index
    %23 = vector.load %arg6[%c8, %c0_15] : memref<392x128xf32, #tpu.memory_space<vmem>>, vector<5x32xf32>
    %cst_16 = arith.constant dense<0.000000e+00> : vector<48x32xf32>
    %24 = tpu.matmul %3, %23, %cst_16 {dimension_numbers = #tpu.dot_dimension_numbers<[1], [0], [0], [1], [0, 0, 1, 1], [], []>} : vector<48x5xf32>, vector<5x32xf32>, vector<48x32xf32> -> vector<48x32xf32>
    %c369 = arith.constant 369 : index
    %c0_17 = arith.constant 0 : index
    %25 = vector.load %arg6[%c369, %c0_17] : memref<392x128xf32, #tpu.memory_space<vmem>>, vector<1x32xf32>
    %26 = vector.broadcast %25 : vector<1x32xf32> to vector<48x32xf32>
    %27 = arith.addf %24, %26 : vector<48x32xf32>
    %c16 = arith.constant 16 : index
    %c0_18 = arith.constant 0 : index
    %28 = vector.load %arg6[%c16, %c0_18] : memref<392x128xf32, #tpu.memory_space<vmem>>, vector<32x64xf32>
    %cst_19 = arith.constant dense<0.000000e+00> : vector<16x64xf32>
    %29 = tpu.matmul %22, %28, %cst_19 {dimension_numbers = #tpu.dot_dimension_numbers<[1], [0], [0], [1], [0, 0, 1, 1], [], []>} : vector<16x32xf32>, vector<32x64xf32>, vector<16x64xf32> -> vector<16x64xf32>
    %30 = vector.extract_strided_slice %29 {offsets = [0, 0], sizes = [16, 32], strides = [1, 1]} : vector<16x64xf32> to vector<16x32xf32>
    %cst_20 = arith.constant dense<0.000000e+00> : vector<48x32xf32>
    %31 = tpu.matmul %17, %30, %cst_20 {dimension_numbers = #tpu.dot_dimension_numbers<[1], [0], [0], [1], [0, 0, 1, 1], [], []>} : vector<48x16xf32>, vector<16x32xf32>, vector<48x32xf32> -> vector<48x32xf32>
    %32 = vector.extract_strided_slice %29 {offsets = [0, 32], sizes = [16, 32], strides = [1, 1]} : vector<16x64xf32> to vector<16x32xf32>
    %cst_21 = arith.constant dense<0.000000e+00> : vector<48x32xf32>
    %33 = tpu.matmul %13, %32, %cst_21 {dimension_numbers = #tpu.dot_dimension_numbers<[1], [0], [0], [1], [0, 0, 1, 1], [], []>} : vector<48x16xf32>, vector<16x32xf32>, vector<48x32xf32> -> vector<48x32xf32>
    %34 = arith.addf %31, %33 : vector<48x32xf32>
    %c48 = arith.constant 48 : index
    %c0_22 = arith.constant 0 : index
    %35 = vector.load %arg6[%c48, %c0_22] : memref<392x128xf32, #tpu.memory_space<vmem>>, vector<32x32xf32>
    %cst_23 = arith.constant dense<0.000000e+00> : vector<48x32xf32>
    %36 = tpu.matmul %27, %35, %cst_23 {dimension_numbers = #tpu.dot_dimension_numbers<[1], [0], [0], [1], [0, 0, 1, 1], [], []>} : vector<48x32xf32>, vector<32x32xf32>, vector<48x32xf32> -> vector<48x32xf32>
    %37 = arith.addf %34, %36 : vector<48x32xf32>
    %c370 = arith.constant 370 : index
    %c0_24 = arith.constant 0 : index
    %38 = vector.load %arg6[%c370, %c0_24] : memref<392x128xf32, #tpu.memory_space<vmem>>, vector<1x32xf32>
    %39 = vector.broadcast %38 : vector<1x32xf32> to vector<48x32xf32>
    %40 = arith.addf %37, %39 : vector<48x32xf32>
    %c371 = arith.constant 371 : index
    %c0_25 = arith.constant 0 : index
    %41 = vector.load %arg6[%c371, %c0_25] : memref<392x128xf32, #tpu.memory_space<vmem>>, vector<1x32xf32>
    %c372 = arith.constant 372 : index
    %c0_26 = arith.constant 0 : index
    %42 = vector.load %arg6[%c372, %c0_26] : memref<392x128xf32, #tpu.memory_space<vmem>>, vector<1x32xf32>
    %cst_27 = arith.constant dense<0.000000e+00> : vector<48xf32>
    %43 = vector.multi_reduction <add>, %40, %cst_27 [1] : vector<48x32xf32> to vector<48xf32>
    %44 = vector.shape_cast %43 : vector<48xf32> to vector<48x1xf32>
    %cst_28 = arith.constant 3.200000e+01 : f32
    %45 = vector.broadcast %cst_28 : f32 to vector<48x1xf32>
    %46 = arith.divf %44, %45 : vector<48x1xf32>
    %47 = vector.broadcast %46 : vector<48x1xf32> to vector<48x32xf32>
    %48 = arith.subf %40, %47 : vector<48x32xf32>
    %49 = arith.mulf %48, %48 : vector<48x32xf32>
    %cst_29 = arith.constant dense<0.000000e+00> : vector<48xf32>
    %50 = vector.multi_reduction <add>, %49, %cst_29 [1] : vector<48x32xf32> to vector<48xf32>
    %51 = vector.shape_cast %50 : vector<48xf32> to vector<48x1xf32>
    %cst_30 = arith.constant 3.200000e+01 : f32
    %52 = vector.broadcast %cst_30 : f32 to vector<48x1xf32>
    %53 = arith.divf %51, %52 : vector<48x1xf32>
    %54 = vector.broadcast %46 : vector<48x1xf32> to vector<48x32xf32>
    %55 = arith.subf %40, %54 : vector<48x32xf32>
    %cst_31 = arith.constant 9.99999974E-6 : f32
    %56 = vector.broadcast %cst_31 : f32 to vector<48x1xf32>
    %57 = arith.addf %53, %56 : vector<48x1xf32>
    %58 = math.rsqrt %57 : vector<48x1xf32>
    %59 = vector.broadcast %58 : vector<48x1xf32> to vector<48x32xf32>
    %60 = arith.mulf %55, %59 : vector<48x32xf32>
    %61 = vector.broadcast %41 : vector<1x32xf32> to vector<48x32xf32>
    %62 = arith.mulf %60, %61 : vector<48x32xf32>
    %63 = vector.broadcast %42 : vector<1x32xf32> to vector<48x32xf32>
    %64 = arith.addf %62, %63 : vector<48x32xf32>
    %cst_32 = arith.constant 0.000000e+00 : f32
    %65 = vector.broadcast %cst_32 : f32 to vector<48x32xf32>
    %66 = arith.maximumf %64, %65 : vector<48x32xf32>
    %c80 = arith.constant 80 : index
    %c0_33 = arith.constant 0 : index
    %67 = vector.load %arg6[%c80, %c0_33] : memref<392x128xf32, #tpu.memory_space<vmem>>, vector<32x32xf32>
    %cst_34 = arith.constant dense<0.000000e+00> : vector<48x32xf32>
    %68 = tpu.matmul %66, %67, %cst_34 {dimension_numbers = #tpu.dot_dimension_numbers<[1], [0], [0], [1], [0, 0, 1, 1], [], []>} : vector<48x32xf32>, vector<32x32xf32>, vector<48x32xf32> -> vector<48x32xf32>
    %c373 = arith.constant 373 : index
    %c0_35 = arith.constant 0 : index
    %69 = vector.load %arg6[%c373, %c0_35] : memref<392x128xf32, #tpu.memory_space<vmem>>, vector<1x32xf32>
    %70 = vector.broadcast %69 : vector<1x32xf32> to vector<48x32xf32>
    %71 = arith.addf %68, %70 : vector<48x32xf32>
    %c374 = arith.constant 374 : index
    %c0_36 = arith.constant 0 : index
    %72 = vector.load %arg6[%c374, %c0_36] : memref<392x128xf32, #tpu.memory_space<vmem>>, vector<1x32xf32>
    %c375 = arith.constant 375 : index
    %c0_37 = arith.constant 0 : index
    %73 = vector.load %arg6[%c375, %c0_37] : memref<392x128xf32, #tpu.memory_space<vmem>>, vector<1x32xf32>
    %cst_38 = arith.constant dense<0.000000e+00> : vector<48xf32>
    %74 = vector.multi_reduction <add>, %71, %cst_38 [1] : vector<48x32xf32> to vector<48xf32>
    %75 = vector.shape_cast %74 : vector<48xf32> to vector<48x1xf32>
    %cst_39 = arith.constant 3.200000e+01 : f32
    %76 = vector.broadcast %cst_39 : f32 to vector<48x1xf32>
    %77 = arith.divf %75, %76 : vector<48x1xf32>
    %78 = vector.broadcast %77 : vector<48x1xf32> to vector<48x32xf32>
    %79 = arith.subf %71, %78 : vector<48x32xf32>
    %80 = arith.mulf %79, %79 : vector<48x32xf32>
    %cst_40 = arith.constant dense<0.000000e+00> : vector<48xf32>
    %81 = vector.multi_reduction <add>, %80, %cst_40 [1] : vector<48x32xf32> to vector<48xf32>
    %82 = vector.shape_cast %81 : vector<48xf32> to vector<48x1xf32>
    %cst_41 = arith.constant 3.200000e+01 : f32
    %83 = vector.broadcast %cst_41 : f32 to vector<48x1xf32>
    %84 = arith.divf %82, %83 : vector<48x1xf32>
    %85 = vector.broadcast %77 : vector<48x1xf32> to vector<48x32xf32>
    %86 = arith.subf %71, %85 : vector<48x32xf32>
    %cst_42 = arith.constant 9.99999974E-6 : f32
    %87 = vector.broadcast %cst_42 : f32 to vector<48x1xf32>
    %88 = arith.addf %84, %87 : vector<48x1xf32>
    %89 = math.rsqrt %88 : vector<48x1xf32>
    %90 = vector.broadcast %89 : vector<48x1xf32> to vector<48x32xf32>
    %91 = arith.mulf %86, %90 : vector<48x32xf32>
    %92 = vector.broadcast %72 : vector<1x32xf32> to vector<48x32xf32>
    %93 = arith.mulf %91, %92 : vector<48x32xf32>
    %94 = vector.broadcast %73 : vector<1x32xf32> to vector<48x32xf32>
    %95 = arith.addf %93, %94 : vector<48x32xf32>
    %cst_43 = arith.constant 0.000000e+00 : f32
    %96 = vector.broadcast %cst_43 : f32 to vector<48x32xf32>
    %97 = arith.maximumf %95, %96 : vector<48x32xf32>
    %c0_i32 = arith.constant 0 : i32
    %98 = vector.broadcast %c0_i32 : i32 to vector<48x1xi32>
    %99 = arith.cmpi eq, %5, %98 : vector<48x1xi32>
    %cst_44 = arith.constant -1.000000e+30 : f32
    %100 = vector.shape_cast %99 : vector<48x1xi1> to vector<48x1xi1>
    %101 = vector.broadcast %100 : vector<48x1xi1> to vector<48x32xi1>
    %102 = vector.broadcast %cst_44 : f32 to vector<48x32xf32>
    %103 = arith.select %101, %97, %102 : vector<48x32xi1>, vector<48x32xf32>
    %cst_45 = arith.constant dense<0xFF800000> : vector<32xf32>
    %104 = vector.multi_reduction <maximumf>, %103, %cst_45 [0] : vector<48x32xf32> to vector<32xf32>
    %105 = vector.shape_cast %104 : vector<32xf32> to vector<1x32xf32>
    %c1_i32 = arith.constant 1 : i32
    %106 = vector.broadcast %c1_i32 : i32 to vector<48x1xi32>
    %107 = arith.cmpi eq, %5, %106 : vector<48x1xi32>
    %cst_46 = arith.constant -1.000000e+30 : f32
    %108 = vector.shape_cast %107 : vector<48x1xi1> to vector<48x1xi1>
    %109 = vector.broadcast %108 : vector<48x1xi1> to vector<48x32xi1>
    %110 = vector.broadcast %cst_46 : f32 to vector<48x32xf32>
    %111 = arith.select %109, %97, %110 : vector<48x32xi1>, vector<48x32xf32>
    %cst_47 = arith.constant dense<0xFF800000> : vector<32xf32>
    %112 = vector.multi_reduction <maximumf>, %111, %cst_47 [0] : vector<48x32xf32> to vector<32xf32>
    %113 = vector.shape_cast %112 : vector<32xf32> to vector<1x32xf32>
    %c2_i32 = arith.constant 2 : i32
    %114 = vector.broadcast %c2_i32 : i32 to vector<48x1xi32>
    %115 = arith.cmpi eq, %5, %114 : vector<48x1xi32>
    %cst_48 = arith.constant -1.000000e+30 : f32
    %116 = vector.shape_cast %115 : vector<48x1xi1> to vector<48x1xi1>
    %117 = vector.broadcast %116 : vector<48x1xi1> to vector<48x32xi1>
    %118 = vector.broadcast %cst_48 : f32 to vector<48x32xf32>
    %119 = arith.select %117, %97, %118 : vector<48x32xi1>, vector<48x32xf32>
    %cst_49 = arith.constant dense<0xFF800000> : vector<32xf32>
    %120 = vector.multi_reduction <maximumf>, %119, %cst_49 [0] : vector<48x32xf32> to vector<32xf32>
    %121 = vector.shape_cast %120 : vector<32xf32> to vector<1x32xf32>
    %c3_i32 = arith.constant 3 : i32
    %122 = vector.broadcast %c3_i32 : i32 to vector<48x1xi32>
    %123 = arith.cmpi eq, %5, %122 : vector<48x1xi32>
    %cst_50 = arith.constant -1.000000e+30 : f32
    %124 = vector.shape_cast %123 : vector<48x1xi1> to vector<48x1xi1>
    %125 = vector.broadcast %124 : vector<48x1xi1> to vector<48x32xi1>
    %126 = vector.broadcast %cst_50 : f32 to vector<48x32xf32>
    %127 = arith.select %125, %97, %126 : vector<48x32xi1>, vector<48x32xf32>
    %cst_51 = arith.constant dense<0xFF800000> : vector<32xf32>
    %128 = vector.multi_reduction <maximumf>, %127, %cst_51 [0] : vector<48x32xf32> to vector<32xf32>
    %129 = vector.shape_cast %128 : vector<32xf32> to vector<1x32xf32>
    %c4_i32 = arith.constant 4 : i32
    %130 = vector.broadcast %c4_i32 : i32 to vector<48x1xi32>
    %131 = arith.cmpi eq, %5, %130 : vector<48x1xi32>
    %cst_52 = arith.constant -1.000000e+30 : f32
    %132 = vector.shape_cast %131 : vector<48x1xi1> to vector<48x1xi1>
    %133 = vector.broadcast %132 : vector<48x1xi1> to vector<48x32xi1>
    %134 = vector.broadcast %cst_52 : f32 to vector<48x32xf32>
    %135 = arith.select %133, %97, %134 : vector<48x32xi1>, vector<48x32xf32>
    %cst_53 = arith.constant dense<0xFF800000> : vector<32xf32>
    %136 = vector.multi_reduction <maximumf>, %135, %cst_53 [0] : vector<48x32xf32> to vector<32xf32>
    %137 = vector.shape_cast %136 : vector<32xf32> to vector<1x32xf32>
    %c5_i32 = arith.constant 5 : i32
    %138 = vector.broadcast %c5_i32 : i32 to vector<48x1xi32>
    %139 = arith.cmpi eq, %5, %138 : vector<48x1xi32>
    %cst_54 = arith.constant -1.000000e+30 : f32
    %140 = vector.shape_cast %139 : vector<48x1xi1> to vector<48x1xi1>
    %141 = vector.broadcast %140 : vector<48x1xi1> to vector<48x32xi1>
    %142 = vector.broadcast %cst_54 : f32 to vector<48x32xf32>
    %143 = arith.select %141, %97, %142 : vector<48x32xi1>, vector<48x32xf32>
    %cst_55 = arith.constant dense<0xFF800000> : vector<32xf32>
    %144 = vector.multi_reduction <maximumf>, %143, %cst_55 [0] : vector<48x32xf32> to vector<32xf32>
    %145 = vector.shape_cast %144 : vector<32xf32> to vector<1x32xf32>
    %c6_i32 = arith.constant 6 : i32
    %146 = vector.broadcast %c6_i32 : i32 to vector<48x1xi32>
    %147 = arith.cmpi eq, %5, %146 : vector<48x1xi32>
    %cst_56 = arith.constant -1.000000e+30 : f32
    %148 = vector.shape_cast %147 : vector<48x1xi1> to vector<48x1xi1>
    %149 = vector.broadcast %148 : vector<48x1xi1> to vector<48x32xi1>
    %150 = vector.broadcast %cst_56 : f32 to vector<48x32xf32>
    %151 = arith.select %149, %97, %150 : vector<48x32xi1>, vector<48x32xf32>
    %cst_57 = arith.constant dense<0xFF800000> : vector<32xf32>
    %152 = vector.multi_reduction <maximumf>, %151, %cst_57 [0] : vector<48x32xf32> to vector<32xf32>
    %153 = vector.shape_cast %152 : vector<32xf32> to vector<1x32xf32>
    %c7_i32 = arith.constant 7 : i32
    %154 = vector.broadcast %c7_i32 : i32 to vector<48x1xi32>
    %155 = arith.cmpi eq, %5, %154 : vector<48x1xi32>
    %cst_58 = arith.constant -1.000000e+30 : f32
    %156 = vector.shape_cast %155 : vector<48x1xi1> to vector<48x1xi1>
    %157 = vector.broadcast %156 : vector<48x1xi1> to vector<48x32xi1>
    %158 = vector.broadcast %cst_58 : f32 to vector<48x32xf32>
    %159 = arith.select %157, %97, %158 : vector<48x32xi1>, vector<48x32xf32>
    %cst_59 = arith.constant dense<0xFF800000> : vector<32xf32>
    %160 = vector.multi_reduction <maximumf>, %159, %cst_59 [0] : vector<48x32xf32> to vector<32xf32>
    %161 = vector.shape_cast %160 : vector<32xf32> to vector<1x32xf32>
    %c8_i32 = arith.constant 8 : i32
    %162 = vector.broadcast %c8_i32 : i32 to vector<48x1xi32>
    %163 = arith.cmpi eq, %5, %162 : vector<48x1xi32>
    %cst_60 = arith.constant -1.000000e+30 : f32
    %164 = vector.shape_cast %163 : vector<48x1xi1> to vector<48x1xi1>
    %165 = vector.broadcast %164 : vector<48x1xi1> to vector<48x32xi1>
    %166 = vector.broadcast %cst_60 : f32 to vector<48x32xf32>
    %167 = arith.select %165, %97, %166 : vector<48x32xi1>, vector<48x32xf32>
    %cst_61 = arith.constant dense<0xFF800000> : vector<32xf32>
    %168 = vector.multi_reduction <maximumf>, %167, %cst_61 [0] : vector<48x32xf32> to vector<32xf32>
    %169 = vector.shape_cast %168 : vector<32xf32> to vector<1x32xf32>
    %c9_i32 = arith.constant 9 : i32
    %170 = vector.broadcast %c9_i32 : i32 to vector<48x1xi32>
    %171 = arith.cmpi eq, %5, %170 : vector<48x1xi32>
    %cst_62 = arith.constant -1.000000e+30 : f32
    %172 = vector.shape_cast %171 : vector<48x1xi1> to vector<48x1xi1>
    %173 = vector.broadcast %172 : vector<48x1xi1> to vector<48x32xi1>
    %174 = vector.broadcast %cst_62 : f32 to vector<48x32xf32>
    %175 = arith.select %173, %97, %174 : vector<48x32xi1>, vector<48x32xf32>
    %cst_63 = arith.constant dense<0xFF800000> : vector<32xf32>
    %176 = vector.multi_reduction <maximumf>, %175, %cst_63 [0] : vector<48x32xf32> to vector<32xf32>
    %177 = vector.shape_cast %176 : vector<32xf32> to vector<1x32xf32>
    %c10_i32 = arith.constant 10 : i32
    %178 = vector.broadcast %c10_i32 : i32 to vector<48x1xi32>
    %179 = arith.cmpi eq, %5, %178 : vector<48x1xi32>
    %cst_64 = arith.constant -1.000000e+30 : f32
    %180 = vector.shape_cast %179 : vector<48x1xi1> to vector<48x1xi1>
    %181 = vector.broadcast %180 : vector<48x1xi1> to vector<48x32xi1>
    %182 = vector.broadcast %cst_64 : f32 to vector<48x32xf32>
    %183 = arith.select %181, %97, %182 : vector<48x32xi1>, vector<48x32xf32>
    %cst_65 = arith.constant dense<0xFF800000> : vector<32xf32>
    %184 = vector.multi_reduction <maximumf>, %183, %cst_65 [0] : vector<48x32xf32> to vector<32xf32>
    %185 = vector.shape_cast %184 : vector<32xf32> to vector<1x32xf32>
    %c11_i32 = arith.constant 11 : i32
    %186 = vector.broadcast %c11_i32 : i32 to vector<48x1xi32>
    %187 = arith.cmpi eq, %5, %186 : vector<48x1xi32>
    %cst_66 = arith.constant -1.000000e+30 : f32
    %188 = vector.shape_cast %187 : vector<48x1xi1> to vector<48x1xi1>
    %189 = vector.broadcast %188 : vector<48x1xi1> to vector<48x32xi1>
    %190 = vector.broadcast %cst_66 : f32 to vector<48x32xf32>
    %191 = arith.select %189, %97, %190 : vector<48x32xi1>, vector<48x32xf32>
    %cst_67 = arith.constant dense<0xFF800000> : vector<32xf32>
    %192 = vector.multi_reduction <maximumf>, %191, %cst_67 [0] : vector<48x32xf32> to vector<32xf32>
    %193 = vector.shape_cast %192 : vector<32xf32> to vector<1x32xf32>
    %c12_i32 = arith.constant 12 : i32
    %194 = vector.broadcast %c12_i32 : i32 to vector<48x1xi32>
    %195 = arith.cmpi eq, %5, %194 : vector<48x1xi32>
    %cst_68 = arith.constant -1.000000e+30 : f32
    %196 = vector.shape_cast %195 : vector<48x1xi1> to vector<48x1xi1>
    %197 = vector.broadcast %196 : vector<48x1xi1> to vector<48x32xi1>
    %198 = vector.broadcast %cst_68 : f32 to vector<48x32xf32>
    %199 = arith.select %197, %97, %198 : vector<48x32xi1>, vector<48x32xf32>
    %cst_69 = arith.constant dense<0xFF800000> : vector<32xf32>
    %200 = vector.multi_reduction <maximumf>, %199, %cst_69 [0] : vector<48x32xf32> to vector<32xf32>
    %201 = vector.shape_cast %200 : vector<32xf32> to vector<1x32xf32>
    %c13_i32 = arith.constant 13 : i32
    %202 = vector.broadcast %c13_i32 : i32 to vector<48x1xi32>
    %203 = arith.cmpi eq, %5, %202 : vector<48x1xi32>
    %cst_70 = arith.constant -1.000000e+30 : f32
    %204 = vector.shape_cast %203 : vector<48x1xi1> to vector<48x1xi1>
    %205 = vector.broadcast %204 : vector<48x1xi1> to vector<48x32xi1>
    %206 = vector.broadcast %cst_70 : f32 to vector<48x32xf32>
    %207 = arith.select %205, %97, %206 : vector<48x32xi1>, vector<48x32xf32>
    %cst_71 = arith.constant dense<0xFF800000> : vector<32xf32>
    %208 = vector.multi_reduction <maximumf>, %207, %cst_71 [0] : vector<48x32xf32> to vector<32xf32>
    %209 = vector.shape_cast %208 : vector<32xf32> to vector<1x32xf32>
    %c14_i32 = arith.constant 14 : i32
    %210 = vector.broadcast %c14_i32 : i32 to vector<48x1xi32>
    %211 = arith.cmpi eq, %5, %210 : vector<48x1xi32>
    %cst_72 = arith.constant -1.000000e+30 : f32
    %212 = vector.shape_cast %211 : vector<48x1xi1> to vector<48x1xi1>
    %213 = vector.broadcast %212 : vector<48x1xi1> to vector<48x32xi1>
    %214 = vector.broadcast %cst_72 : f32 to vector<48x32xf32>
    %215 = arith.select %213, %97, %214 : vector<48x32xi1>, vector<48x32xf32>
    %cst_73 = arith.constant dense<0xFF800000> : vector<32xf32>
    %216 = vector.multi_reduction <maximumf>, %215, %cst_73 [0] : vector<48x32xf32> to vector<32xf32>
    %217 = vector.shape_cast %216 : vector<32xf32> to vector<1x32xf32>
    %c15_i32 = arith.constant 15 : i32
    %218 = vector.broadcast %c15_i32 : i32 to vector<48x1xi32>
    %219 = arith.cmpi eq, %5, %218 : vector<48x1xi32>
    %cst_74 = arith.constant -1.000000e+30 : f32
    %220 = vector.shape_cast %219 : vector<48x1xi1> to vector<48x1xi1>
    %221 = vector.broadcast %220 : vector<48x1xi1> to vector<48x32xi1>
    %222 = vector.broadcast %cst_74 : f32 to vector<48x32xf32>
    %223 = arith.select %221, %97, %222 : vector<48x32xi1>, vector<48x32xf32>
    %cst_75 = arith.constant dense<0xFF800000> : vector<32xf32>
    %224 = vector.multi_reduction <maximumf>, %223, %cst_75 [0] : vector<48x32xf32> to vector<32xf32>
    %225 = vector.shape_cast %224 : vector<32xf32> to vector<1x32xf32>
    %226 = tpu.concatenate %105, %113, %121, %129, %137, %145, %153, %161, %169, %177, %185, %193, %201, %209, %217, %225 in 0 : vector<1x32xf32>, vector<1x32xf32>, vector<1x32xf32>, vector<1x32xf32>, vector<1x32xf32>, vector<1x32xf32>, vector<1x32xf32>, vector<1x32xf32>, vector<1x32xf32>, vector<1x32xf32>, vector<1x32xf32>, vector<1x32xf32>, vector<1x32xf32>, vector<1x32xf32>, vector<1x32xf32>, vector<1x32xf32> -> vector<16x32xf32>
    %cst_76 = arith.constant 0.000000e+00 : f32
    %227 = vector.shape_cast %8 : vector<16x1xi1> to vector<16x1xi1>
    %228 = vector.broadcast %227 : vector<16x1xi1> to vector<16x32xi1>
    %229 = vector.broadcast %cst_76 : f32 to vector<16x32xf32>
    %230 = arith.select %228, %226, %229 : vector<16x32xi1>, vector<16x32xf32>
    %231 = arith.addf %22, %230 : vector<16x32xf32>
    %c112 = arith.constant 112 : index
    %c0_77 = arith.constant 0 : index
    %232 = vector.load %arg6[%c112, %c0_77] : memref<392x128xf32, #tpu.memory_space<vmem>>, vector<32x64xf32>
    %cst_78 = arith.constant dense<0.000000e+00> : vector<16x64xf32>
    %233 = tpu.matmul %231, %232, %cst_78 {dimension_numbers = #tpu.dot_dimension_numbers<[1], [0], [0], [1], [0, 0, 1, 1], [], []>} : vector<16x32xf32>, vector<32x64xf32>, vector<16x64xf32> -> vector<16x64xf32>
    %234 = vector.extract_strided_slice %233 {offsets = [0, 0], sizes = [16, 32], strides = [1, 1]} : vector<16x64xf32> to vector<16x32xf32>
    %cst_79 = arith.constant dense<0.000000e+00> : vector<48x32xf32>
    %235 = tpu.matmul %17, %234, %cst_79 {dimension_numbers = #tpu.dot_dimension_numbers<[1], [0], [0], [1], [0, 0, 1, 1], [], []>} : vector<48x16xf32>, vector<16x32xf32>, vector<48x32xf32> -> vector<48x32xf32>
    %236 = vector.extract_strided_slice %233 {offsets = [0, 32], sizes = [16, 32], strides = [1, 1]} : vector<16x64xf32> to vector<16x32xf32>
    %cst_80 = arith.constant dense<0.000000e+00> : vector<48x32xf32>
    %237 = tpu.matmul %13, %236, %cst_80 {dimension_numbers = #tpu.dot_dimension_numbers<[1], [0], [0], [1], [0, 0, 1, 1], [], []>} : vector<48x16xf32>, vector<16x32xf32>, vector<48x32xf32> -> vector<48x32xf32>
    %238 = arith.addf %235, %237 : vector<48x32xf32>
    %c144 = arith.constant 144 : index
    %c0_81 = arith.constant 0 : index
    %239 = vector.load %arg6[%c144, %c0_81] : memref<392x128xf32, #tpu.memory_space<vmem>>, vector<32x32xf32>
    %cst_82 = arith.constant dense<0.000000e+00> : vector<48x32xf32>
    %240 = tpu.matmul %27, %239, %cst_82 {dimension_numbers = #tpu.dot_dimension_numbers<[1], [0], [0], [1], [0, 0, 1, 1], [], []>} : vector<48x32xf32>, vector<32x32xf32>, vector<48x32xf32> -> vector<48x32xf32>
    %241 = arith.addf %238, %240 : vector<48x32xf32>
    %c376 = arith.constant 376 : index
    %c0_83 = arith.constant 0 : index
    %242 = vector.load %arg6[%c376, %c0_83] : memref<392x128xf32, #tpu.memory_space<vmem>>, vector<1x32xf32>
    %243 = vector.broadcast %242 : vector<1x32xf32> to vector<48x32xf32>
    %244 = arith.addf %241, %243 : vector<48x32xf32>
    %c377 = arith.constant 377 : index
    %c0_84 = arith.constant 0 : index
    %245 = vector.load %arg6[%c377, %c0_84] : memref<392x128xf32, #tpu.memory_space<vmem>>, vector<1x32xf32>
    %c378 = arith.constant 378 : index
    %c0_85 = arith.constant 0 : index
    %246 = vector.load %arg6[%c378, %c0_85] : memref<392x128xf32, #tpu.memory_space<vmem>>, vector<1x32xf32>
    %cst_86 = arith.constant dense<0.000000e+00> : vector<48xf32>
    %247 = vector.multi_reduction <add>, %244, %cst_86 [1] : vector<48x32xf32> to vector<48xf32>
    %248 = vector.shape_cast %247 : vector<48xf32> to vector<48x1xf32>
    %cst_87 = arith.constant 3.200000e+01 : f32
    %249 = vector.broadcast %cst_87 : f32 to vector<48x1xf32>
    %250 = arith.divf %248, %249 : vector<48x1xf32>
    %251 = vector.broadcast %250 : vector<48x1xf32> to vector<48x32xf32>
    %252 = arith.subf %244, %251 : vector<48x32xf32>
    %253 = arith.mulf %252, %252 : vector<48x32xf32>
    %cst_88 = arith.constant dense<0.000000e+00> : vector<48xf32>
    %254 = vector.multi_reduction <add>, %253, %cst_88 [1] : vector<48x32xf32> to vector<48xf32>
    %255 = vector.shape_cast %254 : vector<48xf32> to vector<48x1xf32>
    %cst_89 = arith.constant 3.200000e+01 : f32
    %256 = vector.broadcast %cst_89 : f32 to vector<48x1xf32>
    %257 = arith.divf %255, %256 : vector<48x1xf32>
    %258 = vector.broadcast %250 : vector<48x1xf32> to vector<48x32xf32>
    %259 = arith.subf %244, %258 : vector<48x32xf32>
    %cst_90 = arith.constant 9.99999974E-6 : f32
    %260 = vector.broadcast %cst_90 : f32 to vector<48x1xf32>
    %261 = arith.addf %257, %260 : vector<48x1xf32>
    %262 = math.rsqrt %261 : vector<48x1xf32>
    %263 = vector.broadcast %262 : vector<48x1xf32> to vector<48x32xf32>
    %264 = arith.mulf %259, %263 : vector<48x32xf32>
    %265 = vector.broadcast %245 : vector<1x32xf32> to vector<48x32xf32>
    %266 = arith.mulf %264, %265 : vector<48x32xf32>
    %267 = vector.broadcast %246 : vector<1x32xf32> to vector<48x32xf32>
    %268 = arith.addf %266, %267 : vector<48x32xf32>
    %cst_91 = arith.constant 0.000000e+00 : f32
    %269 = vector.broadcast %cst_91 : f32 to vector<48x32xf32>
    %270 = arith.maximumf %268, %269 : vector<48x32xf32>
    %c176 = arith.constant 176 : index
    %c0_92 = arith.constant 0 : index
    %271 = vector.load %arg6[%c176, %c0_92] : memref<392x128xf32, #tpu.memory_space<vmem>>, vector<32x32xf32>
    %cst_93 = arith.constant dense<0.000000e+00> : vector<48x32xf32>
    %272 = tpu.matmul %270, %271, %cst_93 {dimension_numbers = #tpu.dot_dimension_numbers<[1], [0], [0], [1], [0, 0, 1, 1], [], []>} : vector<48x32xf32>, vector<32x32xf32>, vector<48x32xf32> -> vector<48x32xf32>
    %c379 = arith.constant 379 : index
    %c0_94 = arith.constant 0 : index
    %273 = vector.load %arg6[%c379, %c0_94] : memref<392x128xf32, #tpu.memory_space<vmem>>, vector<1x32xf32>
    %274 = vector.broadcast %273 : vector<1x32xf32> to vector<48x32xf32>
    %275 = arith.addf %272, %274 : vector<48x32xf32>
    %c380 = arith.constant 380 : index
    %c0_95 = arith.constant 0 : index
    %276 = vector.load %arg6[%c380, %c0_95] : memref<392x128xf32, #tpu.memory_space<vmem>>, vector<1x32xf32>
    %c381 = arith.constant 381 : index
    %c0_96 = arith.constant 0 : index
    %277 = vector.load %arg6[%c381, %c0_96] : memref<392x128xf32, #tpu.memory_space<vmem>>, vector<1x32xf32>
    %cst_97 = arith.constant dense<0.000000e+00> : vector<48xf32>
    %278 = vector.multi_reduction <add>, %275, %cst_97 [1] : vector<48x32xf32> to vector<48xf32>
    %279 = vector.shape_cast %278 : vector<48xf32> to vector<48x1xf32>
    %cst_98 = arith.constant 3.200000e+01 : f32
    %280 = vector.broadcast %cst_98 : f32 to vector<48x1xf32>
    %281 = arith.divf %279, %280 : vector<48x1xf32>
    %282 = vector.broadcast %281 : vector<48x1xf32> to vector<48x32xf32>
    %283 = arith.subf %275, %282 : vector<48x32xf32>
    %284 = arith.mulf %283, %283 : vector<48x32xf32>
    %cst_99 = arith.constant dense<0.000000e+00> : vector<48xf32>
    %285 = vector.multi_reduction <add>, %284, %cst_99 [1] : vector<48x32xf32> to vector<48xf32>
    %286 = vector.shape_cast %285 : vector<48xf32> to vector<48x1xf32>
    %cst_100 = arith.constant 3.200000e+01 : f32
    %287 = vector.broadcast %cst_100 : f32 to vector<48x1xf32>
    %288 = arith.divf %286, %287 : vector<48x1xf32>
    %289 = vector.broadcast %281 : vector<48x1xf32> to vector<48x32xf32>
    %290 = arith.subf %275, %289 : vector<48x32xf32>
    %cst_101 = arith.constant 9.99999974E-6 : f32
    %291 = vector.broadcast %cst_101 : f32 to vector<48x1xf32>
    %292 = arith.addf %288, %291 : vector<48x1xf32>
    %293 = math.rsqrt %292 : vector<48x1xf32>
    %294 = vector.broadcast %293 : vector<48x1xf32> to vector<48x32xf32>
    %295 = arith.mulf %290, %294 : vector<48x32xf32>
    %296 = vector.broadcast %276 : vector<1x32xf32> to vector<48x32xf32>
    %297 = arith.mulf %295, %296 : vector<48x32xf32>
    %298 = vector.broadcast %277 : vector<1x32xf32> to vector<48x32xf32>
    %299 = arith.addf %297, %298 : vector<48x32xf32>
    %cst_102 = arith.constant 0.000000e+00 : f32
    %300 = vector.broadcast %cst_102 : f32 to vector<48x32xf32>
    %301 = arith.maximumf %299, %300 : vector<48x32xf32>
    %c0_i32_103 = arith.constant 0 : i32
    %302 = vector.broadcast %c0_i32_103 : i32 to vector<48x1xi32>
    %303 = arith.cmpi eq, %5, %302 : vector<48x1xi32>
    %cst_104 = arith.constant -1.000000e+30 : f32
    %304 = vector.shape_cast %303 : vector<48x1xi1> to vector<48x1xi1>
    %305 = vector.broadcast %304 : vector<48x1xi1> to vector<48x32xi1>
    %306 = vector.broadcast %cst_104 : f32 to vector<48x32xf32>
    %307 = arith.select %305, %301, %306 : vector<48x32xi1>, vector<48x32xf32>
    %cst_105 = arith.constant dense<0xFF800000> : vector<32xf32>
    %308 = vector.multi_reduction <maximumf>, %307, %cst_105 [0] : vector<48x32xf32> to vector<32xf32>
    %309 = vector.shape_cast %308 : vector<32xf32> to vector<1x32xf32>
    %c1_i32_106 = arith.constant 1 : i32
    %310 = vector.broadcast %c1_i32_106 : i32 to vector<48x1xi32>
    %311 = arith.cmpi eq, %5, %310 : vector<48x1xi32>
    %cst_107 = arith.constant -1.000000e+30 : f32
    %312 = vector.shape_cast %311 : vector<48x1xi1> to vector<48x1xi1>
    %313 = vector.broadcast %312 : vector<48x1xi1> to vector<48x32xi1>
    %314 = vector.broadcast %cst_107 : f32 to vector<48x32xf32>
    %315 = arith.select %313, %301, %314 : vector<48x32xi1>, vector<48x32xf32>
    %cst_108 = arith.constant dense<0xFF800000> : vector<32xf32>
    %316 = vector.multi_reduction <maximumf>, %315, %cst_108 [0] : vector<48x32xf32> to vector<32xf32>
    %317 = vector.shape_cast %316 : vector<32xf32> to vector<1x32xf32>
    %c2_i32_109 = arith.constant 2 : i32
    %318 = vector.broadcast %c2_i32_109 : i32 to vector<48x1xi32>
    %319 = arith.cmpi eq, %5, %318 : vector<48x1xi32>
    %cst_110 = arith.constant -1.000000e+30 : f32
    %320 = vector.shape_cast %319 : vector<48x1xi1> to vector<48x1xi1>
    %321 = vector.broadcast %320 : vector<48x1xi1> to vector<48x32xi1>
    %322 = vector.broadcast %cst_110 : f32 to vector<48x32xf32>
    %323 = arith.select %321, %301, %322 : vector<48x32xi1>, vector<48x32xf32>
    %cst_111 = arith.constant dense<0xFF800000> : vector<32xf32>
    %324 = vector.multi_reduction <maximumf>, %323, %cst_111 [0] : vector<48x32xf32> to vector<32xf32>
    %325 = vector.shape_cast %324 : vector<32xf32> to vector<1x32xf32>
    %c3_i32_112 = arith.constant 3 : i32
    %326 = vector.broadcast %c3_i32_112 : i32 to vector<48x1xi32>
    %327 = arith.cmpi eq, %5, %326 : vector<48x1xi32>
    %cst_113 = arith.constant -1.000000e+30 : f32
    %328 = vector.shape_cast %327 : vector<48x1xi1> to vector<48x1xi1>
    %329 = vector.broadcast %328 : vector<48x1xi1> to vector<48x32xi1>
    %330 = vector.broadcast %cst_113 : f32 to vector<48x32xf32>
    %331 = arith.select %329, %301, %330 : vector<48x32xi1>, vector<48x32xf32>
    %cst_114 = arith.constant dense<0xFF800000> : vector<32xf32>
    %332 = vector.multi_reduction <maximumf>, %331, %cst_114 [0] : vector<48x32xf32> to vector<32xf32>
    %333 = vector.shape_cast %332 : vector<32xf32> to vector<1x32xf32>
    %c4_i32_115 = arith.constant 4 : i32
    %334 = vector.broadcast %c4_i32_115 : i32 to vector<48x1xi32>
    %335 = arith.cmpi eq, %5, %334 : vector<48x1xi32>
    %cst_116 = arith.constant -1.000000e+30 : f32
    %336 = vector.shape_cast %335 : vector<48x1xi1> to vector<48x1xi1>
    %337 = vector.broadcast %336 : vector<48x1xi1> to vector<48x32xi1>
    %338 = vector.broadcast %cst_116 : f32 to vector<48x32xf32>
    %339 = arith.select %337, %301, %338 : vector<48x32xi1>, vector<48x32xf32>
    %cst_117 = arith.constant dense<0xFF800000> : vector<32xf32>
    %340 = vector.multi_reduction <maximumf>, %339, %cst_117 [0] : vector<48x32xf32> to vector<32xf32>
    %341 = vector.shape_cast %340 : vector<32xf32> to vector<1x32xf32>
    %c5_i32_118 = arith.constant 5 : i32
    %342 = vector.broadcast %c5_i32_118 : i32 to vector<48x1xi32>
    %343 = arith.cmpi eq, %5, %342 : vector<48x1xi32>
    %cst_119 = arith.constant -1.000000e+30 : f32
    %344 = vector.shape_cast %343 : vector<48x1xi1> to vector<48x1xi1>
    %345 = vector.broadcast %344 : vector<48x1xi1> to vector<48x32xi1>
    %346 = vector.broadcast %cst_119 : f32 to vector<48x32xf32>
    %347 = arith.select %345, %301, %346 : vector<48x32xi1>, vector<48x32xf32>
    %cst_120 = arith.constant dense<0xFF800000> : vector<32xf32>
    %348 = vector.multi_reduction <maximumf>, %347, %cst_120 [0] : vector<48x32xf32> to vector<32xf32>
    %349 = vector.shape_cast %348 : vector<32xf32> to vector<1x32xf32>
    %c6_i32_121 = arith.constant 6 : i32
    %350 = vector.broadcast %c6_i32_121 : i32 to vector<48x1xi32>
    %351 = arith.cmpi eq, %5, %350 : vector<48x1xi32>
    %cst_122 = arith.constant -1.000000e+30 : f32
    %352 = vector.shape_cast %351 : vector<48x1xi1> to vector<48x1xi1>
    %353 = vector.broadcast %352 : vector<48x1xi1> to vector<48x32xi1>
    %354 = vector.broadcast %cst_122 : f32 to vector<48x32xf32>
    %355 = arith.select %353, %301, %354 : vector<48x32xi1>, vector<48x32xf32>
    %cst_123 = arith.constant dense<0xFF800000> : vector<32xf32>
    %356 = vector.multi_reduction <maximumf>, %355, %cst_123 [0] : vector<48x32xf32> to vector<32xf32>
    %357 = vector.shape_cast %356 : vector<32xf32> to vector<1x32xf32>
    %c7_i32_124 = arith.constant 7 : i32
    %358 = vector.broadcast %c7_i32_124 : i32 to vector<48x1xi32>
    %359 = arith.cmpi eq, %5, %358 : vector<48x1xi32>
    %cst_125 = arith.constant -1.000000e+30 : f32
    %360 = vector.shape_cast %359 : vector<48x1xi1> to vector<48x1xi1>
    %361 = vector.broadcast %360 : vector<48x1xi1> to vector<48x32xi1>
    %362 = vector.broadcast %cst_125 : f32 to vector<48x32xf32>
    %363 = arith.select %361, %301, %362 : vector<48x32xi1>, vector<48x32xf32>
    %cst_126 = arith.constant dense<0xFF800000> : vector<32xf32>
    %364 = vector.multi_reduction <maximumf>, %363, %cst_126 [0] : vector<48x32xf32> to vector<32xf32>
    %365 = vector.shape_cast %364 : vector<32xf32> to vector<1x32xf32>
    %c8_i32_127 = arith.constant 8 : i32
    %366 = vector.broadcast %c8_i32_127 : i32 to vector<48x1xi32>
    %367 = arith.cmpi eq, %5, %366 : vector<48x1xi32>
    %cst_128 = arith.constant -1.000000e+30 : f32
    %368 = vector.shape_cast %367 : vector<48x1xi1> to vector<48x1xi1>
    %369 = vector.broadcast %368 : vector<48x1xi1> to vector<48x32xi1>
    %370 = vector.broadcast %cst_128 : f32 to vector<48x32xf32>
    %371 = arith.select %369, %301, %370 : vector<48x32xi1>, vector<48x32xf32>
    %cst_129 = arith.constant dense<0xFF800000> : vector<32xf32>
    %372 = vector.multi_reduction <maximumf>, %371, %cst_129 [0] : vector<48x32xf32> to vector<32xf32>
    %373 = vector.shape_cast %372 : vector<32xf32> to vector<1x32xf32>
    %c9_i32_130 = arith.constant 9 : i32
    %374 = vector.broadcast %c9_i32_130 : i32 to vector<48x1xi32>
    %375 = arith.cmpi eq, %5, %374 : vector<48x1xi32>
    %cst_131 = arith.constant -1.000000e+30 : f32
    %376 = vector.shape_cast %375 : vector<48x1xi1> to vector<48x1xi1>
    %377 = vector.broadcast %376 : vector<48x1xi1> to vector<48x32xi1>
    %378 = vector.broadcast %cst_131 : f32 to vector<48x32xf32>
    %379 = arith.select %377, %301, %378 : vector<48x32xi1>, vector<48x32xf32>
    %cst_132 = arith.constant dense<0xFF800000> : vector<32xf32>
    %380 = vector.multi_reduction <maximumf>, %379, %cst_132 [0] : vector<48x32xf32> to vector<32xf32>
    %381 = vector.shape_cast %380 : vector<32xf32> to vector<1x32xf32>
    %c10_i32_133 = arith.constant 10 : i32
    %382 = vector.broadcast %c10_i32_133 : i32 to vector<48x1xi32>
    %383 = arith.cmpi eq, %5, %382 : vector<48x1xi32>
    %cst_134 = arith.constant -1.000000e+30 : f32
    %384 = vector.shape_cast %383 : vector<48x1xi1> to vector<48x1xi1>
    %385 = vector.broadcast %384 : vector<48x1xi1> to vector<48x32xi1>
    %386 = vector.broadcast %cst_134 : f32 to vector<48x32xf32>
    %387 = arith.select %385, %301, %386 : vector<48x32xi1>, vector<48x32xf32>
    %cst_135 = arith.constant dense<0xFF800000> : vector<32xf32>
    %388 = vector.multi_reduction <maximumf>, %387, %cst_135 [0] : vector<48x32xf32> to vector<32xf32>
    %389 = vector.shape_cast %388 : vector<32xf32> to vector<1x32xf32>
    %c11_i32_136 = arith.constant 11 : i32
    %390 = vector.broadcast %c11_i32_136 : i32 to vector<48x1xi32>
    %391 = arith.cmpi eq, %5, %390 : vector<48x1xi32>
    %cst_137 = arith.constant -1.000000e+30 : f32
    %392 = vector.shape_cast %391 : vector<48x1xi1> to vector<48x1xi1>
    %393 = vector.broadcast %392 : vector<48x1xi1> to vector<48x32xi1>
    %394 = vector.broadcast %cst_137 : f32 to vector<48x32xf32>
    %395 = arith.select %393, %301, %394 : vector<48x32xi1>, vector<48x32xf32>
    %cst_138 = arith.constant dense<0xFF800000> : vector<32xf32>
    %396 = vector.multi_reduction <maximumf>, %395, %cst_138 [0] : vector<48x32xf32> to vector<32xf32>
    %397 = vector.shape_cast %396 : vector<32xf32> to vector<1x32xf32>
    %c12_i32_139 = arith.constant 12 : i32
    %398 = vector.broadcast %c12_i32_139 : i32 to vector<48x1xi32>
    %399 = arith.cmpi eq, %5, %398 : vector<48x1xi32>
    %cst_140 = arith.constant -1.000000e+30 : f32
    %400 = vector.shape_cast %399 : vector<48x1xi1> to vector<48x1xi1>
    %401 = vector.broadcast %400 : vector<48x1xi1> to vector<48x32xi1>
    %402 = vector.broadcast %cst_140 : f32 to vector<48x32xf32>
    %403 = arith.select %401, %301, %402 : vector<48x32xi1>, vector<48x32xf32>
    %cst_141 = arith.constant dense<0xFF800000> : vector<32xf32>
    %404 = vector.multi_reduction <maximumf>, %403, %cst_141 [0] : vector<48x32xf32> to vector<32xf32>
    %405 = vector.shape_cast %404 : vector<32xf32> to vector<1x32xf32>
    %c13_i32_142 = arith.constant 13 : i32
    %406 = vector.broadcast %c13_i32_142 : i32 to vector<48x1xi32>
    %407 = arith.cmpi eq, %5, %406 : vector<48x1xi32>
    %cst_143 = arith.constant -1.000000e+30 : f32
    %408 = vector.shape_cast %407 : vector<48x1xi1> to vector<48x1xi1>
    %409 = vector.broadcast %408 : vector<48x1xi1> to vector<48x32xi1>
    %410 = vector.broadcast %cst_143 : f32 to vector<48x32xf32>
    %411 = arith.select %409, %301, %410 : vector<48x32xi1>, vector<48x32xf32>
    %cst_144 = arith.constant dense<0xFF800000> : vector<32xf32>
    %412 = vector.multi_reduction <maximumf>, %411, %cst_144 [0] : vector<48x32xf32> to vector<32xf32>
    %413 = vector.shape_cast %412 : vector<32xf32> to vector<1x32xf32>
    %c14_i32_145 = arith.constant 14 : i32
    %414 = vector.broadcast %c14_i32_145 : i32 to vector<48x1xi32>
    %415 = arith.cmpi eq, %5, %414 : vector<48x1xi32>
    %cst_146 = arith.constant -1.000000e+30 : f32
    %416 = vector.shape_cast %415 : vector<48x1xi1> to vector<48x1xi1>
    %417 = vector.broadcast %416 : vector<48x1xi1> to vector<48x32xi1>
    %418 = vector.broadcast %cst_146 : f32 to vector<48x32xf32>
    %419 = arith.select %417, %301, %418 : vector<48x32xi1>, vector<48x32xf32>
    %cst_147 = arith.constant dense<0xFF800000> : vector<32xf32>
    %420 = vector.multi_reduction <maximumf>, %419, %cst_147 [0] : vector<48x32xf32> to vector<32xf32>
    %421 = vector.shape_cast %420 : vector<32xf32> to vector<1x32xf32>
    %c15_i32_148 = arith.constant 15 : i32
    %422 = vector.broadcast %c15_i32_148 : i32 to vector<48x1xi32>
    %423 = arith.cmpi eq, %5, %422 : vector<48x1xi32>
    %cst_149 = arith.constant -1.000000e+30 : f32
    %424 = vector.shape_cast %423 : vector<48x1xi1> to vector<48x1xi1>
    %425 = vector.broadcast %424 : vector<48x1xi1> to vector<48x32xi1>
    %426 = vector.broadcast %cst_149 : f32 to vector<48x32xf32>
    %427 = arith.select %425, %301, %426 : vector<48x32xi1>, vector<48x32xf32>
    %cst_150 = arith.constant dense<0xFF800000> : vector<32xf32>
    %428 = vector.multi_reduction <maximumf>, %427, %cst_150 [0] : vector<48x32xf32> to vector<32xf32>
    %429 = vector.shape_cast %428 : vector<32xf32> to vector<1x32xf32>
    %430 = tpu.concatenate %309, %317, %325, %333, %341, %349, %357, %365, %373, %381, %389, %397, %405, %413, %421, %429 in 0 : vector<1x32xf32>, vector<1x32xf32>, vector<1x32xf32>, vector<1x32xf32>, vector<1x32xf32>, vector<1x32xf32>, vector<1x32xf32>, vector<1x32xf32>, vector<1x32xf32>, vector<1x32xf32>, vector<1x32xf32>, vector<1x32xf32>, vector<1x32xf32>, vector<1x32xf32>, vector<1x32xf32>, vector<1x32xf32> -> vector<16x32xf32>
    %cst_151 = arith.constant 0.000000e+00 : f32
    %431 = vector.shape_cast %8 : vector<16x1xi1> to vector<16x1xi1>
    %432 = vector.broadcast %431 : vector<16x1xi1> to vector<16x32xi1>
    %433 = vector.broadcast %cst_151 : f32 to vector<16x32xf32>
    %434 = arith.select %432, %430, %433 : vector<16x32xi1>, vector<16x32xf32>
    %435 = arith.addf %231, %434 : vector<16x32xf32>
    %c208 = arith.constant 208 : index
    %c0_152 = arith.constant 0 : index
    %436 = vector.load %arg6[%c208, %c0_152] : memref<392x128xf32, #tpu.memory_space<vmem>>, vector<32x32xf32>
    %cst_153 = arith.constant dense<0.000000e+00> : vector<16x32xf32>
    %437 = tpu.matmul %435, %436, %cst_153 {dimension_numbers = #tpu.dot_dimension_numbers<[1], [0], [0], [1], [0, 0, 1, 1], [], []>} : vector<16x32xf32>, vector<32x32xf32>, vector<16x32xf32> -> vector<16x32xf32>
    %c382 = arith.constant 382 : index
    %c0_154 = arith.constant 0 : index
    %438 = vector.load %arg6[%c382, %c0_154] : memref<392x128xf32, #tpu.memory_space<vmem>>, vector<1x32xf32>
    %439 = vector.broadcast %438 : vector<1x32xf32> to vector<16x32xf32>
    %440 = arith.addf %437, %439 : vector<16x32xf32>
    %c383 = arith.constant 383 : index
    %c0_155 = arith.constant 0 : index
    %441 = vector.load %arg6[%c383, %c0_155] : memref<392x128xf32, #tpu.memory_space<vmem>>, vector<1x32xf32>
    %c384 = arith.constant 384 : index
    %c0_156 = arith.constant 0 : index
    %442 = vector.load %arg6[%c384, %c0_156] : memref<392x128xf32, #tpu.memory_space<vmem>>, vector<1x32xf32>
    %cst_157 = arith.constant dense<0.000000e+00> : vector<16xf32>
    %443 = vector.multi_reduction <add>, %440, %cst_157 [1] : vector<16x32xf32> to vector<16xf32>
    %444 = vector.shape_cast %443 : vector<16xf32> to vector<16x1xf32>
    %cst_158 = arith.constant 3.200000e+01 : f32
    %445 = vector.broadcast %cst_158 : f32 to vector<16x1xf32>
    %446 = arith.divf %444, %445 : vector<16x1xf32>
    %447 = vector.broadcast %446 : vector<16x1xf32> to vector<16x32xf32>
    %448 = arith.subf %440, %447 : vector<16x32xf32>
    %449 = arith.mulf %448, %448 : vector<16x32xf32>
    %cst_159 = arith.constant dense<0.000000e+00> : vector<16xf32>
    %450 = vector.multi_reduction <add>, %449, %cst_159 [1] : vector<16x32xf32> to vector<16xf32>
    %451 = vector.shape_cast %450 : vector<16xf32> to vector<16x1xf32>
    %cst_160 = arith.constant 3.200000e+01 : f32
    %452 = vector.broadcast %cst_160 : f32 to vector<16x1xf32>
    %453 = arith.divf %451, %452 : vector<16x1xf32>
    %454 = vector.broadcast %446 : vector<16x1xf32> to vector<16x32xf32>
    %455 = arith.subf %440, %454 : vector<16x32xf32>
    %cst_161 = arith.constant 9.99999974E-6 : f32
    %456 = vector.broadcast %cst_161 : f32 to vector<16x1xf32>
    %457 = arith.addf %453, %456 : vector<16x1xf32>
    %458 = math.rsqrt %457 : vector<16x1xf32>
    %459 = vector.broadcast %458 : vector<16x1xf32> to vector<16x32xf32>
    %460 = arith.mulf %455, %459 : vector<16x32xf32>
    %461 = vector.broadcast %441 : vector<1x32xf32> to vector<16x32xf32>
    %462 = arith.mulf %460, %461 : vector<16x32xf32>
    %463 = vector.broadcast %442 : vector<1x32xf32> to vector<16x32xf32>
    %464 = arith.addf %462, %463 : vector<16x32xf32>
    %cst_162 = arith.constant 0.000000e+00 : f32
    %465 = vector.broadcast %cst_162 : f32 to vector<16x32xf32>
    %466 = arith.maximumf %464, %465 : vector<16x32xf32>
    %c240 = arith.constant 240 : index
    %c0_163 = arith.constant 0 : index
    %467 = vector.load %arg6[%c240, %c0_163] : memref<392x128xf32, #tpu.memory_space<vmem>>, vector<32x128xf32>
    %cst_164 = arith.constant dense<0.000000e+00> : vector<16x128xf32>
    %468 = tpu.matmul %466, %467, %cst_164 {dimension_numbers = #tpu.dot_dimension_numbers<[1], [0], [0], [1], [0, 0, 1, 1], [], []>} : vector<16x32xf32>, vector<32x128xf32>, vector<16x128xf32> -> vector<16x128xf32>
    %c385 = arith.constant 385 : index
    %c0_165 = arith.constant 0 : index
    %469 = vector.load %arg6[%c385, %c0_165] : memref<392x128xf32, #tpu.memory_space<vmem>>, vector<1x128xf32>
    %470 = vector.broadcast %469 : vector<1x128xf32> to vector<16x128xf32>
    %471 = arith.addf %468, %470 : vector<16x128xf32>
    %c0_166 = arith.constant 0 : index
    %c0_167 = arith.constant 0 : index
    %c0_168 = arith.constant 0 : index
    %472 = vector.load %arg7[%c0_166, %c0_167, %c0_168] : memref<1x16x128xf32, #tpu.memory_space<vmem>>, vector<1x16x128xf32>
    %473 = vector.shape_cast %472 : vector<1x16x128xf32> to vector<16x128xf32>
    %474 = vector.shape_cast %471 : vector<16x128xf32> to vector<1x16x128xf32>
    tpu.vector_store %arg7[%c0_166, %c0_167, %c0_168], %474 {strides = array<i32>} : memref<1x16x128xf32, #tpu.memory_space<vmem>>, vector<1x16x128xf32>,
    %475 = arith.subf %13, %17 : vector<48x16xf32>
    %cst_169 = arith.constant dense<0.000000e+00> : vector<48x32xf32>
    %476 = tpu.matmul %475, %435, %cst_169 {dimension_numbers = #tpu.dot_dimension_numbers<[1], [0], [0], [1], [0, 0, 1, 1], [], []>} : vector<48x16xf32>, vector<16x32xf32>, vector<48x32xf32> -> vector<48x32xf32>
    %c272 = arith.constant 272 : index
    %c0_170 = arith.constant 0 : index
    %477 = vector.load %arg6[%c272, %c0_170] : memref<392x128xf32, #tpu.memory_space<vmem>>, vector<32x32xf32>
    %cst_171 = arith.constant dense<0.000000e+00> : vector<48x32xf32>
    %478 = tpu.matmul %476, %477, %cst_171 {dimension_numbers = #tpu.dot_dimension_numbers<[1], [0], [0], [1], [0, 0, 1, 1], [], []>} : vector<48x32xf32>, vector<32x32xf32>, vector<48x32xf32> -> vector<48x32xf32>
    %c304 = arith.constant 304 : index
    %c0_172 = arith.constant 0 : index
    %479 = vector.load %arg6[%c304, %c0_172] : memref<392x128xf32, #tpu.memory_space<vmem>>, vector<32x32xf32>
    %cst_173 = arith.constant dense<0.000000e+00> : vector<48x32xf32>
    %480 = tpu.matmul %27, %479, %cst_173 {dimension_numbers = #tpu.dot_dimension_numbers<[1], [0], [0], [1], [0, 0, 1, 1], [], []>} : vector<48x32xf32>, vector<32x32xf32>, vector<48x32xf32> -> vector<48x32xf32>
    %481 = arith.addf %478, %480 : vector<48x32xf32>
    %c386 = arith.constant 386 : index
    %c0_174 = arith.constant 0 : index
    %482 = vector.load %arg6[%c386, %c0_174] : memref<392x128xf32, #tpu.memory_space<vmem>>, vector<1x32xf32>
    %483 = vector.broadcast %482 : vector<1x32xf32> to vector<48x32xf32>
    %484 = arith.addf %481, %483 : vector<48x32xf32>
    %c387 = arith.constant 387 : index
    %c0_175 = arith.constant 0 : index
    %485 = vector.load %arg6[%c387, %c0_175] : memref<392x128xf32, #tpu.memory_space<vmem>>, vector<1x32xf32>
    %c388 = arith.constant 388 : index
    %c0_176 = arith.constant 0 : index
    %486 = vector.load %arg6[%c388, %c0_176] : memref<392x128xf32, #tpu.memory_space<vmem>>, vector<1x32xf32>
    %cst_177 = arith.constant dense<0.000000e+00> : vector<48xf32>
    %487 = vector.multi_reduction <add>, %484, %cst_177 [1] : vector<48x32xf32> to vector<48xf32>
    %488 = vector.shape_cast %487 : vector<48xf32> to vector<48x1xf32>
    %cst_178 = arith.constant 3.200000e+01 : f32
    %489 = vector.broadcast %cst_178 : f32 to vector<48x1xf32>
    %490 = arith.divf %488, %489 : vector<48x1xf32>
    %491 = vector.broadcast %490 : vector<48x1xf32> to vector<48x32xf32>
    %492 = arith.subf %484, %491 : vector<48x32xf32>
    %493 = arith.mulf %492, %492 : vector<48x32xf32>
    %cst_179 = arith.constant dense<0.000000e+00> : vector<48xf32>
    %494 = vector.multi_reduction <add>, %493, %cst_179 [1] : vector<48x32xf32> to vector<48xf32>
    %495 = vector.shape_cast %494 : vector<48xf32> to vector<48x1xf32>
    %cst_180 = arith.constant 3.200000e+01 : f32
    %496 = vector.broadcast %cst_180 : f32 to vector<48x1xf32>
    %497 = arith.divf %495, %496 : vector<48x1xf32>
    %498 = vector.broadcast %490 : vector<48x1xf32> to vector<48x32xf32>
    %499 = arith.subf %484, %498 : vector<48x32xf32>
    %cst_181 = arith.constant 9.99999974E-6 : f32
    %500 = vector.broadcast %cst_181 : f32 to vector<48x1xf32>
    %501 = arith.addf %497, %500 : vector<48x1xf32>
    %502 = math.rsqrt %501 : vector<48x1xf32>
    %503 = vector.broadcast %502 : vector<48x1xf32> to vector<48x32xf32>
    %504 = arith.mulf %499, %503 : vector<48x32xf32>
    %505 = vector.broadcast %485 : vector<1x32xf32> to vector<48x32xf32>
    %506 = arith.mulf %504, %505 : vector<48x32xf32>
    %507 = vector.broadcast %486 : vector<1x32xf32> to vector<48x32xf32>
    %508 = arith.addf %506, %507 : vector<48x32xf32>
    %cst_182 = arith.constant 0.000000e+00 : f32
    %509 = vector.broadcast %cst_182 : f32 to vector<48x32xf32>
    %510 = arith.maximumf %508, %509 : vector<48x32xf32>
    %c336 = arith.constant 336 : index
    %c0_183 = arith.constant 0 : index
    %511 = vector.load %arg6[%c336, %c0_183] : memref<392x128xf32, #tpu.memory_space<vmem>>, vector<32x128xf32>
    %cst_184 = arith.constant dense<0.000000e+00> : vector<48x128xf32>
    %512 = tpu.matmul %510, %511, %cst_184 {dimension_numbers = #tpu.dot_dimension_numbers<[1], [0], [0], [1], [0, 0, 1, 1], [], []>} : vector<48x32xf32>, vector<32x128xf32>, vector<48x128xf32> -> vector<48x128xf32>
    %c389 = arith.constant 389 : index
    %c0_185 = arith.constant 0 : index
    %513 = vector.load %arg6[%c389, %c0_185] : memref<392x128xf32, #tpu.memory_space<vmem>>, vector<1x128xf32>
    %514 = vector.broadcast %513 : vector<1x128xf32> to vector<48x128xf32>
    %515 = arith.addf %512, %514 : vector<48x128xf32>
    %c0_186 = arith.constant 0 : index
    %c0_187 = arith.constant 0 : index
    %c0_188 = arith.constant 0 : index
    %516 = vector.load %arg8[%c0_186, %c0_187, %c0_188] : memref<1x48x128xf32, #tpu.memory_space<vmem>>, vector<1x48x128xf32>
    %517 = vector.shape_cast %516 : vector<1x48x128xf32> to vector<48x128xf32>
    %518 = vector.shape_cast %515 : vector<48x128xf32> to vector<1x48x128xf32>
    tpu.vector_store %arg8[%c0_186, %c0_187, %c0_188], %518 {strides = array<i32>} : memref<1x48x128xf32, #tpu.memory_space<vmem>>, vector<1x48x128xf32>,
    return
  }
  func.func @transform_0(%arg0: i32) -> (i32, i32, i32) {
    %c0_i32 = arith.constant 0 : i32
    %c0_i32_0 = arith.constant 0 : i32
    %c0_i32_1 = arith.constant 0 : i32
    return %arg0, %c0_i32, %c0_i32_0 : i32, i32, i32
  }
  func.func @transform_1(%arg0: i32) -> (i32, i32, i32) {
    %c0_i32 = arith.constant 0 : i32
    %c0_i32_0 = arith.constant 0 : i32
    %c0_i32_1 = arith.constant 0 : i32
    return %arg0, %c0_i32, %c0_i32_0 : i32, i32, i32
  }
  func.func @transform_2(%arg0: i32) -> (i32, i32) {
    %c0_i32 = arith.constant 0 : i32
    %c0_i32_0 = arith.constant 0 : i32
    %c0_i32_1 = arith.constant 0 : i32
    return %c0_i32, %c0_i32_0 : i32, i32
  }
  func.func @transform_3(%arg0: i32) -> (i32, i32) {
    %c0_i32 = arith.constant 0 : i32
    %c0_i32_0 = arith.constant 0 : i32
    %c0_i32_1 = arith.constant 0 : i32
    return %c0_i32, %c0_i32_0 : i32, i32
  }
  func.func @transform_4(%arg0: i32) -> (i32, i32) {
    %c0_i32 = arith.constant 0 : i32
    %c0_i32_0 = arith.constant 0 : i32
    %c0_i32_1 = arith.constant 0 : i32
    return %c0_i32, %c0_i32_0 : i32, i32
  }
  func.func @transform_5(%arg0: i32) -> (i32, i32) {
    %c0_i32 = arith.constant 0 : i32
    %c0_i32_0 = arith.constant 0 : i32
    %c0_i32_1 = arith.constant 0 : i32
    return %c0_i32, %c0_i32_0 : i32, i32
  }
  func.func @transform_6(%arg0: i32) -> (i32, i32, i32) {
    %c0_i32 = arith.constant 0 : i32
    %c0_i32_0 = arith.constant 0 : i32
    %c0_i32_1 = arith.constant 0 : i32
    return %arg0, %c0_i32, %c0_i32_0 : i32, i32, i32
  }
  func.func @transform_7(%arg0: i32) -> (i32, i32, i32) {
    %c0_i32 = arith.constant 0 : i32
    %c0_i32_0 = arith.constant 0 : i32
    %c0_i32_1 = arith.constant 0 : i32
    return %arg0, %c0_i32, %c0_i32_0 : i32, i32, i32
  }
}

</mosaic_0001>

<bundles_post_ra>
// kernel: edge_conv_layers_forward.1
= control target key start
LH: loop header
LB: loop body
LE: loop exit
PB: predicated region body
PF: predicated region fallthrough
CT: control target
= control target key end

     0   :  { %s6746_s0 = inlined_call_operand.vmem [shape: f32[4,16,6], index: 0, kind: input, shape index: {}]   ;;  %s6747_s1 = inlined_call_operand.vmem [shape: f32[4,48,5], index: 1, kind: input, shape index: {}]   ;;  %s6748_s2 = inlined_call_operand.vmem [shape: s32[48,1], index: 2, kind: input, shape index: {}]   ;;  %s6749_s3 = inlined_call_operand.vmem [shape: s32[48,1], index: 3, kind: input, shape index: {}]   ;;  %s6750_s4 = inlined_call_operand.vmem [shape: f32[16,1], index: 4, kind: input, shape index: {}]   ;;  %s6751_s5 = inlined_call_operand.vmem [shape: f32[392,128], index: 5, kind: input, shape index: {}]   ;;  %s6752_s6 = inlined_call_operand.hbm [shape: f32[4,16,128], index: 6, kind: output, shape index: {0}]   ;;  %s6753_s7 = inlined_call_operand.vmem [shape: f32[4,48,128], index: 7, kind: output, shape index: {1}]  }
   0x1   :  { %7028 = sst [smem:[#allocation138_spill]] %s6746_s0 }
   0x2   :  { %13 = vsyncpa [#allocation3], 0 }
   0x3   :  { %15 = vsyncpa [#allocation3 + $0x1], 0  ;;  %s4007_s24 = smov 0   ;;  %s4009_s25 = smov 0  }
   0x4   :  { %s4011_s26 = smov 0   ;;  %s4013_s27 = smov 0  }
   0x5 LB: > { %s4028_s28 = sadd.s32 4294967295, %s3959_s27   ;;  %s3625_s29 = sadd.s32 4294967294, %s3959_s27   ;;  %s3959_s27 = sphi %s4013_s27, %s7522_s27   ;;  %s3955_s26 = sphi %s4011_s26, %s7521_s26   ;;  %s3951_s25 = sphi %s4009_s25, %s7520_s25   ;;  %s3947_s24 = sphi %s4007_s24, %s7519_s24  }
   0x6   : > { %s4032_s30 = sadd.s32 1, %s3959_s27   ;;  %s164_s8 = sadd.s32 1, %s3955_s26 }
   0x7   : > { %s161_s9 = ssub.s32 %s3959_s27, %s4032_s30  ;;  %p174_p0 = scmp.ne.s32.totalorder %s3955_s26, %s3951_s25 }
   0x8   : > { %p162_p1 = scmp.eq.s32.totalorder %s161_s9, 0  ;;  %p175_p2 = scmp.eq.s32.totalorder %s4028_s28, 3 }
   0x9   : > { %p180_p3 = scmp.ne.s32.totalorder %s3951_s25, %s3947_s24  ;;  %p181_p4 = scmp.eq.s32.totalorder %s3625_s29, 3 }
   0xa   : > { %s4043_s10 = scalar_select %p162_p1, %s3955_s26, %s164_s8  }
   0xb   : > { %p4045_p5 = por %p175_p2, %p174_p0  ;;  %p4049_p6 = por %p181_p4, %p180_p3 }
   0xc   : > { %p3628_p7 = scmp.ge.s32.totalorder %s3959_s27, 1  ;;  %p253_p8 = scmp.lt.s32.totalorder %s3959_s27, 5 }
   0xe   : > { %p254_p9 = pnand %p3628_p7, %p253_p8 }
  0x10   : > { %257 = sbr.rel (%p254_p9) target bundleno = 3559 (0xde7), region = 44 }
  0x15   : > { %v408_v0 = vld [vmem:[%s6751_s5] sm:$0x3f]  ;;  %vm6842_vm0 = vcmask 1045504   ;;  %p295_p10 = scmp.lt.s32.totalorder %s4028_s28, 3  ;;  %vm6843_vm1 = vcmask 1044480   ;;  %v509_v2 = vld [vmem:[%s6751_s5 + $0x28] sm:$0xff] }
  0x16   : > { %3646 = vmatpush.msk.msra.mxu0 %vm6842_vm0, %v408_v0  ;;  %v445_v1 = vld [vmem:[%s6751_s5 + $0x8] sm:$0x1f]  ;;  %vm411_vm2 = vcmask 48128   ;;  %vm448_vm3 = vcmask 39936   ;;  %v508_v3 = vld [vmem:[%s6751_s5 + $0x20] sm:$0xff]  ;;  %s7031_s0 = sld [smem:[#allocation138_spill]] }
  0x17   : > { %s4067_s19 = scalar_select %p295_p10, %s4028_s28, 3  ;;  %3649 = vmatpush.msk.msra.mxu1 %vm6843_vm1, %v445_v1  ;;  %3743 = vmatpush.msk.msra.mxu2 %vm6843_vm1, %v445_v1  ;;  %v507_v12 = vld [vmem:[%s6751_s5 + $0x18] sm:$0xff]  ;;  %v506_v13 = vld [vmem:[%s6751_s5 + $0x10] sm:$0xff]  ;;  %v4101_v14 = vld [vmem:[%s6749_s3] sm:$0xff]  ;;  %v6754_v15 = vmov 0   ;;  %vm510_vm4 = vcmask 261120  }
  0x18   : > { %3791 = vset.pattern.permute.xlu1 %v6754_v15  ;;  %v658_v16 = vld [vmem:[%s6751_s5 + $0x48] sm:$0xff]  ;;  %v657_v17 = vld [vmem:[%s6751_s5 + $0x40] sm:$0xff]  ;;  %3792 = vset.pattern.permute.xlu2 %v6754_v15  ;;  %v656_v18 = vld [vmem:[%s6751_s5 + $0x38] sm:$0xff]  ;;  %vm1100_vm5 = vcmp.eq.s32.totalorder %v4101_v14, 0  ;;  %vm1218_vm11 = vcmp.eq.s32.totalorder %v4101_v14, 2  ;;  %s3962_s14 = smov 96  }
  0x19   : > { %529 = vmatpush.msrb.mxu2 %v509_v2  ;;  %s3741_s22 = sshll.u32 %s4067_s19, 4  ;;  %s7027_s23 = smul.u32 48, %s4067_s19  ;;  %373 = vperm.xlu1 %3791, %v4101_v14   ;;  %v655_v19 = vld [vmem:[%s6751_s5 + $0x30] sm:$0xff]  ;;  %v319_v20 = vld [vmem:[%s6748_s2 + $0x8] sm:$0xff]  ;;  %v322_v26 = vld [vmem:[%s6748_s2 + $0x20] sm:$0xff]  ;;  %v1106_v36 = vsel %vm1100_vm5, 1, %v6754_v15 }
  0x1a   : > { %3790 = vset.pattern.permute.xlu0 %v6754_v15  ;;  %v4125_v21 = vld [vmem:[%s6749_s3 + $0x10] sm:$0xff]  ;;  %v4130_v22 = vld [vmem:[%s6749_s3 + $0x8] sm:$0xff]  ;;  %v321_v33 = vld [vmem:[%s6748_s2 + $0x18] sm:$0xff]  ;;  %v1224_v53 = vsel %vm1218_vm11, 1, %v6754_v15 }
  0x1b   : > { %530 = vmatpush.msrb.mxu2 %v508_v3  ;;  %s304_s15 = scalar_lea.vmem %s6747_s1, %s7027_s23  ;;  %376 = vperm.xlu2 %3792, %v4130_v22   ;;  %v3803_v23 = vld [vmem:[%s6751_s5 + $0x170] ss:$0 sm:$0xff]  ;;  %v4152_v31 = vld [vmem:[%s6749_s3 + $0x28] sm:$0xff]  ;;  %v3804_v32 = vld [vmem:[%s6751_s5 + $0x171] ss:$0 sm:$0xff]  ;;  %vm1101_vm7 = vcmp.eq.s32.totalorder %v4130_v22, 0 }
  0x1c   : > { %s299_s9 = scalar_lea.vmem %s7031_s0, %s3741_s22  ;;  %v312_v5 = vld [vmem:[%s304_s15] sm:$0xff]  ;;  %v313_v8 = vld [vmem:[%s304_s15 + $0x8] sm:$0xff]  ;;  %v314_v10 = vld [vmem:[%s304_s15 + $0x10] sm:$0xff]  ;;  %vm1105_vm6 = vcmp.eq.s32.totalorder %v4152_v31, 0  ;;  %v1107_v43 = vsel %vm1101_vm7, 1, %v6754_v15  ;;  %vm1160_vm9 = vcmp.eq.s32.totalorder %v4130_v22, 1 }
  0x1d   : > { %v310_v4 = vld [vmem:[%s299_s9] sm:$0xff]  ;;  %3650 = vmatmul.msk.f32.vlgmr.msra.gmra.mxu1 %vm448_vm3, %v312_v5  ;;  %v311_v7 = vld [vmem:[%s299_s9 + $0x8] sm:$0xff]  ;;  %v315_v11 = vld [vmem:[%s304_s15 + $0x18] sm:$0xff]  ;;  %531 = vmatpush.msrb.mxu2 %v507_v12  ;;  %v1111_v40 = vsel %vm1105_vm6, 1, %v6754_v15  ;;  %v1166_v49 = vsel %vm1160_vm9, 1, %v6754_v15  ;;  %vm1219_vm10 = vcmp.eq.s32.totalorder %v4130_v22, 2 }
  0x1e   : > { %3647 = vmatmul.msk.f32.vlgmr.msra.gmra.mxu0 %vm411_vm2, %v310_v4  ;;  %v316_v6 = vld [vmem:[%s304_s15 + $0x20] sm:$0xff]  ;;  %v317_v9 = vld [vmem:[%s304_s15 + $0x28] sm:$0xff]  ;;  %v320_v27 = vld [vmem:[%s6748_s2 + $0x10] sm:$0xff]  ;;  %v1225_v52 = vsel %vm1219_vm10, 1, %v6754_v15  ;;  %vm1102_vm12 = vcmp.eq.s32.totalorder %v4125_v21, 0  ;;  %vm1223_vm13 = vcmp.eq.s32.totalorder %v4152_v31, 2 }
  0x1f   : > { %3654 = vmatmul.msk.f32.vlgmr.msra.gmra.mxu2 %vm448_vm3, %v316_v6  ;;  %v4172_v37 = vld [vmem:[%s6749_s3 + $0x20] sm:$0xff]  ;;  %v2191_v41 = vld [vmem:[%s6751_s5 + $0xa8] sm:$0xff]  ;;  %v2189_v44 = vld [vmem:[%s6751_s5 + $0x98] sm:$0xff]  ;;  %v1108_v55 = vsel %vm1102_vm12, 1, %v6754_v15  ;;  %v1229_v58 = vsel %vm1223_vm13, 1, %v6754_v15  ;;  %vm1161_vm15 = vcmp.eq.s32.totalorder %v4125_v21, 1 }
  0x20   : > { %532 = vmatpush.msrb.mxu2 %v506_v13  ;;  %v2190_v42 = vld [vmem:[%s6751_s5 + $0xa0] sm:$0xff]  ;;  %vm1163_vm8 = vcmp.eq.s32.totalorder %v4172_v37, 1  ;;  %v2188_v46 = vld [vmem:[%s6751_s5 + $0x90] sm:$0xff]  ;;  %v4221_v57 = vld [vmem:[%s6749_s3 + $0x18] sm:$0xff]  ;;  %v1167_v61 = vsel %vm1161_vm15, 1, %v6754_v15  ;;  %vm1340_vm6 = vcmp.eq.s32.totalorder %v4172_v37, 4 }
  0x21   : > { %340 = vperm.xlu1 %3791, %v319_v20   ;;  %v1169_v47 = vsel %vm1163_vm8, 1, %v6754_v15  ;;  %vm1162_vm14 = vcmp.eq.s32.totalorder %v4221_v57, 1  ;;  %vm1221_vm5 = vcmp.eq.s32.totalorder %v4221_v57, 2  ;;  %v1346_v1 = vsel %vm1340_vm6, 1, %v6754_v15  ;;  %v318_v4 = vld [vmem:[%s6748_s2] sm:$0xff]  ;;  %s285_s15 = sand.u32 1, %s3951_s25  }
  0x22   : > { %689 = vmatpush.msra.mxu2 %v658_v16  ;;  %v1168_v60 = vsel %vm1162_vm14, 1, %v6754_v15  ;;  %v1227_v0 = vsel %vm1221_vm5, 1, %v6754_v15  ;;  %vm1280_vm7 = vcmp.eq.s32.totalorder %v4221_v57, 3  ;;  %vm1399_vm8 = vcmp.eq.s32.totalorder %v4172_v37, 5  ;;  %337 = vperm.xlu0 %3790, %v318_v4   ;;  %s3629_s16 = sshll.u32 %s285_s15, 4  ;;  %s3742_s9 = sshll.u32 %s4028_s28, 4 }
  0x23   : > { %343 = vperm.xlu2 %3792, %v320_v27   ;;  %v1286_v2 = vsel %vm1280_vm7, 1, %v6754_v15  ;;  %v1405_v3 = vsel %vm1399_vm8, 1, %v6754_v15  ;;  %vm1220_vm9 = vcmp.eq.s32.totalorder %v4125_v21, 2  ;;  %vm1339_vm10 = vcmp.eq.s32.totalorder %v4221_v57, 4  ;;  %s6603_s18 = scalar_lea.vmem [#allocation2], %s3629_s16  ;;  %s3503_s20 = scalar_lea.sflag [#allocation3], %s285_s15 }
  0x24   : > { %690 = vmatpush.msra.mxu2 %v657_v17  ;;  %v1226_v5 = vsel %vm1220_vm9, 1, %v6754_v15  ;;  %v1345_v6 = vsel %vm1339_vm10, 1, %v6754_v15  ;;  %vm1337_vm11 = vcmp.eq.s32.totalorder %v4130_v22, 4  ;;  %vm1458_vm12 = vcmp.eq.s32.totalorder %v4172_v37, 6  ;;  %s3520_s8 = sshll.u32 %s6603_s18, 4  ;;  %s3917_s23 = scalar_lea.hbm %s6752_s6, 64  ;;  %s3521_s8 = int_to_ptr.vmem [resolvable:$true] %s3520_s8 }
  0x25   : > { %3651 = vmatmul.msk.f32.gmra.mxu1 %vm448_vm3, %v313_v8  ;;  %v1464_v8 = vsel %vm1458_vm12, 1, %v6754_v15  ;;  %vm1279_vm13 = vcmp.eq.s32.totalorder %v4125_v21, 3  ;;  %vm1396_vm14 = vcmp.eq.s32.totalorder %v4130_v22, 5  ;;  %vm1338_vm15 = vcmp.eq.s32.totalorder %v4125_v21, 4 }
  0x26   : > { %3648 = vmatmul.msk.f32.gmra.mxu0 %vm411_vm2, %v311_v7  ;;  %691 = vmatpush.msra.mxu2 %v656_v18  ;;  %vm1281_vm2 = vcmp.eq.s32.totalorder %v4172_v37, 3  ;;  %v1343_v7 = vsel %vm1337_vm11, 1, %v6754_v15  ;;  %v1344_v12 = vsel %vm1338_vm15, 1, %v6754_v15  ;;  %vm1104_vm5 = vcmp.eq.s32.totalorder %v4172_v37, 0 }
  0x27   : > { %3655 = vmatmul.msk.f32.gmra.mxu2 %vm448_vm3, %v317_v9  ;;  %v1287_v62 = vsel %vm1281_vm2, 1, %v6754_v15  ;;  %v1285_v9 = vsel %vm1279_vm13, 1, %v6754_v15  ;;  %vm1455_vm2 = vcmp.eq.s32.totalorder %v4130_v22, 6  ;;  %v1110_v20 = vsel %vm1104_vm5, 1, %v6754_v15 }
  0x28   : > { %692 = vmatpush.msra.mxu2 %v655_v19  ;;  %v1461_v17 = vsel %vm1455_vm2, 1, %v6754_v15  ;;  %v323_v19 = vld [vmem:[%s6748_s2 + $0x28] sm:$0xff]  ;;  %vm1159_vm6 = vcmp.eq.s32.totalorder %v4101_v14, 1  ;;  %vm1164_vm7 = vcmp.eq.s32.totalorder %v4152_v31, 1  ;;  %vm1222_vm8 = vcmp.eq.s32.totalorder %v4172_v37, 2 }
  0x29   : > { %379 = vperm.xlu1 %3791, %v4125_v21   ;;  %vm1103_vm9 = vcmp.eq.s32.totalorder %v4221_v57, 0  ;;  %v334_v27 = vlaneseq  ;;  %vm1277_vm10 = vcmp.eq.s32.totalorder %v4101_v14, 3  ;;  %vm6841_vm12 = vcmask 130048  }
  0x2a   : > { %vm1282_vm13 = vcmp.eq.s32.totalorder %v4152_v31, 3  ;;  %vm1336_vm15 = vcmp.eq.s32.totalorder %v4101_v14, 4  ;;  %vm1395_vm5 = vcmp.eq.s32.totalorder %v4101_v14, 5 }
  0x2b   : > { %346 = vperm.xlu2 %3792, %v321_v33   ;;  %v1283_v33 = vsel %vm1277_vm10, 1, %v6754_v15 }
  0x2d   : > { %3652 = vmatmul.msk.f32.gmra.mxu1 %vm448_vm3, %v314_v10  ;;  %v1402_v10 = vsel %vm1396_vm14, 1, %v6754_v15 }
  0x31   : > { %349 = vperm.xlu1 %3791, %v322_v26   ;;  %v1228_v26 = vsel %vm1222_vm8, 1, %v6754_v15  ;;  %vm1459_vm8 = vcmp.eq.s32.totalorder %v4152_v31, 6 }
  0x33   : > { %385 = vperm.xlu2 %3792, %v4172_v37  }
  0x35   : > { %3653 = vmatmul.msk.f32.gmra.mxu1 %vm448_vm3, %v315_v11  ;;  %vm1278_vm3 = vcmp.eq.s32.totalorder %v4130_v22, 3 }
  0x36   : > { %v1284_v63 = vsel %vm1278_vm3, 1, %v6754_v15  ;;  %vm1397_vm3 = vcmp.eq.s32.totalorder %v4125_v21, 5 }
  0x37   : > { %v1403_v18 = vsel %vm1397_vm3, 1, %v6754_v15  ;;  %vm1341_vm3 = vcmp.eq.s32.totalorder %v4152_v31, 4 }
  0x39   : > { %388 = vperm.xlu1 %3791, %v4152_v31  }
  0x3b   : > { %1116 = vperm.xlu2 %3792, %v1107_v43   ;;  %v1342_v43 = vsel %vm1336_vm15, 1, %v6754_v15 }
  0x41   : > { %1113 = vperm.xlu1 %3791, %v1106_v36  }
  0x43   : > { %1175 = vperm.xlu2 %3792, %v1166_v49  }
  0x49   : > { %1128 = vperm.xlu1 %3791, %v1111_v40   ;;  %v1288_v40 = vsel %vm1282_vm13, 1, %v6754_v15 }
  0x4b   : > { %1231 = vperm.xlu2 %3792, %v1224_v53  }
  0x51   : > { %1184 = vperm.xlu1 %3791, %v1169_v47   ;;  %v1347_v47 = vsel %vm1341_vm3, 1, %v6754_v15 }
  0x53   : > { %1246 = vperm.xlu2 %3792, %v1229_v58  }
  0x59   : > { %1234 = vperm.xlu1 %3791, %v1225_v52  }
  0x5b   : > { %1178 = vperm.xlu2 %3792, %v1167_v61  }
  0x61   : > { %1119 = vperm.xlu1 %3791, %v1108_v55  }
  0x63   : > { %1293 = vperm.xlu2 %3792, %v1284_v63  }
  0x69   : > { %1181 = vperm.xlu1 %3791, %v1168_v60   ;;  %v1465_v60 = vsel %vm1459_vm8, 1, %v6754_v15  ;;  %vm1398_vm8 = vcmp.eq.s32.totalorder %v4221_v57, 5 }
  0x6b   : > { %1237 = vperm.xlu2 %3792, %v1226_v5  }
  0x71   : > { %1302 = vperm.xlu1 %3791, %v1287_v62  }
  0x73   : > { %1352 = vperm.xlu2 %3792, %v1343_v7  }
  0x79   : > { %1240 = vperm.xlu1 %3791, %v1227_v0  }
  0x7b   : > { %1296 = vperm.xlu2 %3792, %v1285_v9  }
  0x81   : > { %1361 = vperm.xlu1 %3791, %v1346_v1  }
  0x83   : > { %1411 = vperm.xlu2 %3792, %v1402_v10  }
  0x89   : > { %1299 = vperm.xlu1 %3791, %v1286_v2  }
  0x8b   : > { %1355 = vperm.xlu2 %3792, %v1344_v12  }
  0x91   : > { %1420 = vperm.xlu1 %3791, %v1405_v3  }
  0x93   : > { %1470 = vperm.xlu2 %3792, %v1461_v17  }
  0x99   : > { %1358 = vperm.xlu1 %3791, %v1345_v6  }
  0x9a   : > { %v488_v28 = vpop.f32.mrf.mxu1 }
  0x9b   : > { %v439_v24 = vpop.f32.mrf.mxu0  ;;  %v4163_v34 = vadd.f32 %v3804_v32, %v488_v28  ;;  %1414 = vperm.xlu2 %3792, %v1403_v18   ;;  %v1109_v28 = vsel %vm1103_vm9, 1, %v6754_v15 }
  0x9c   : > { %v4137_v25 = vadd.f32 %v3803_v23, %v439_v24  ;;  %v1170_v24 = vsel %vm1164_vm7, 1, %v6754_v15  ;;  %vm1454_vm7 = vcmp.eq.s32.totalorder %v4101_v14, 6 }
  0x9d   : > { %7034 = vst [vmem:[#allocation7_spill] sm:$0xff] %v4163_v34  ;;  %v1460_v53 = vsel %vm1454_vm7, 1, %v6754_v15 }
  0x9e   : > { %7032 = vst [vmem:[#allocation5_spill] sm:$0xff] %v4137_v25  ;;  %3656 = vmatmul.msk.f32.vlgmr.msrb.gmra.mxu2 %vm510_vm4, %v4137_v25 }
  0x9f   : > { %2204 = vmatpush.msrb.mxu2 %v2191_v41 }
  0xa1   : > { %2205 = vmatpush.msrb.mxu2 %v2190_v42  ;;  %1479 = vperm.xlu1 %3791, %v1464_v8  }
  0xa2   : > { %v491_v35 = vpop.f32.mrf.mxu1  ;;  %v500_v51 = vpop.f32.mrf.mxu2 }
  0xa3   : > { %v442_v29 = vpop.f32.mrf.mxu0  ;;  %v4175_v38 = vadd.f32 %v3804_v32, %v491_v35  ;;  %2206 = vmatpush.msrb.mxu2 %v2189_v44  ;;  %v4211_v54 = vadd.f32 %v3804_v32, %v500_v51  ;;  %v3963_v35 = vmov 0.0   ;;  %v338_v51 = vpop.permute.xlu0 %337 }
  0xa4   : > { %v4147_v30 = vadd.f32 %v3803_v23, %v442_v29  ;;  %v1165_v23 = vsel %vm1159_vm6, 1, %v6754_v15  ;;  %v4292_v29 = vand.u32 127, %v334_v27  ;;  %vm1400_vm6 = vcmp.eq.s32.totalorder %v4152_v31, 5 }
  0xa5   : > { %7035 = vst [vmem:[#allocation8_spill] sm:$0xff] %v4175_v38  ;;  %2207 = vmatpush.msrb.mxu2 %v2188_v46  ;;  %v1406_v49 = vsel %vm1400_vm6, 1, %v6754_v15  ;;  %vm1513_vm6 = vcmp.eq.s32.totalorder %v4101_v14, 7 }
  0xa6   : > { %7033 = vst [vmem:[#allocation6_spill] sm:$0xff] %v4147_v30  ;;  %3657 = vmatmul.msk.f32.gmra.mxu2 %vm510_vm4, %v4147_v30  ;;  %vm354_vm9 = vcmp.eq.s32.totalorder %v338_v51, %v4292_v29 }
  0xa7   : > { %7038 = vst [vmem:[#allocation11_spill] sm:$0xff] %v4211_v54  ;;  %v4330_v62 = vsel %vm354_vm9, 1.0, %v3963_v35  ;;  %vm1514_vm9 = vcmp.eq.s32.totalorder %v4130_v22, 7 }
  0xa8   : > { %7043 = vst [vmem:[#allocation16_spill] sm:$0xff] %v4330_v62 }
  0xaa   : > { %v494_v39 = vpop.f32.mrf.mxu1  ;;  %v503_v56 = vpop.f32.mrf.mxu2 }
  0xab   : > { %v4192_v45 = vadd.f32 %v3804_v32, %v494_v39  ;;  %v4224_v59 = vadd.f32 %v3804_v32, %v503_v56  ;;  %v377_v39 = vpop.permute.xlu2 %376 }
  0xac   : > { %vm391_vm14 = vcmp.eq.s32.totalorder %v377_v39, %v4292_v29 }
  0xad   : > { %7036 = vst [vmem:[#allocation9_spill] sm:$0xff] %v4192_v45  ;;  %v4306_v42 = vsel %vm391_vm14, 1.0, %v3963_v35 }
  0xae   : > { %3670 = vmatmul.msk.f32.vlgmr.msra.gmra.mxu2 %vm510_vm4, %v4163_v34  ;;  %7039 = vst [vmem:[#allocation12_spill] sm:$0xff] %v4224_v59 }
  0xaf   : > { %7041 = vst [vmem:[#allocation14_spill] sm:$0xff] %v4306_v42 }
  0xb2   : > { %v497_v48 = vpop.f32.mrf.mxu1 }
  0xb3   : > { %v4203_v50 = vadd.f32 %v3804_v32, %v497_v48  ;;  %v374_v32 = vpop.permute.xlu1 %373  ;;  %v1401_v48 = vsel %vm1395_vm5, 1, %v6754_v15  ;;  %v344_v52 = vpop.permute.xlu2 %343 }
  0xb4   : > { %vm390_vm11 = vcmp.eq.s32.totalorder %v374_v32, %v4292_v29  ;;  %vm356_vm14 = vcmp.eq.s32.totalorder %v344_v52, %v4292_v29 }
  0xb5   : > { %7037 = vst [vmem:[#allocation10_spill] sm:$0xff] %v4203_v50  ;;  %v4298_v36 = vsel %vm390_vm11, 1.0, %v3963_v35  ;;  %v4354_v5 = vsel %vm356_vm14, 1.0, %v3963_v35  ;;  %vm1515_vm14 = vcmp.eq.s32.totalorder %v4125_v21, 7 }
  0xb6   : > { %3671 = vmatmul.msk.f32.gmra.mxu2 %vm510_vm4, %v4175_v38  ;;  %7040 = vst [vmem:[#allocation13_spill] sm:$0xff] %v4298_v36 }
  0xb7   : > { %7047 = vst [vmem:[#allocation20_spill] sm:$0xff] %v4354_v5 }
  0xbb   : > { %v341_v41 = vpop.permute.xlu1 %340  ;;  %v347_v61 = vpop.permute.xlu2 %346 }
  0xbc   : > { %vm355_vm11 = vcmp.eq.s32.totalorder %v341_v41, %v4292_v29 }
  0xbd   : > { %v4342_v2 = vsel %vm355_vm11, 1.0, %v3963_v35  ;;  %vm1517_vm11 = vcmp.eq.s32.totalorder %v4172_v37, 7 }
  0xbe   : > { %3672 = vmatmul.msk.f32.gmra.mxu2 %vm510_vm4, %v4192_v45  ;;  %7045 = vst [vmem:[#allocation18_spill] sm:$0xff] %v4342_v2 }
  0xc3   : > { %v380_v44 = vpop.permute.xlu1 %379  ;;  %v386_v3 = vpop.permute.xlu2 %385 }
  0xc4   : > { %vm392_vm2 = vcmp.eq.s32.totalorder %v380_v44, %v4292_v29  ;;  %vm394_vm13 = vcmp.eq.s32.totalorder %v386_v3, %v4292_v29 }
  0xc5   : > { %v4315_v46 = vsel %vm392_vm2, 1.0, %v3963_v35  ;;  %v4349_v4 = vsel %vm394_vm13, 1.0, %v3963_v35  ;;  %vm357_vm2 = vcmp.eq.s32.totalorder %v347_v61, %v4292_v29  ;;  %vm1456_vm13 = vcmp.eq.s32.totalorder %v4125_v21, 6 }
  0xc6   : > { %3673 = vmatmul.msk.f32.gmra.mxu2 %vm510_vm4, %v4203_v50  ;;  %7042 = vst [vmem:[#allocation15_spill] sm:$0xff] %v4315_v46  ;;  %v4366_v8 = vsel %vm357_vm2, 1.0, %v3963_v35  ;;  %vm1516_vm2 = vcmp.eq.s32.totalorder %v4221_v57, 7 }
  0xc7   : > { %7046 = vst [vmem:[#allocation19_spill] sm:$0xff] %v4349_v4 }
  0xc8   : > { %7049 = vst [vmem:[#allocation22_spill] sm:$0xff] %v4366_v8 }
  0xcb   : > { %v350_v1 = vpop.permute.xlu1 %349 }
  0xcc   : > { %vm358_vm3 = vcmp.eq.s32.totalorder %v350_v1, %v4292_v29 }
  0xcd   : > { %v4372_v9 = vsel %vm358_vm3, 1.0, %v3963_v35  ;;  %vm1573_vm3 = vcmp.eq.s32.totalorder %v4130_v22, 8 }
  0xce   : > { %3674 = vmatmul.msk.f32.gmra.mxu2 %vm510_vm4, %v4211_v54  ;;  %7050 = vst [vmem:[#allocation23_spill] sm:$0xff] %v4372_v9 }
  0xd3   : > { %v389_v6 = vpop.permute.xlu1 %388 }
  0xd4   : > { %vm395_vm15 = vcmp.eq.s32.totalorder %v389_v6, %v4292_v29 }
  0xd5   : > { %v4361_v7 = vsel %vm395_vm15, 1.0, %v3963_v35  ;;  %vm1457_vm15 = vcmp.eq.s32.totalorder %v4221_v57, 6 }
  0xd6   : > { %3675 = vmatmul.msk.f32.gmra.mxu2 %vm510_vm4, %v4224_v59  ;;  %7048 = vst [vmem:[#allocation21_spill] sm:$0xff] %v4361_v7 }
  0xdb   : > { %v4395_v39 = vpop.permute.xlu1 %1113 }
  0xdc   : > { %7055 = vst [vmem:[#allocation28_spill] sm:$0xff] %v4395_v39 }
  0xde   : > { %3696 = vmatmul.msk.f32.vlgmr.msrb.gmra.mxu2 %vm510_vm4, %v4163_v34 }
  0xe6   : > { %3697 = vmatmul.msk.f32.gmra.mxu2 %vm510_vm4, %v4175_v38 }
  0xee   : > { %3698 = vmatmul.msk.f32.gmra.mxu2 %vm510_vm4, %v4192_v45 }
  0xf6   : > { %3699 = vmatmul.msk.f32.gmra.mxu2 %vm510_vm4, %v4203_v50 }
  0xfe   : > { %3700 = vmatmul.msk.f32.gmra.mxu2 %vm510_vm4, %v4211_v54 }
 0x106   : > { %3701 = vmatmul.msk.f32.gmra.mxu2 %vm510_vm4, %v4224_v59 }
 0x121   : > { %v534_v11 = vpop.f32.mrf.mxu2 }
 0x129   : > { %v537_v13 = vpop.f32.mrf.mxu2 }
 0x12a   : > { %v3793_v16 = vpack.i.bf16 %v534_v11, %v537_v13  ;;  %634 = vmatpush.msrb.mxu0 %v537_v13 }
 0x12c   : > { %3794 = vrot.lane.b32.xlu0 %v3793_v16, %s3962_s14  ;;  %635 = vmatpush.msrb.mxu0 %v534_v11  ;;  %v4382_v16 = vpop.permute.xlu2 %1116 }
 0x12d   : > { %3664 = vmatmul.msk.f32.vlgmr.msrb.gmra.mxu0 %vm6841_vm12, %v4298_v36  ;;  %7052 = vst [vmem:[#allocation25_spill] sm:$0xff] %v4382_v16 }
 0x131   : > { %v694_v13 = vpop.f32.mrf.mxu2 }
 0x134   : > { %382 = vperm.xlu0 %3790, %v4221_v57   ;;  %v4389_v27 = vpop.permute.xlu2 %1175 }
 0x135   : > { %3665 = vmatmul.msk.f32.gmra.mxu0 %vm6841_vm12, %v4306_v42  ;;  %7054 = vst [vmem:[#allocation27_spill] sm:$0xff] %v4389_v27 }
 0x13c   : > { %352 = vperm.xlu0 %3790, %v323_v19  }
 0x13d   : > { %3666 = vmatmul.msk.f32.gmra.mxu0 %vm6841_vm12, %v4315_v46 }
 0x144   : > { %1125 = vperm.xlu0 %3790, %v1110_v20   ;;  %v3805_v20 = vld [vmem:[%s6751_s5 + $0x172] ss:$0 sm:$0xff] }
 0x14c   : > { %1172 = vperm.xlu0 %3790, %v1165_v23   ;;  %v697_v23 = vpop.f32.mrf.mxu2 }
 0x154   : > { %1187 = vperm.xlu0 %3790, %v1170_v24   ;;  %v700_v41 = vpop.f32.mrf.mxu2 }
 0x15c   : > { %1243 = vperm.xlu0 %3790, %v1228_v26  }
 0x164   : > { %1122 = vperm.xlu0 %3790, %v1109_v28  }
 0x16c   : > { %1290 = vperm.xlu0 %3790, %v1283_v33  }
 0x174   : > { %1305 = vperm.xlu0 %3790, %v1288_v40  }
 0x17c   : > { %1349 = vperm.xlu0 %3790, %v1342_v43  }
 0x184   : > { %1364 = vperm.xlu0 %3790, %v1347_v47   ;;  %v4401_v47 = vpop.permute.xlu2 %1231 }
 0x185   : > { %7057 = vst [vmem:[#allocation30_spill] sm:$0xff] %v4401_v47 }
 0x18c   : > { %1408 = vperm.xlu0 %3790, %v1401_v48   ;;  %v4413_v1 = vpop.permute.xlu2 %1246 }
 0x18d   : > { %7060 = vst [vmem:[#allocation33_spill] sm:$0xff] %v4413_v1 }
 0x194   : > { %1423 = vperm.xlu0 %3790, %v1406_v49  }
 0x19c   : > { %1467 = vperm.xlu0 %3790, %v1460_v53  }
 0x19e   : > { %v3795_v55 = vpop.permute.xlu0 %3794 }
 0x19f   : > { %v3796_v56 = vunpack.i.l.bf16 %v3795_v55  ;;  %v3797_v58 = vunpack.i.h.bf16 %v3795_v55  ;;  %v4405_v55 = vpop.permute.xlu1 %1128 }
 0x1a0   : > { %7058 = vst [vmem:[#allocation31_spill] sm:$0xff] %v4405_v55 }
 0x1a1   : > { %581 = vmatpush.msra.mxu3 %v3796_v56 }
 0x1a3   : > { %582 = vmatpush.msra.mxu3 %v3797_v58  ;;  %v703_v58 = vpop.f32.mrf.mxu2 }
 0x1a4   : > { %1482 = vperm.xlu0 %3790, %v1465_v60   ;;  %3658 = vmatmul.msk.f32.vlgmr.msra.gmra.mxu3 %vm6841_vm12, %v4330_v62 }
 0x1a6   : > { %v383_v63 = vpop.permute.xlu0 %382 }
 0x1a7   : > { %vm393_vm10 = vcmp.eq.s32.totalorder %v383_v63, %v4292_v29 }
 0x1a8   : > { %v4337_v0 = vsel %vm393_vm10, 1.0, %v3963_v35  ;;  %vm1518_vm10 = vcmp.eq.s32.totalorder %v4152_v31, 7 }
 0x1a9   : > { %7044 = vst [vmem:[#allocation17_spill] sm:$0xff] %v4337_v0  ;;  %3667 = vmatmul.msk.f32.gmra.mxu0 %vm6841_vm12, %v4337_v0 }
 0x1aa   : > { %v637_v12 = vpop.f32.mrf.mxu0 }
 0x1ac   : > { %3659 = vmatmul.msk.f32.gmra.mxu3 %vm6841_vm12, %v4342_v2 }
 0x1ae   : > { %v353_v10 = vpop.permute.xlu0 %352 }
 0x1af   : > { %vm359_vm5 = vcmp.eq.s32.totalorder %v353_v10, %v4292_v29 }
 0x1b0   : > { %v4378_v11 = vsel %vm359_vm5, 1.0, %v3963_v35  ;;  %vm1572_vm5 = vcmp.eq.s32.totalorder %v4101_v14, 8 }
 0x1b1   : > { %3668 = vmatmul.msk.f32.gmra.mxu0 %vm6841_vm12, %v4349_v4  ;;  %7051 = vst [vmem:[#allocation24_spill] sm:$0xff] %v4378_v11 }
 0x1b2   : > { %v640_v17 = vpop.f32.mrf.mxu0 }
 0x1b4   : > { %3660 = vmatmul.msk.f32.gmra.mxu3 %vm6841_vm12, %v4354_v5 }
 0x1b6   : > { %v4387_v24 = vpop.permute.xlu0 %1125 }
 0x1b7   : > { %7053 = vst [vmem:[#allocation26_spill] sm:$0xff] %v4387_v24 }
 0x1b9   : > { %3669 = vmatmul.msk.f32.gmra.mxu0 %vm6841_vm12, %v4361_v7 }
 0x1ba   : > { %v643_v35 = vpop.f32.mrf.mxu0 }
 0x1bc   : > { %3661 = vmatmul.msk.f32.gmra.mxu3 %vm6841_vm12, %v4366_v8 }
 0x1be   : > { %v4397_v43 = vpop.permute.xlu0 %1172 }
 0x1bf   : > { %7056 = vst [vmem:[#allocation29_spill] sm:$0xff] %v4397_v43 }
 0x1c4   : > { %3662 = vmatmul.msk.f32.gmra.mxu3 %vm6841_vm12, %v4372_v9 }
 0x1c6   : > { %v4409_v60 = vpop.permute.xlu0 %1187 }
 0x1c7   : > { %7059 = vst [vmem:[#allocation32_spill] sm:$0xff] %v4409_v60 }
 0x1cc   : > { %3663 = vmatmul.msk.f32.gmra.mxu3 %vm6841_vm12, %v4378_v11 }
 0x226   : > { %v646_v53 = vpop.f32.mrf.mxu0 }
 0x227   : > { %v584_v18 = vpop.f32.mrf.mxu3 }
 0x228   : > { %v638_v19 = vadd.f32 %v637_v12, %v584_v18  ;;  %v706_v18 = vpop.f32.mrf.mxu2 }
 0x22a   : > { %v712_v26 = vadd.f32 %v694_v13, %v638_v19  ;;  %v4417_v13 = vpop.permute.xlu1 %1184 }
 0x22b   : > { %7061 = vst [vmem:[#allocation34_spill] sm:$0xff] %v4417_v13 }
 0x22c   : > { %v4391_v28 = vadd.f32 %v3805_v20, %v712_v26 }
 0x22e   : > { %v728_v29 = vsel %vm510_vm4, %v4391_v28, 0.0  ;;  %v649_v12 = vpop.f32.mrf.mxu0 }
 0x22f   : > { %v587_v32 = vpop.f32.mrf.mxu3  ;;  %729 = vadd.xlane.f32.xlu2 %v728_v29  ;;  %v4423_v29 = vpop.permute.xlu2 %1178 }
 0x230   : > { %v641_v33 = vadd.f32 %v640_v17, %v587_v32  ;;  %7063 = vst [vmem:[#allocation36_spill] sm:$0xff] %v4423_v29 }
 0x232   : > { %v713_v40 = vadd.f32 %v697_v23, %v641_v33  ;;  %v4421_v23 = vpop.permute.xlu0 %1243 }
 0x233   : > { %7062 = vst [vmem:[#allocation35_spill] sm:$0xff] %v4421_v23 }
 0x234   : > { %v4399_v44 = vadd.f32 %v3805_v20, %v713_v40 }
 0x236   : > { %v731_v48 = vsel %vm510_vm4, %v4399_v44, 0.0  ;;  %v652_v40 = vpop.f32.mrf.mxu0 }
 0x237   : > { %v590_v49 = vpop.f32.mrf.mxu3  ;;  %732 = vadd.xlane.f32.xlu0 %v731_v48  ;;  %v4429_v48 = vpop.permute.xlu1 %1234 }
 0x238   : > { %v644_v51 = vadd.f32 %v643_v35, %v590_v49  ;;  %7064 = vst [vmem:[#allocation37_spill] sm:$0xff] %v4429_v48 }
 0x23a   : > { %v714_v52 = vadd.f32 %v700_v41, %v644_v51  ;;  %v709_v51 = vpop.f32.mrf.mxu2 }
 0x23c   : > { %v4407_v56 = vadd.f32 %v3805_v20, %v714_v52  ;;  %v4431_v52 = vpop.permute.xlu0 %1122 }
 0x23d   : > { %7065 = vst [vmem:[#allocation38_spill] sm:$0xff] %v4431_v52 }
 0x23e   : > { %v734_v61 = vsel %vm510_vm4, %v4407_v56, 0.0 }
 0x23f   : > { %v593_v63 = vpop.f32.mrf.mxu3  ;;  %735 = vadd.xlane.f32.xlu1 %v734_v61 }
 0x240   : > { %v647_v3 = vadd.f32 %v646_v53, %v593_v63 }
 0x242   : > { %v715_v6 = vadd.f32 %v703_v58, %v647_v3  ;;  %v4433_v58 = vpop.permute.xlu2 %1293  ;;  %v4439_v3 = vpop.permute.xlu1 %1119 }
 0x243   : > { %7066 = vst [vmem:[#allocation39_spill] sm:$0xff] %v4433_v58 }
 0x244   : > { %v4415_v10 = vadd.f32 %v3805_v20, %v715_v6  ;;  %7067 = vst [vmem:[#allocation40_spill] sm:$0xff] %v4439_v3  ;;  %v4441_v6 = vpop.permute.xlu0 %1290 }
 0x245   : > { %7068 = vst [vmem:[#allocation41_spill] sm:$0xff] %v4441_v6 }
 0x246   : > { %v737_v17 = vsel %vm510_vm4, %v4415_v10, 0.0 }
 0x247   : > { %v596_v19 = vpop.f32.mrf.mxu3  ;;  %738 = vadd.xlane.f32.xlu2 %v737_v17 }
 0x248   : > { %v650_v26 = vadd.f32 %v649_v12, %v596_v19 }
 0x24a   : > { %v716_v32 = vadd.f32 %v706_v18, %v650_v26  ;;  %v4443_v12 = vpop.permute.xlu2 %1237  ;;  %v4445_v17 = vpop.permute.xlu1 %1181 }
 0x24b   : > { %7069 = vst [vmem:[#allocation42_spill] sm:$0xff] %v4443_v12 }
 0x24c   : > { %v4425_v33 = vadd.f32 %v3805_v20, %v716_v32  ;;  %7070 = vst [vmem:[#allocation43_spill] sm:$0xff] %v4445_v17  ;;  %v4448_v18 = vpop.permute.xlu0 %1305 }
 0x24d   : > { %7071 = vst [vmem:[#allocation44_spill] sm:$0xff] %v4448_v18 }
 0x24e   : > { %v740_v35 = vsel %vm510_vm4, %v4425_v33, 0.0 }
 0x24f   : > { %v599_v41 = vpop.f32.mrf.mxu3  ;;  %741 = vadd.xlane.f32.xlu2 %v740_v35 }
 0x250   : > { %v653_v49 = vadd.f32 %v652_v40, %v599_v41 }
 0x252   : > { %v717_v53 = vadd.f32 %v709_v51, %v653_v49  ;;  %v4450_v19 = vpop.permute.xlu2 %1352  ;;  %v4453_v26 = vpop.permute.xlu1 %1302 }
 0x253   : > { %7072 = vst [vmem:[#allocation45_spill] sm:$0xff] %v4450_v19 }
 0x254   : > { %v4435_v61 = vadd.f32 %v3805_v20, %v717_v53  ;;  %v1519_v20 = vsel %vm1513_vm6, 1, %v6754_v15  ;;  %7073 = vst [vmem:[#allocation46_spill] sm:$0xff] %v4453_v26  ;;  %v4455_v32 = vpop.permute.xlu0 %1349  ;;  %v3964_v15 = vmov 32.0   ;;  %vm1576_vm6 = vcmp.eq.s32.totalorder %v4172_v37, 8 }
 0x255   : > { %7074 = vst [vmem:[#allocation47_spill] sm:$0xff] %v4455_v32  ;;  %3825 = vrcp.f32 %v3964_v15 }
 0x256   : > { %v743_v63 = vsel %vm510_vm4, %v4435_v61, 0.0 }
 0x257   : > { %744 = vadd.xlane.f32.xlu0 %v743_v63 }
 0x25a   : > { %v4457_v35 = vpop.permute.xlu2 %1296  ;;  %v4459_v40 = vpop.permute.xlu1 %1240 }
 0x25b   : > { %7075 = vst [vmem:[#allocation48_spill] sm:$0xff] %v4457_v35  ;;  %v3826_v59 = vpop.eup %3825 }
 0x25c   : > { %7076 = vst [vmem:[#allocation49_spill] sm:$0xff] %v4459_v40  ;;  %v4461_v41 = vpop.permute.xlu0 %1364  ;;  %v747_v45 = vmul.f32 32.0, %v3826_v59  ;;  %vm751_vm7 = vweird.f32 %v3826_v59 }
 0x25d   : > { %7077 = vst [vmem:[#allocation50_spill] sm:$0xff] %v4461_v41 }
 0x25e   : > { %v748_v38 = vsub.f32 1.0, %v747_v45 }
 0x260   : > { %v749_v9 = vmul.f32 %v3826_v59, %v748_v38 }
 0x262   : > { %v4463_v49 = vpop.permute.xlu2 %1411  ;;  %v4465_v51 = vpop.permute.xlu1 %1361  ;;  %v750_v5 = vadd.f32 %v3826_v59, %v749_v9 }
 0x263   : > { %7078 = vst [vmem:[#allocation51_spill] sm:$0xff] %v4463_v49 }
 0x264   : > { %7079 = vst [vmem:[#allocation52_spill] sm:$0xff] %v4465_v51  ;;  %v4467_v53 = vpop.permute.xlu0 %1408  ;;  %v4485_v15 = vsel %vm751_vm7, %v3826_v59, %v750_v5  ;;  %vm1631_vm7 = vcmp.eq.s32.totalorder %v4101_v14, 9 }
 0x265   : > { %7080 = vst [vmem:[#allocation53_spill] sm:$0xff] %v4467_v53 }
 0x266   : > { %7089 = vst [vmem:[#allocation62_spill] sm:$0xff] %v4485_v15 }
 0x26a   : > { %v4469_v63 = vpop.permute.xlu2 %1355 }
 0x26b   : > { %1526 = vperm.xlu0 %3790, %v1519_v20   ;;  %7081 = vst [vmem:[#allocation54_spill] sm:$0xff] %v4469_v63  ;;  %v4471_v20 = vpop.permute.xlu1 %1299 }
 0x26c   : > { %7082 = vst [vmem:[#allocation55_spill] sm:$0xff] %v4471_v20  ;;  %v4473_v54 = vpop.permute.xlu0 %1423 }
 0x26d   : > { %7083 = vst [vmem:[#allocation56_spill] sm:$0xff] %v4473_v54 }
 0x272   : > { %v4475_v50 = vpop.permute.xlu2 %1470 }
 0x273   : > { %7084 = vst [vmem:[#allocation57_spill] sm:$0xff] %v4475_v50  ;;  %v4477_v34 = vpop.permute.xlu1 %1420 }
 0x274   : > { %7085 = vst [vmem:[#allocation58_spill] sm:$0xff] %v4477_v34  ;;  %v4479_v11 = vpop.permute.xlu0 %1467 }
 0x275   : > { %7086 = vst [vmem:[#allocation59_spill] sm:$0xff] %v4479_v11 }
 0x27a   : > { %v4481_v8 = vpop.permute.xlu2 %1414 }
 0x27b   : > { %7087 = vst [vmem:[#allocation60_spill] sm:$0xff] %v4481_v8  ;;  %v4483_v2 = vpop.permute.xlu1 %1358  ;;  %vm6865_vm1 = vcmp.eq.s32.totalorder %v4481_v8, 1 }
 0x27c   : > { %7088 = vst [vmem:[#allocation61_spill] sm:$0xff] %v4483_v2  ;;  %v4487_v62 = vpop.permute.xlu0 %1482 }
 0x27d   : > { %7090 = vst [vmem:[#allocation63_spill] sm:$0xff] %v4487_v62 }
 0x283   : > { %v4496_v46 = vpop.permute.xlu1 %1479 }
 0x284   : > { %7091 = vst [vmem:[#allocation64_spill] sm:$0xff] %v4496_v46 }
 0x2a2   : > { %v730_v7 = vpop.xlane.xlu2 %729 }
 0x2a3   : > { %v753_v4 = vmul.f32 %v4485_v15, %v730_v7 }
 0x2a5   : > { %v4491_v45 = vsub.f32 %v4391_v28, %v753_v4 }
 0x2a7   : > { %v765_v0 = vmul.f32 %v4491_v45, %v4491_v45 }
 0x2a9   : > { %v771_v38 = vsel %vm510_vm4, %v765_v0, 0.0 }
 0x2aa   : > { %v733_v9 = vpop.xlane.xlu0 %732  ;;  %772 = vadd.xlane.f32.xlu1 %v771_v38 }
 0x2ab   : > { %v754_v59 = vmul.f32 %v4485_v15, %v733_v9 }
 0x2ad   : > { %v4500_v5 = vsub.f32 %v4399_v44, %v754_v59  ;;  %v7092_v44 = vmov 0  }
 0x2ae   : > { %v1404_v59 = vsel %vm1398_vm8, 1, %v7092_v44  ;;  %vm1577_vm8 = vcmp.eq.s32.totalorder %v4152_v31, 8 }
 0x2af   : > { %v766_v7 = vmul.f32 %v4500_v5, %v4500_v5 }
 0x2b1   : > { %v774_v4 = vsel %vm510_vm4, %v766_v7, 0.0  ;;  %v1520_v7 = vsel %vm1514_vm9, 1, %v7092_v44  ;;  %vm1632_vm9 = vcmp.eq.s32.totalorder %v4130_v22, 9 }
 0x2b2   : > { %v736_v28 = vpop.xlane.xlu1 %735  ;;  %775 = vadd.xlane.f32.xlu2 %v774_v4 }
 0x2b3   : > { %v755_v42 = vmul.f32 %v4485_v15, %v736_v28 }
 0x2b5   : > { %v4507_v0 = vsub.f32 %v4407_v56, %v755_v42  ;;  %v1524_v42 = vsel %vm1518_vm10, 1, %v7092_v44  ;;  %vm1636_vm10 = vcmp.eq.s32.totalorder %v4152_v31, 9 }
 0x2b7   : > { %v767_v38 = vmul.f32 %v4507_v0, %v4507_v0 }
 0x2b9   : > { %v777_v9 = vsel %vm510_vm4, %v767_v38, 0.0 }
 0x2ba   : > { %778 = vadd.xlane.f32.xlu0 %v777_v9  ;;  %v739_v56 = vpop.xlane.xlu2 %738 }
 0x2bb   : > { %v756_v4 = vmul.f32 %v4485_v15, %v739_v56 }
 0x2bd   : > { %v4520_v38 = vsub.f32 %v4415_v10, %v756_v4 }
 0x2bf   : > { %v768_v36 = vmul.f32 %v4520_v38, %v4520_v38 }
 0x2c2   : > { %v742_v28 = vpop.xlane.xlu2 %741 }
 0x2c3   : > { %1417 = vperm.xlu1 %3791, %v1404_v59   ;;  %v757_v9 = vmul.f32 %v4485_v15, %v742_v28 }
 0x2c5   : > { %v4526_v30 = vsub.f32 %v4425_v33, %v757_v9  ;;  %v1521_v9 = vsel %vm1515_vm14, 1, %v7092_v44  ;;  %vm1694_vm14 = vcmp.eq.s32.totalorder %v4172_v37, 10 }
 0x2c6   : > { %v1700_v25 = vsel %vm1694_vm14, 1, %v7092_v44 }
 0x2c7   : > { %v769_v56 = vmul.f32 %v4526_v30, %v4526_v30 }
 0x2c9   : > { %v783_v4 = vsel %vm510_vm4, %v769_v56, 0.0  ;;  %v1578_v56 = vsel %vm1572_vm5, 1, %v7092_v44 }
 0x2ca   : > { %1529 = vperm.xlu2 %3792, %v1520_v7   ;;  %v745_v59 = vpop.xlane.xlu0 %744 }
 0x2cb   : > { %v758_v7 = vmul.f32 %v4485_v15, %v745_v59  ;;  %v1463_v59 = vsel %vm1457_vm15, 1, %v7092_v44  ;;  %vm1691_vm15 = vcmp.eq.s32.totalorder %v4130_v22, 10 }
 0x2cc   : > { %v1697_v46 = vsel %vm1691_vm15, 1, %v7092_v44 }
 0x2cd   : > { %v4533_v10 = vsub.f32 %v4435_v61, %v758_v7  ;;  %v1462_v61 = vsel %vm1456_vm13, 1, %v7092_v44  ;;  %v1522_v7 = vsel %vm1516_vm2, 1, %v7092_v44  ;;  %vm1690_vm13 = vcmp.eq.s32.totalorder %v4101_v14, 10 }
 0x2ce   : > { %1541 = vperm.xlu0 %3790, %v1524_v42   ;;  %v780_v42 = vsel %vm510_vm4, %v768_v36, 0.0  ;;  %v1523_v36 = vsel %vm1517_vm11, 1, %v7092_v44  ;;  %vm1635_vm11 = vcmp.eq.s32.totalorder %v4172_v37, 9  ;;  %vm1695_vm2 = vcmp.eq.s32.totalorder %v4152_v31, 10 }
 0x2cf   : > { %v770_v28 = vmul.f32 %v4533_v10, %v4533_v10  ;;  %v1701_v41 = vsel %vm1695_vm2, 1, %v7092_v44  ;;  %vm1750_vm2 = vcmp.eq.s32.totalorder %v4130_v22, 11 }
 0x2d1   : > { %v786_v33 = vsel %vm510_vm4, %v770_v28, 0.0  ;;  %v889_v28 = vld [vmem:[%s6751_s5 + $0x60] sm:$0xff] }
 0x2ed   : > { %781 = vadd.xlane.f32.xlu1 %v780_v42  ;;  %v1579_v42 = vsel %vm1573_vm3, 1, %v7092_v44  ;;  %vm1575_vm3 = vcmp.eq.s32.totalorder %v4221_v57, 8 }
 0x2f3   : > { %784 = vadd.xlane.f32.xlu2 %v783_v4  ;;  %v890_v4 = vld [vmem:[%s6751_s5 + $0x68] sm:$0xff] }
 0x2f4   : > { %923 = vmatpush.msrb.mxu1 %v890_v4  ;;  %v1638_v4 = vsel %vm1632_vm9, 1, %v7092_v44  ;;  %vm1633_vm9 = vcmp.eq.s32.totalorder %v4125_v21, 9 }
 0x2f6   : > { %924 = vmatpush.msrb.mxu1 %v889_v28  ;;  %v1642_v28 = vsel %vm1636_vm10, 1, %v7092_v44  ;;  %vm1749_vm10 = vcmp.eq.s32.totalorder %v4101_v14, 11 }
 0x2f8   : > { %787 = vadd.xlane.f32.xlu0 %v786_v33  ;;  %v1582_v33 = vsel %vm1576_vm6, 1, %v7092_v44  ;;  %vm1574_vm6 = vcmp.eq.s32.totalorder %v4125_v21, 8 }
 0x306   : > { %1538 = vperm.xlu1 %3791, %v1523_v36   ;;  %v888_v36 = vld [vmem:[%s6751_s5 + $0x58] sm:$0xff] }
 0x307   : > { %925 = vmatpush.msrb.mxu1 %v888_v36  ;;  %v4578_v36 = vpop.permute.xlu0 %1526 }
 0x308   : > { %7093 = vst [vmem:[#allocation65_spill] sm:$0xff] %v4578_v36 }
 0x30b   : > { %1473 = vperm.xlu2 %3792, %v1462_v61   ;;  %v1637_v61 = vsel %vm1631_vm7, 1, %v7092_v44 }
 0x30c   : > { %1532 = vperm.xlu0 %3790, %v1521_v9   ;;  %v887_v9 = vld [vmem:[%s6751_s5 + $0x50] sm:$0xff] }
 0x30d   : > { %926 = vmatpush.msrb.mxu1 %v887_v9 }
 0x30e   : > { %1476 = vperm.xlu1 %3791, %v1463_v59   ;;  %v1583_v59 = vsel %vm1577_vm8, 1, %v7092_v44 }
 0x313   : > { %1535 = vperm.xlu2 %3792, %v1522_v7  }
 0x314   : > { %1588 = vperm.xlu0 %3790, %v1579_v42  }
 0x316   : > { %1585 = vperm.xlu1 %3791, %v1578_v56  }
 0x31b   : > { %1597 = vperm.xlu2 %3792, %v1582_v33   ;;  %v1641_v33 = vsel %vm1635_vm11, 1, %v7092_v44 }
 0x31c   : > { %1644 = vperm.xlu0 %3790, %v1637_v61  }
 0x31d   : > { %v773_v7 = vpop.xlane.xlu1 %772 }
 0x31e   : > { %v789_v42 = vmul.f32 %v773_v7, %v4485_v15  ;;  %1600 = vperm.xlu1 %3791, %v1583_v59  }
 0x320   : > { %v795_v56 = vadd.f32 1e-05, %v789_v42  ;;  %v1696_v42 = vsel %vm1690_vm13, 1, %v7092_v44  ;;  %vm1634_vm13 = vcmp.eq.s32.totalorder %v4221_v57, 9 }
 0x322   : > { %3827 = vrsqrt.f32 %v795_v56  ;;  %vm807_vm7 = vweird.f32 %v795_v56 }
 0x323   : > { %1647 = vperm.xlu2 %3792, %v1638_v4  }
 0x324   : > { %1659 = vperm.xlu0 %3790, %v1642_v28  }
 0x325   : > { %v776_v61 = vpop.xlane.xlu2 %775 }
 0x326   : > { %v790_v9 = vmul.f32 %v776_v61, %v4485_v15  ;;  %1656 = vperm.xlu1 %3791, %v1641_v33  }
 0x328   : > { %v3828_v59 = vpop.eup %3827  ;;  %v796_v7 = vadd.f32 1e-05, %v790_v9 }
 0x329   : > { %v802_v4 = vmul.f32 %v3828_v59, %v795_v56  ;;  %vm808_vm5 = vweird.f32 %v3828_v59  ;;  %v4603_v56 = vld [vmem:[%s6751_s5 + $0x174] ss:$0 sm:$0xff] }
 0x32a   : > { %3829 = vrsqrt.f32 %v796_v7  ;;  %vm809_vm8 = vmor %vm807_vm7, %vm808_vm5  ;;  %vm817_vm14 = vweird.f32 %v796_v7 }
 0x32b   : > { %v803_v28 = vmul.f32 %v3828_v59, %v802_v4  ;;  %1703 = vperm.xlu2 %3792, %v1696_v42   ;;  %v1581_v4 = vsel %vm1575_vm3, 1, %v7092_v44  ;;  %vm1754_vm3 = vcmp.eq.s32.totalorder %v4152_v31, 11 }
 0x32c   : > { %1715 = vperm.xlu0 %3790, %v1700_v25  }
 0x32d   : > { %v804_v62 = vmul.f32 0.5, %v803_v28  ;;  %v779_v61 = vpop.xlane.xlu0 %778 }
 0x32e   : > { %v791_v33 = vmul.f32 %v779_v61, %v4485_v15  ;;  %1706 = vperm.xlu1 %3791, %v1697_v46   ;;  %v4596_v46 = vld [vmem:[%s6751_s5 + $0x173] ss:$0 sm:$0xff]  ;;  %v1580_v61 = vsel %vm1574_vm6, 1, %v7092_v44  ;;  %vm1753_vm6 = vcmp.eq.s32.totalorder %v4172_v37, 11 }
 0x32f   : > { %v805_v9 = vsub.f32 1.5, %v804_v62  ;;  %v1759_v31 = vsel %vm1753_vm6, 1, %v7092_v44 }
 0x330   : > { %v3830_v54 = vpop.eup %3829  ;;  %v797_v34 = vadd.f32 1e-05, %v791_v33 }
 0x331   : > { %v806_v42 = vmul.f32 %v3828_v59, %v805_v9  ;;  %v812_v25 = vmul.f32 %v3830_v54, %v796_v7  ;;  %vm818_vm11 = vweird.f32 %v3830_v54 }
 0x332   : > { %3831 = vrsqrt.f32 %v797_v34  ;;  %vm819_vm15 = vmor %vm817_vm14, %vm818_vm11  ;;  %vm827_vm7 = vweird.f32 %v797_v34  ;;  %vm1693_vm11 = vcmp.eq.s32.totalorder %v4221_v57, 10 }
 0x333   : > { %v810_v62 = vsel %vm809_vm8, %v3828_v59, %v806_v42  ;;  %v813_v28 = vmul.f32 %v3830_v54, %v812_v25  ;;  %1718 = vperm.xlu2 %3792, %v1701_v41   ;;  %v1639_v25 = vsel %vm1633_vm9, 1, %v7092_v44 }
 0x334   : > { %v861_v33 = vmul.f32 %v810_v62, %v4491_v45  ;;  %1594 = vperm.xlu0 %3790, %v1581_v4  }
 0x335   : > { %v814_v9 = vmul.f32 0.5, %v813_v28  ;;  %v1755_v28 = vsel %vm1749_vm10, 1, %v7092_v44 }
 0x336   : > { %1591 = vperm.xlu1 %3791, %v1580_v61   ;;  %v868_v59 = vmul.f32 %v4596_v46, %v861_v33  ;;  %v1640_v33 = vsel %vm1634_vm13, 1, %v7092_v44 }
 0x337   : > { %v815_v42 = vsub.f32 1.5, %v814_v9 }
 0x338   : > { %v3832_v41 = vpop.eup %3831  ;;  %v875_v45 = vadd.f32 %v4603_v56, %v868_v59 }
 0x339   : > { %v816_v4 = vmul.f32 %v3830_v54, %v815_v42  ;;  %v822_v62 = vmul.f32 %v3832_v41, %v797_v34  ;;  %vm828_vm5 = vweird.f32 %v3832_v41  ;;  %v4634_v34 = vld [vmem:[%s6749_s3] sm:$0xff] }
 0x33a   : > { %v881_v21 = vmax.f32 %v875_v45, 0.0  ;;  %vm829_vm8 = vmor %vm827_vm7, %vm828_vm5  ;;  %vm1808_vm10 = vcmp.eq.s32.totalorder %v4634_v34, 12  ;;  %vm1752_vm5 = vcmp.eq.s32.totalorder %v4221_v57, 11 }
 0x33b   : > { %v820_v61 = vsel %vm819_vm15, %v3830_v54, %v816_v4  ;;  %v823_v14 = vmul.f32 %v3832_v41, %v822_v62  ;;  %1650 = vperm.xlu2 %3792, %v1639_v25   ;;  %v1756_v54 = vsel %vm1750_vm2, 1, %v7092_v44 }
 0x33c   : > { %1762 = vperm.xlu0 %3790, %v1755_v28   ;;  %3676 = vmatmul.msk.f32.vlgmr.msrb.gmra.mxu1 %vm510_vm4, %v881_v21  ;;  %v862_v9 = vmul.f32 %v820_v61, %v4500_v5  ;;  %v1760_v5 = vsel %vm1754_vm3, 1, %v7092_v44  ;;  %v4628_v28 = vld [vmem:[%s6749_s3 + $0x10] sm:$0xff]  ;;  %v1814_v21 = vsel %vm1808_vm10, 1, %v7092_v44  ;;  %vm1867_vm3 = vcmp.eq.s32.totalorder %v4634_v34, 13 }
 0x33d   : > { %v824_v59 = vmul.f32 0.5, %v823_v14  ;;  %vm1692_vm9 = vcmp.eq.s32.totalorder %v4628_v28, 10  ;;  %v1699_v14 = vsel %vm1693_vm11, 1, %v7092_v44  ;;  %vm1751_vm2 = vcmp.eq.s32.totalorder %v4628_v28, 11 }
 0x33e   : > { %1653 = vperm.xlu1 %3791, %v1640_v33   ;;  %v869_v7 = vmul.f32 %v4596_v46, %v862_v9  ;;  %v4647_v33 = vld [vmem:[%s6749_s3 + $0x8] sm:$0xff]  ;;  %vm1926_vm10 = vcmp.eq.s32.totalorder %v4634_v34, 14  ;;  %vm1811_vm11 = vcmp.eq.s32.totalorder %v4221_v57, 12 }
 0x33f   : > { %v825_v42 = vsub.f32 1.5, %v824_v59  ;;  %vm1809_vm13 = vcmp.eq.s32.totalorder %v4647_v33, 12  ;;  %v4653_v9 = vld [vmem:[%s6749_s3 + $0x28] sm:$0xff]  ;;  %vm1868_vm6 = vcmp.eq.s32.totalorder %v4647_v33, 13 }
 0x340   : > { %v876_v25 = vadd.f32 %v4603_v56, %v869_v7  ;;  %vm1813_vm14 = vcmp.eq.s32.totalorder %v4653_v9, 12  ;;  %v1815_v59 = vsel %vm1809_vm13, 1, %v7092_v44  ;;  %v4660_v7 = vld [vmem:[%s6749_s3 + $0x20] sm:$0xff]  ;;  %vm1872_vm7 = vcmp.eq.s32.totalorder %v4653_v9, 13 }
 0x341   : > { %v826_v45 = vmul.f32 %v3832_v41, %v825_v42  ;;  %vm1812_vm15 = vcmp.eq.s32.totalorder %v4660_v7, 12  ;;  %v1819_v42 = vsel %vm1813_vm14, 1, %v7092_v44  ;;  %vm1927_vm13 = vcmp.eq.s32.totalorder %v4647_v33, 14 }
 0x342   : > { %v882_v4 = vmax.f32 %v876_v25, 0.0  ;;  %v4667_v25 = vpop.permute.xlu1 %1417  ;;  %vm1931_vm14 = vcmp.eq.s32.totalorder %v4653_v9, 14 }
 0x343   : > { %v830_v22 = vsel %vm829_vm8, %v3832_v41, %v826_v45  ;;  %1765 = vperm.xlu2 %3792, %v1756_v54   ;;  %v1698_v41 = vsel %vm1692_vm9, 1, %v7092_v44  ;;  %v1818_v54 = vsel %vm1812_vm15, 1, %v7092_v44  ;;  %7094 = vst [vmem:[#allocation66_spill] sm:$0xff] %v4667_v25  ;;  %v1757_v45 = vsel %vm1751_vm2, 1, %v7092_v44 }
 0x344   : > { %1777 = vperm.xlu0 %3790, %v1760_v5   ;;  %3677 = vmatmul.msk.f32.gmra.mxu1 %vm510_vm4, %v882_v4  ;;  %v863_v62 = vmul.f32 %v830_v22, %v4507_v0  ;;  %v1873_v5 = vsel %vm1867_vm3, 1, %v7092_v44  ;;  %v1758_v4 = vsel %vm1752_vm5, 1, %v7092_v44  ;;  %v4674_v22 = vpop.permute.xlu2 %1529  ;;  %vm1871_vm8 = vcmp.eq.s32.totalorder %v4660_v7, 13 }
 0x345   : > { %7095 = vst [vmem:[#allocation67_spill] sm:$0xff] %v4674_v22  ;;  %vm1810_vm9 = vcmp.eq.s32.totalorder %v4628_v28, 12  ;;  %vm1930_vm15 = vcmp.eq.s32.totalorder %v4660_v7, 14 }
 0x346   : > { %1774 = vperm.xlu1 %3791, %v1759_v31   ;;  %v870_v37 = vmul.f32 %v4596_v46, %v863_v62  ;;  %v1874_v62 = vsel %vm1868_vm6, 1, %v7092_v44  ;;  %vm1869_vm6 = vcmp.eq.s32.totalorder %v4628_v28, 13 }
 0x348   : > { %v877_v0 = vadd.f32 %v4603_v56, %v870_v37 }
 0x34a   : > { %v883_v61 = vmax.f32 %v877_v0, 0.0  ;;  %v4681_v0 = vpop.permute.xlu0 %1541 }
 0x34b   : > { %1709 = vperm.xlu2 %3792, %v1698_v41   ;;  %v1878_v41 = vsel %vm1872_vm7, 1, %v7092_v44  ;;  %7096 = vst [vmem:[#allocation68_spill] sm:$0xff] %v4681_v0 }
 0x34c   : > { %1821 = vperm.xlu0 %3790, %v1814_v21   ;;  %3678 = vmatmul.msk.f32.gmra.mxu1 %vm510_vm4, %v883_v61  ;;  %v1877_v61 = vsel %vm1871_vm8, 1, %v7092_v44 }
 0x34e   : > { %1712 = vperm.xlu1 %3791, %v1699_v14  }
 0x353   : > { %1824 = vperm.xlu2 %3792, %v1815_v59  }
 0x354   : > { %1836 = vperm.xlu0 %3790, %v1819_v42   ;;  %v1816_v42 = vsel %vm1810_vm9, 1, %v7092_v44 }
 0x356   : > { %1833 = vperm.xlu1 %3791, %v1818_v54  }
 0x35b   : > { %1768 = vperm.xlu2 %3792, %v1757_v45   ;;  %v1932_v45 = vsel %vm1926_vm10, 1, %v7092_v44 }
 0x35c   : > { %1880 = vperm.xlu0 %3790, %v1873_v5  }
 0x35e   : > { %1771 = vperm.xlu1 %3791, %v1758_v4  }
 0x360   : > { %v782_v31 = vpop.xlane.xlu1 %781 }
 0x361   : > { %v792_v37 = vmul.f32 %v782_v31, %v4485_v15  ;;  %v1817_v31 = vsel %vm1811_vm11, 1, %v7092_v44 }
 0x363   : > { %v798_v21 = vadd.f32 1e-05, %v792_v37  ;;  %1883 = vperm.xlu2 %3792, %v1874_v62  }
 0x364   : > { %1895 = vperm.xlu0 %3790, %v1878_v41  }
 0x365   : > { %3833 = vrsqrt.f32 %v798_v21  ;;  %vm837_vm3 = vweird.f32 %v798_v21 }
 0x366   : > { %1892 = vperm.xlu1 %3791, %v1877_v61   ;;  %v785_v14 = vpop.xlane.xlu2 %784 }
 0x367   : > { %v793_v59 = vmul.f32 %v785_v14, %v4485_v15  ;;  %v1933_v14 = vsel %vm1927_vm13, 1, %v7092_v44 }
 0x369   : > { %v799_v54 = vadd.f32 1e-05, %v793_v59 }
 0x36b   : > { %v3834_v5 = vpop.eup %3833  ;;  %3835 = vrsqrt.f32 %v799_v54  ;;  %v788_v4 = vpop.xlane.xlu0 %787  ;;  %1827 = vperm.xlu2 %3792, %v1816_v42   ;;  %v1937_v42 = vsel %vm1931_vm14, 1, %v7092_v44  ;;  %vm847_vm8 = vweird.f32 %v799_v54  ;;  %vm1986_vm14 = vcmp.eq.s32.totalorder %v4647_v33, 15 }
 0x36c   : > { %v832_v62 = vmul.f32 %v3834_v5, %v798_v21  ;;  %v794_v37 = vmul.f32 %v788_v4, %v4485_v15  ;;  %1939 = vperm.xlu0 %3790, %v1932_v45   ;;  %vm838_vm2 = vweird.f32 %v3834_v5  ;;  %v1936_v45 = vsel %vm1930_vm15, 1, %v7092_v44 }
 0x36d   : > { %vm839_vm5 = vmor %vm837_vm3, %vm838_vm2  ;;  %vm1985_vm15 = vcmp.eq.s32.totalorder %v4634_v34, 15  ;;  %vm1928_vm3 = vcmp.eq.s32.totalorder %v4628_v28, 14 }
 0x36e   : > { %v833_v41 = vmul.f32 %v3834_v5, %v832_v62  ;;  %v800_v61 = vadd.f32 1e-05, %v794_v37  ;;  %1830 = vperm.xlu1 %3791, %v1817_v31   ;;  %v1991_v23 = vsel %vm1985_vm15, 1, %v7092_v44 }
 0x370   : > { %v834_v57 = vmul.f32 0.5, %v833_v41  ;;  %3837 = vrsqrt.f32 %v800_v61  ;;  %vm857_vm11 = vweird.f32 %v800_v61 }
 0x371   : > { %v3836_v59 = vpop.eup %3835 }
 0x372   : > { %v835_v0 = vsub.f32 1.5, %v834_v57  ;;  %v842_v4 = vmul.f32 %v3836_v59, %v799_v54  ;;  %vm848_vm7 = vweird.f32 %v3836_v59 }
 0x373   : > { %1942 = vperm.xlu2 %3792, %v1933_v14   ;;  %v1875_v14 = vsel %vm1869_vm6, 1, %v7092_v44  ;;  %vm849_vm9 = vmor %vm847_vm8, %vm848_vm7  ;;  %vm1990_vm6 = vcmp.eq.s32.totalorder %v4653_v9, 15  ;;  %vm1987_vm7 = vcmp.eq.s32.totalorder %v4628_v28, 15  ;;  %vm1989_vm8 = vcmp.eq.s32.totalorder %v4660_v7, 15  ;;  %v330_v7 = vld [vmem:[%s6750_s4] sm:$0xff] }
 0x374   : > { %v836_v62 = vmul.f32 %v3834_v5, %v835_v0  ;;  %v843_v31 = vmul.f32 %v3836_v59, %v842_v4  ;;  %1954 = vperm.xlu0 %3790, %v1937_v42  }
 0x376   : > { %v3838_v37 = vpop.eup %3837  ;;  %v840_v41 = vsel %vm839_vm5, %v3834_v5, %v836_v62  ;;  %v844_v25 = vmul.f32 0.5, %v843_v31  ;;  %1951 = vperm.xlu1 %3791, %v1936_v45  }
 0x377   : > { %v852_v18 = vmul.f32 %v3838_v37, %v800_v61  ;;  %v864_v1 = vmul.f32 %v840_v41, %v4520_v38  ;;  %vm858_vm10 = vweird.f32 %v3838_v37  ;;  %v4712_v61 = vpop.permute.xlu2 %1473 }
 0x378   : > { %v845_v57 = vsub.f32 1.5, %v844_v25  ;;  %vm859_vm13 = vmor %vm857_vm11, %vm858_vm10  ;;  %7097 = vst [vmem:[#allocation69_spill] sm:$0xff] %v4712_v61  ;;  %vm332_vm11 = vcmp.gt.f32.partialorder %v330_v7, 0.5 }
 0x379   : > { %v853_v60 = vmul.f32 %v3838_v37, %v852_v18  ;;  %v871_v0 = vmul.f32 %v4596_v46, %v864_v1 }
 0x37a   : > { %v846_v21 = vmul.f32 %v3836_v59, %v845_v57 }
 0x37b   : > { %v854_v42 = vmul.f32 0.5, %v853_v60  ;;  %1886 = vperm.xlu2 %3792, %v1875_v14   ;;  %v878_v4 = vadd.f32 %v4603_v56, %v871_v0  ;;  %v4716_v14 = vpop.permute.xlu1 %1538 }
 0x37c   : > { %v850_v5 = vsel %vm849_vm9, %v3836_v59, %v846_v21  ;;  %7099 = vst [vmem:[#allocation71_spill] sm:$0xff] %v4716_v14 }
 0x37d   : > { %v855_v62 = vsub.f32 1.5, %v854_v42  ;;  %v884_v45 = vmax.f32 %v878_v4, 0.0  ;;  %v865_v38 = vmul.f32 %v850_v5, %v4526_v30 }
 0x37f   : > { %v856_v25 = vmul.f32 %v3838_v37, %v855_v62  ;;  %3679 = vmatmul.msk.f32.gmra.mxu1 %vm510_vm4, %v884_v45  ;;  %v872_v18 = vmul.f32 %v4596_v46, %v865_v38  ;;  %v4714_v57 = vpop.permute.xlu2 %1535 }
 0x380   : > { %7098 = vst [vmem:[#allocation70_spill] sm:$0xff] %v4714_v57 }
 0x381   : > { %v860_v1 = vsel %vm859_vm13, %v3838_v37, %v856_v25  ;;  %v879_v54 = vadd.f32 %v4603_v56, %v872_v18 }
 0x382   : > { %v866_v60 = vmul.f32 %v860_v1, %v4533_v10  ;;  %v3808_v10 = vld [vmem:[%s6751_s5 + $0x175] ss:$0 sm:$0xff] }
 0x383   : > { %v885_v31 = vmax.f32 %v879_v54, 0.0 }
 0x384   : > { %v873_v59 = vmul.f32 %v4596_v46, %v866_v60  ;;  %v4723_v46 = vpop.permute.xlu1 %1476 }
 0x385   : > { %7101 = vst [vmem:[#allocation73_spill] sm:$0xff] %v4723_v46 }
 0x386   : > { %v880_v41 = vadd.f32 %v4603_v56, %v873_v59 }
 0x387   : > { %3680 = vmatmul.msk.f32.gmra.mxu1 %vm510_vm4, %v885_v31  ;;  %v4721_v37 = vpop.permute.xlu2 %1597 }
 0x388   : > { %v886_v30 = vmax.f32 %v880_v41, 0.0  ;;  %7100 = vst [vmem:[#allocation72_spill] sm:$0xff] %v4721_v37 }
 0x38c   : > { %v4733_v62 = vpop.permute.xlu1 %1585 }
 0x38d   : > { %7103 = vst [vmem:[#allocation75_spill] sm:$0xff] %v4733_v62 }
 0x38f   : > { %3681 = vmatmul.msk.f32.gmra.mxu1 %vm510_vm4, %v886_v30  ;;  %v4729_v4 = vpop.permute.xlu2 %1647  ;;  %v1992_v30 = vsel %vm1986_vm14, 1, %v7092_v44 }
 0x390   : > { %7102 = vst [vmem:[#allocation74_spill] sm:$0xff] %v4729_v4 }
 0x394   : > { %v4743_v54 = vpop.permute.xlu1 %1600 }
 0x395   : > { %7105 = vst [vmem:[#allocation77_spill] sm:$0xff] %v4743_v54 }
 0x397   : > { %v4739_v18 = vpop.permute.xlu2 %1703 }
 0x398   : > { %7104 = vst [vmem:[#allocation76_spill] sm:$0xff] %v4739_v18 }
 0x39c   : > { %v4747_v31 = vpop.permute.xlu1 %1656 }
 0x39d   : > { %7107 = vst [vmem:[#allocation79_spill] sm:$0xff] %v4747_v31 }
 0x39f   : > { %v4745_v60 = vpop.permute.xlu2 %1718 }
 0x3a0   : > { %7106 = vst [vmem:[#allocation78_spill] sm:$0xff] %v4745_v60 }
 0x3a4   : > { %v4752_v41 = vpop.permute.xlu1 %1706 }
 0x3a5   : > { %7109 = vst [vmem:[#allocation81_spill] sm:$0xff] %v4752_v41 }
 0x3a7   : > { %v4750_v59 = vpop.permute.xlu2 %1650 }
 0x3a8   : > { %7108 = vst [vmem:[#allocation80_spill] sm:$0xff] %v4750_v59 }
 0x3b9   : > { %v928_v0 = vpop.f32.mrf.mxu1 }
 0x3ba   : > { %v4725_v21 = vadd.f32 %v3808_v10, %v928_v0  ;;  %v4755_v0 = vpop.permute.xlu0 %1532 }
 0x3bb   : > { %7110 = vst [vmem:[#allocation82_spill] sm:$0xff] %v4755_v0 }
 0x3bc   : > { %v948_v56 = vsel %vm510_vm4, %v4725_v21, 0.0 }
 0x3bd   : > { %949 = vadd.xlane.f32.xlu1 %v948_v56  ;;  %v4757_v56 = vpop.permute.xlu2 %1765 }
 0x3be   : > { %7111 = vst [vmem:[#allocation83_spill] sm:$0xff] %v4757_v56 }
 0x3c1   : > { %v931_v42 = vpop.f32.mrf.mxu1 }
 0x3c2   : > { %v4731_v5 = vadd.f32 %v3808_v10, %v931_v42  ;;  %v4759_v42 = vpop.permute.xlu1 %1591 }
 0x3c3   : > { %7112 = vst [vmem:[#allocation84_spill] sm:$0xff] %v4759_v42 }
 0x3c4   : > { %v951_v45 = vsel %vm510_vm4, %v4731_v5, 0.0 }
 0x3c5   : > { %952 = vadd.xlane.f32.xlu2 %v951_v45  ;;  %v4761_v45 = vpop.permute.xlu0 %1588 }
 0x3c6   : > { %7113 = vst [vmem:[#allocation85_spill] sm:$0xff] %v4761_v45 }
 0x3c9   : > { %v934_v38 = vpop.f32.mrf.mxu1 }
 0x3ca   : > { %v4737_v25 = vadd.f32 %v3808_v10, %v934_v38  ;;  %v4763_v38 = vpop.permute.xlu2 %1709 }
 0x3cb   : > { %7114 = vst [vmem:[#allocation86_spill] sm:$0xff] %v4763_v38 }
 0x3cc   : > { %v954_v1 = vsel %vm510_vm4, %v4737_v25, 0.0 }
 0x3cd   : > { %955 = vadd.xlane.f32.xlu2 %v954_v1  ;;  %v4765_v1 = vpop.permute.xlu1 %1653  ;;  %v4767_v60 = vpop.permute.xlu0 %1644 }
 0x3ce   : > { %7115 = vst [vmem:[#allocation87_spill] sm:$0xff] %v4765_v1 }
 0x3cf   : > { %7116 = vst [vmem:[#allocation88_spill] sm:$0xff] %v4767_v60 }
 0x3d2   : > { %v4771_v54 = vpop.permute.xlu2 %1824 }
 0x3d3   : > { %7117 = vst [vmem:[#allocation89_spill] sm:$0xff] %v4771_v54 }
 0x3d5   : > { %v4779_v46 = vpop.permute.xlu0 %1659 }
 0x3d6   : > { %7119 = vst [vmem:[#allocation91_spill] sm:$0xff] %v4779_v46 }
 0x3da   : > { %v4783_v55 = vpop.permute.xlu2 %1768 }
 0x3db   : > { %7120 = vst [vmem:[#allocation92_spill] sm:$0xff] %v4783_v55 }
 0x3e5   : > { %2001 = vperm.xlu2 %3792, %v1992_v30   ;;  %v4773_v30 = vpop.permute.xlu1 %1774 }
 0x3e6   : > { %7118 = vst [vmem:[#allocation90_spill] sm:$0xff] %v4773_v30 }
 0x3fc   : > { %v937_v33 = vpop.f32.mrf.mxu1 }
 0x3fd   : > { %v4769_v31 = vadd.f32 %v3808_v10, %v937_v33  ;;  %v4785_v33 = vpop.permute.xlu1 %1712 }
 0x3fe   : > { %7121 = vst [vmem:[#allocation93_spill] sm:$0xff] %v4785_v33 }
 0x3ff   : > { %v957_v37 = vsel %vm510_vm4, %v4769_v31, 0.0 }
 0x400   : > { %958 = vadd.xlane.f32.xlu0 %v957_v37  ;;  %v4791_v37 = vpop.permute.xlu0 %1715 }
 0x401   : > { %7122 = vst [vmem:[#allocation94_spill] sm:$0xff] %v4791_v37 }
 0x404   : > { %v940_v14 = vpop.f32.mrf.mxu1 }
 0x405   : > { %v4777_v57 = vadd.f32 %v3808_v10, %v940_v14  ;;  %v4793_v14 = vpop.permute.xlu2 %1883  ;;  %v4795_v46 = vpop.permute.xlu1 %1833 }
 0x406   : > { %7123 = vst [vmem:[#allocation95_spill] sm:$0xff] %v4793_v14 }
 0x407   : > { %v960_v1 = vsel %vm510_vm4, %v4777_v57, 0.0  ;;  %7124 = vst [vmem:[#allocation96_spill] sm:$0xff] %v4795_v46 }
 0x408   : > { %961 = vadd.xlane.f32.xlu0 %v960_v1  ;;  %v4799_v1 = vpop.permute.xlu0 %1594 }
 0x409   : > { %7125 = vst [vmem:[#allocation97_spill] sm:$0xff] %v4799_v1 }
 0x40c   : > { %v943_v51 = vpop.f32.mrf.mxu1 }
 0x40d   : > { %v4787_v26 = vadd.f32 %v3808_v10, %v943_v51  ;;  %v4801_v33 = vpop.permute.xlu2 %1827  ;;  %v4803_v51 = vpop.permute.xlu1 %1771  ;;  %v4808_v10 = vld [vmem:[%s6749_s3 + $0x18] sm:$0xff] }
 0x40e   : > { %7126 = vst [vmem:[#allocation98_spill] sm:$0xff] %v4801_v33  ;;  %vm1870_vm2 = vcmp.eq.s32.totalorder %v4808_v10, 13  ;;  %vm1988_vm5 = vcmp.eq.s32.totalorder %v4808_v10, 15  ;;  %vm1929_vm10 = vcmp.eq.s32.totalorder %v4808_v10, 14 }
 0x40f   : > { %v963_v30 = vsel %vm510_vm4, %v4787_v26, 0.0  ;;  %7127 = vst [vmem:[#allocation99_spill] sm:$0xff] %v4803_v51  ;;  %v1876_v34 = vsel %vm1870_vm2, 1, %v7092_v44  ;;  %v1935_v28 = vsel %vm1929_vm10, 1, %v7092_v44  ;;  %vm6847_vm10 = vcmp.eq.s32.totalorder %v4389_v27, 1 }
 0x410   : > { %964 = vadd.xlane.f32.xlu1 %v963_v30  ;;  %v4811_v30 = vpop.permute.xlu0 %1762 }
 0x411   : > { %7128 = vst [vmem:[#allocation100_spill] sm:$0xff] %v4811_v30 }
 0x415   : > { %v4813_v46 = vpop.permute.xlu2 %1942  ;;  %v4816_v37 = vpop.permute.xlu1 %1892 }
 0x416   : > { %7129 = vst [vmem:[#allocation101_spill] sm:$0xff] %v4813_v46  ;;  %vm6845_vm12 = vcmp.eq.s32.totalorder %v4813_v46, 1 }
 0x417   : > { %7130 = vst [vmem:[#allocation102_spill] sm:$0xff] %v4816_v37 }
 0x418   : > { %v4818_v1 = vpop.permute.xlu0 %1777 }
 0x419   : > { %7131 = vst [vmem:[#allocation103_spill] sm:$0xff] %v4818_v1 }
 0x41c   : > { %1998 = vperm.xlu0 %3790, %v1991_v23  }
 0x41d   : > { %v4820_v23 = vpop.permute.xlu2 %1886  ;;  %v4822_v51 = vpop.permute.xlu1 %1830 }
 0x41e   : > { %7132 = vst [vmem:[#allocation104_spill] sm:$0xff] %v4820_v23 }
 0x41f   : > { %7133 = vst [vmem:[#allocation105_spill] sm:$0xff] %v4822_v51 }
 0x420   : > { %v4824_v24 = vpop.permute.xlu0 %1821 }
 0x421   : > { %7134 = vst [vmem:[#allocation106_spill] sm:$0xff] %v4824_v24 }
 0x425   : > { %v4827_v20 = vpop.permute.xlu1 %1951 }
 0x426   : > { %7135 = vst [vmem:[#allocation107_spill] sm:$0xff] %v4827_v20 }
 0x428   : > { %v4836_v51 = vpop.permute.xlu0 %1836 }
 0x429   : > { %1889 = vperm.xlu1 %3791, %v1876_v34   ;;  %7136 = vst [vmem:[#allocation108_spill] sm:$0xff] %v4836_v51 }
 0x430   : > { %v950_v17 = vpop.xlane.xlu1 %949 }
 0x438   : > { %v953_v13 = vpop.xlane.xlu2 %952 }
 0x439   : > { %v967_v2 = vmul.f32 %v953_v13, %v4485_v15 }
 0x43b   : > { %v4830_v40 = vsub.f32 %v4731_v5, %v967_v2  ;;  %v966_v2 = vmul.f32 %v950_v17, %v4485_v15  ;;  %v1934_v17 = vsel %vm1928_vm3, 1, %v7092_v44 }
 0x43d   : > { %v979_v37 = vmul.f32 %v4830_v40, %v4830_v40 }
 0x43f   : > { %v987_v34 = vsel %vm510_vm4, %v979_v37, 0.0  ;;  %v4846_v37 = vsub.f32 %v4725_v21, %v966_v2  ;;  %v1994_v21 = vsel %vm1988_vm5, 1, %v7092_v44 }
 0x440   : > { %988 = vadd.xlane.f32.xlu2 %v987_v34  ;;  %v956_v1 = vpop.xlane.xlu2 %955  ;;  %v4848_v34 = vpop.permute.xlu0 %1880 }
 0x441   : > { %v968_v52 = vmul.f32 %v956_v1, %v4485_v15  ;;  %7137 = vst [vmem:[#allocation109_spill] sm:$0xff] %v4848_v34  ;;  %v978_v1 = vmul.f32 %v4846_v37, %v4846_v37 }
 0x443   : > { %v4839_v24 = vsub.f32 %v4737_v25, %v968_v52  ;;  %v984_v51 = vsel %vm510_vm4, %v978_v1, 0.0 }
 0x445   : > { %v980_v13 = vmul.f32 %v4839_v24, %v4839_v24 }
 0x447   : > { %v990_v5 = vsel %vm510_vm4, %v980_v13, 0.0 }
 0x448   : > { %991 = vadd.xlane.f32.xlu2 %v990_v5  ;;  %v4853_v52 = vpop.permute.xlu0 %1895 }
 0x449   : > { %7138 = vst [vmem:[#allocation110_spill] sm:$0xff] %v4853_v52 }
 0x450   : > { %v4857_v25 = vpop.permute.xlu0 %1939 }
 0x451   : > { %7139 = vst [vmem:[#allocation111_spill] sm:$0xff] %v4857_v25 }
 0x453   : > { %985 = vadd.xlane.f32.xlu1 %v984_v51 }
 0x458   : > { %v4861_v13 = vpop.permute.xlu0 %1954 }
 0x459   : > { %7140 = vst [vmem:[#allocation112_spill] sm:$0xff] %v4861_v13 }
 0x460   : > { %1945 = vperm.xlu2 %3792, %v1934_v17  }
 0x468   : > { %2007 = vperm.xlu2 %3792, %v1994_v21  }
 0x473   : > { %v959_v2 = vpop.xlane.xlu0 %958 }
 0x474   : > { %v969_v5 = vmul.f32 %v959_v2, %v4485_v15 }
 0x476   : > { %v4865_v51 = vsub.f32 %v4769_v31, %v969_v5 }
 0x478   : > { %7141 = vst [vmem:[#allocation113_spill] sm:$0xff] %v4865_v51  ;;  %v981_v1 = vmul.f32 %v4865_v51, %v4865_v51 }
 0x47a   : > { %v993_v17 = vsel %vm510_vm4, %v981_v1, 0.0 }
 0x47b   : > { %994 = vadd.xlane.f32.xlu0 %v993_v17  ;;  %v962_v52 = vpop.xlane.xlu0 %961  ;;  %v4896_v17 = vpop.permute.xlu2 %2001 }
 0x47c   : > { %v970_v20 = vmul.f32 %v962_v52, %v4485_v15  ;;  %7144 = vst [vmem:[#allocation116_spill] sm:$0xff] %v4896_v17  ;;  %vm6844_vm0 = vcmp.eq.s32.totalorder %v4896_v17, 1 }
 0x47e   : > { %v4872_v34 = vsub.f32 %v4777_v57, %v970_v20  ;;  %v1996_v20 = vsel %vm1990_vm6, 1, %v7092_v44  ;;  %v1993_v57 = vsel %vm1987_vm7, 1, %v7092_v44 }
 0x480   : > { %7142 = vst [vmem:[#allocation114_spill] sm:$0xff] %v4872_v34  ;;  %v982_v21 = vmul.f32 %v4872_v34, %v4872_v34 }
 0x482   : > { %v996_v2 = vsel %vm510_vm4, %v982_v21, 0.0  ;;  %v2063_v21 = vsel %vm332_vm11, 1, %v7092_v44  ;;  %vm6848_vm11 = vcmp.eq.s32.totalorder %v4429_v48, 1  ;;  %v7156_v48 = vld [vmem:[#allocation98_spill] sm:$0xff] }
 0x483   : > { %v965_v13 = vpop.xlane.xlu1 %964  ;;  %997 = vadd.xlane.f32.xlu0 %v996_v2 }
 0x484   : > { %v971_v31 = vmul.f32 %v965_v13, %v4485_v15  ;;  %v1995_v13 = vsel %vm1989_vm8, 1, %v7092_v44 }
 0x486   : > { %v4879_v5 = vsub.f32 %v4787_v26, %v971_v31  ;;  %v331_v26 = vld [vmem:[%s6750_s4 + $0x8] sm:$0xff] }
 0x487   : > { %vm333_vm9 = vcmp.gt.f32.partialorder %v331_v26, 0.5 }
 0x488   : > { %7143 = vst [vmem:[#allocation115_spill] sm:$0xff] %v4879_v5  ;;  %v983_v1 = vmul.f32 %v4879_v5, %v4879_v5  ;;  %v2064_v9 = vsel %vm333_vm9, 1, %v7092_v44  ;;  %vm6846_vm9 = vcmp.eq.s32.totalorder %v4382_v16, 1  ;;  %v7158_v16 = vld [vmem:[#allocation104_spill] sm:$0xff] }
 0x48a   : > { %v999_v52 = vsel %vm510_vm4, %v983_v1, 0.0 }
 0x48b   : > { %1000 = vadd.xlane.f32.xlu1 %v999_v52 }
 0x497   : > { %2013 = vperm.xlu0 %3790, %v1996_v20  }
 0x49b   : > { %v4904_v20 = vpop.permute.xlu1 %1889 }
 0x49c   : > { %7145 = vst [vmem:[#allocation117_spill] sm:$0xff] %v4904_v20 }
 0x49f   : > { %2004 = vperm.xlu0 %3790, %v1993_v57  }
 0x4a4   : > { %2010 = vperm.xlu1 %3791, %v1995_v13  }
 0x4a7   : > { %2069 = vperm.xlu0 %3790, %v2064_v9  }
 0x4ac   : > { %1948 = vperm.xlu1 %3791, %v1935_v28  }
 0x4b3   : > { %v989_v2 = vpop.xlane.xlu2 %988 }
 0x4b4   : > { %2066 = vperm.xlu1 %3791, %v2063_v21   ;;  %v1003_v31 = vmul.f32 %v989_v2, %v4485_v15 }
 0x4b6   : > { %v1009_v1 = vadd.f32 1e-05, %v1003_v31 }
 0x4b8   : > { %3839 = vrsqrt.f32 %v1009_v1  ;;  %vm1030_vm14 = vweird.f32 %v1009_v1 }
 0x4bb   : > { %v992_v52 = vpop.xlane.xlu2 %991 }
 0x4bc   : > { %v1004_v10 = vmul.f32 %v992_v52, %v4485_v15 }
 0x4be   : > { %v1010_v57 = vadd.f32 1e-05, %v1004_v10  ;;  %v3840_v26 = vpop.eup %3839 }
 0x4bf   : > { %v1025_v28 = vmul.f32 %v3840_v26, %v1009_v1  ;;  %vm1031_vm13 = vweird.f32 %v3840_v26 }
 0x4c0   : > { %3841 = vrsqrt.f32 %v1010_v57  ;;  %vm1032_vm15 = vmor %vm1030_vm14, %vm1031_vm13  ;;  %vm1040_vm3 = vweird.f32 %v1010_v57  ;;  %vm6853_vm13 = vcmp.eq.s32.totalorder %v4439_v3, 1  ;;  %vm6850_vm14 = vcmp.eq.s32.totalorder %v4433_v58, 1 }
 0x4c1   : > { %v1026_v5 = vmul.f32 %v3840_v26, %v1025_v28 }
 0x4c3   : > { %v1027_v2 = vmul.f32 0.5, %v1026_v5 }
 0x4c5   : > { %v1028_v30 = vsub.f32 1.5, %v1027_v2 }
 0x4c6   : > { %v986_v13 = vpop.xlane.xlu1 %985  ;;  %v3842_v44 = vpop.eup %3841 }
 0x4c7   : > { %v1002_v9 = vmul.f32 %v986_v13, %v4485_v15  ;;  %v1035_v21 = vmul.f32 %v3842_v44, %v1010_v57  ;;  %v1029_v20 = vmul.f32 %v3840_v26, %v1028_v30  ;;  %vm1041_vm2 = vweird.f32 %v3842_v44 }
 0x4c8   : > { %vm1042_vm5 = vmor %vm1040_vm3, %vm1041_vm2  ;;  %vm6849_vm3 = vcmp.eq.s32.totalorder %v4450_v19, 1  ;;  %vm6866_vm2 = vcmp.eq.s32.totalorder %v4674_v22, 1 }
 0x4c9   : > { %v1008_v7 = vadd.f32 1e-05, %v1002_v9  ;;  %v1036_v34 = vmul.f32 %v3842_v44, %v1035_v21  ;;  %v1033_v33 = vsel %vm1032_vm15, %v3840_v26, %v1029_v20  ;;  %v4910_v9 = vld [vmem:[%s6751_s5 + $0x176] ss:$0 sm:$0xff]  ;;  %v4920_v26 = vpop.permute.xlu0 %1998  ;;  %vm6867_vm15 = vcmp.eq.s32.totalorder %v4423_v29, 1 }
 0x4ca   : > { %v1075_v5 = vmul.f32 %v1033_v33, %v4830_v40  ;;  %7146 = vst [vmem:[#allocation118_spill] sm:$0xff] %v4920_v26 }
 0x4cb   : > { %3843 = vrsqrt.f32 %v1008_v7  ;;  %v1037_v51 = vmul.f32 0.5, %v1036_v34  ;;  %vm1020_vm7 = vweird.f32 %v1008_v7 }
 0x4cc   : > { %v1082_v1 = vmul.f32 %v4910_v9, %v1075_v5 }
 0x4cd   : > { %v1038_v23 = vsub.f32 1.5, %v1037_v51  ;;  %v4916_v51 = vld [vmem:[%s6751_s5 + $0x177] ss:$0 sm:$0xff] }
 0x4ce   : > { %v1089_v28 = vadd.f32 %v4916_v51, %v1082_v1 }
 0x4cf   : > { %v1039_v18 = vmul.f32 %v3842_v44, %v1038_v23 }
 0x4d0   : > { %v4926_v33 = vmax.f32 %v1089_v28, 0.0 }
 0x4d1   : > { %v3844_v31 = vpop.eup %3843  ;;  %v1043_v30 = vsel %vm1042_vm5, %v3842_v44, %v1039_v18  ;;  %vm6863_vm5 = vcmp.eq.s32.totalorder %v4457_v35, 1 }
 0x4d2   : > { %v1015_v52 = vmul.f32 %v3844_v31, %v1008_v7  ;;  %v1076_v23 = vmul.f32 %v1043_v30, %v4839_v24  ;;  %vm1021_vm6 = vweird.f32 %v3844_v31  ;;  %v4944_v7 = vpop.permute.xlu2 %1945  ;;  %v2022_v21 = vsel %vm6844_vm0, %v4926_v33, -1e+30 }
 0x4d3   : > { %vm1022_vm8 = vmor %vm1020_vm7, %vm1021_vm6  ;;  %vm6851_vm6 = vcmp.eq.s32.totalorder %v4463_v49, 1  ;;  %vm6860_vm7 = vcmp.eq.s32.totalorder %v4469_v63, 1  ;;  %7147 = vst [vmem:[#allocation119_spill] sm:$0xff] %v4944_v7  ;;  %v1963_v2 = vsel %vm6845_vm12, %v4926_v33, -1e+30  ;;  %vm6886_vm12 = vcmp.eq.s32.totalorder %v4755_v0, 1 }
 0x4d4   : > { %v1016_v10 = vmul.f32 %v3844_v31, %v1015_v52  ;;  %v1083_v40 = vmul.f32 %v4910_v9, %v1076_v23  ;;  %v1137_v52 = vsel %vm6846_vm9, %v4926_v33, -1e+30  ;;  %v1314_v30 = vsel %vm6850_vm14, %v4926_v33, -1e+30 }
 0x4d5   : > { %vm6871_vm9 = vcmp.eq.s32.totalorder %v4761_v45, 1  ;;  %v1373_v1 = vsel %vm6849_vm3, %v4926_v33, -1e+30  ;;  %v1432_v23 = vsel %vm6851_vm6, %v4926_v33, -1e+30  ;;  %vm6873_vm0 = vcmp.eq.s32.totalorder %v4920_v26, 1 }
 0x4d6   : > { %v1017_v13 = vmul.f32 0.5, %v1016_v10  ;;  %v1090_v57 = vadd.f32 %v4916_v51, %v1083_v40  ;;  %v1196_v10 = vsel %vm6847_vm10, %v4926_v33, -1e+30  ;;  %vm6852_vm10 = vcmp.eq.s32.totalorder %v4944_v7, 1 }
 0x4d7   : > { %v4987_v28 = vsel %vm510_vm4, %v1963_v2, -inf  ;;  %v4990_v40 = vsel %vm510_vm4, %v1137_v52, -inf  ;;  %vm6882_vm14 = vcmp.eq.s32.totalorder %v4857_v25, 1  ;;  %vm6889_vm6 = vcmp.eq.s32.totalorder %v4395_v39, 1 }
 0x4d8   : > { %v1018_v34 = vsub.f32 1.5, %v1017_v13  ;;  %v1255_v13 = vsel %vm6848_vm11, %v4926_v33, -1e+30  ;;  %v4964_v5 = vmax.f32 %v1090_v57, 0.0  ;;  %vm6888_vm11 = vcmp.eq.s32.totalorder %v4397_v43, 1 }
 0x4d9   : > { %v4999_v57 = vsel %vm510_vm4, %v1255_v13, -inf  ;;  %v5013_v2 = vsel %vm510_vm4, %v1373_v1, -inf  ;;  %vm6885_vm3 = vcmp.eq.s32.totalorder %v4752_v41, 1  ;;  %v1550_v7 = vsel %vm6866_vm2, %v4926_v33, -1e+30 }
 0x4da   : > { %v1019_v20 = vmul.f32 %v3844_v31, %v1018_v34  ;;  %v1433_v63 = vsel %vm6865_vm1, %v4964_v5, -1e+30  ;;  %vm7149_vm1 = vcmp.eq.s32.totalorder %v4712_v61, 1  ;;  %vm6911_vm2 = vcmp.eq.s32.totalorder %v4479_v11, 1  ;;  %v5188_v43 = vpop.permute.xlu2 %2007 }
 0x4db   : > { %v5095_v3 = vsel %vm510_vm4, %v1550_v7, -inf  ;;  %7160 = vst [vmem:[#allocation124_spill] sm:$0xff] %v5188_v43 }
 0x4dc   : > { %v1023_v18 = vsel %vm1022_vm8, %v3844_v31, %v1019_v20  ;;  %vm6872_vm8 = vcmp.eq.s32.totalorder %v4475_v50, 1  ;;  %v4984_v20 = vsel %vm510_vm4, %v2022_v21, -inf  ;;  %v1138_v21 = vsel %vm6853_vm13, %v4964_v5, -1e+30 }
 0x4dd   : > { %v1074_v24 = vmul.f32 %v1023_v18, %v4846_v37  ;;  %vm6887_vm13 = vcmp.eq.s32.totalorder %v4401_v47, 1  ;;  %v1491_v17 = vsel %vm6872_vm8, %v4926_v33, -1e+30  ;;  %vm6908_vm8 = vcmp.eq.s32.totalorder %v4757_v56, 1 }
 0x4df   : > { %v1081_v31 = vmul.f32 %v4910_v9, %v1074_v24  ;;  %v4996_v24 = vsel %vm510_vm4, %v1196_v10, -inf  ;;  %v1197_v10 = vsel %vm6867_vm15, %v4964_v5, -1e+30  ;;  %vm6906_vm15 = vcmp.eq.s32.totalorder %v4763_v38, 1  ;;  %v7164_v38 = vld [vmem:[#allocation109_spill] sm:$0xff] }
 0x4e0   : > { %v5057_v29 = vsel %vm510_vm4, %v1197_v10, -inf  ;;  %v1609_v10 = vsel %vm6871_vm9, %v4926_v33, -1e+30  ;;  %vm7150_vm9 = vcmp.eq.s32.totalorder %v4729_v4, 1 }
 0x4e1   : > { %v1088_v18 = vadd.f32 %v4916_v51, %v1081_v31  ;;  %v5016_v31 = vsel %vm510_vm4, %v1432_v23, -inf  ;;  %v1374_v23 = vsel %vm6860_vm7, %v4964_v5, -1e+30  ;;  %vm6894_vm7 = vcmp.eq.s32.totalorder %v4455_v32, 1 }
 0x4e2   : > { %v5069_v8 = vsel %vm510_vm4, %v1374_v23, -inf  ;;  %v1551_v23 = vsel %vm6886_vm12, %v4964_v5, -1e+30  ;;  %v5112_v26 = vsel %vm510_vm4, %v1609_v10, -inf }
 0x4e3   : > { %v5043_v35 = vmax.f32 %v1088_v18, 0.0  ;;  %7152 = vst [vmem:[#allocation120_spill] sm:$0xff] %v5112_v26  ;;  %v5122_v25 = vsel %vm510_vm4, %v1551_v23, -inf }
 0x4e4   : > { %7153 = vst [vmem:[#allocation121_spill] sm:$0xff] %v5122_v25 }
 0x4e5   : > { %v2021_v61 = vsel %vm6873_vm0, %v5043_v35, -1e+30  ;;  %vm7151_vm0 = vcmp.eq.s32.totalorder %v4759_v42, 1  ;;  %v1136_v50 = vsel %vm6889_vm6, %v5043_v35, -1e+30 }
 0x4e6   : > { %v1610_v7 = vsel %vm7151_vm0, %v4964_v5, -1e+30  ;;  %v5126_v10 = vsel %vm510_vm4, %v2021_v61, -inf  ;;  %vm6916_vm0 = vcmp.eq.s32.totalorder %v4733_v62, 1  ;;  %v1254_v61 = vsel %vm6887_vm13, %v5043_v35, -1e+30 }
 0x4e7   : > { %v5147_v58 = vsel %vm510_vm4, %v1136_v50, -inf  ;;  %vm6924_vm13 = vcmp.eq.s32.totalorder %v4793_v14, 1  ;;  %v5177_v27 = vsel %vm510_vm4, %v1610_v7, -inf  ;;  %v1490_v47 = vsel %vm6911_vm2, %v5043_v35, -1e+30 }
 0x4e8   : > { %7157 = vst [vmem:[#allocation123_spill] sm:$0xff] %v5177_v27 }
 0x4ee   : > { %v995_v37 = vpop.xlane.xlu0 %994 }
 0x4ef   : > { %v1005_v44 = vmul.f32 %v995_v37, %v4485_v15  ;;  %v5002_v37 = vsel %vm510_vm4, %v1314_v30, -inf  ;;  %v1315_v30 = vsel %vm6863_vm5, %v4964_v5, -1e+30  ;;  %vm6914_vm5 = vcmp.eq.s32.totalorder %v4467_v53, 1  ;;  %v7161_v53 = vld [vmem:[#allocation113_spill] sm:$0xff] }
 0x4f0   : > { %v5063_v18 = vsel %vm510_vm4, %v1315_v30, -inf  ;;  %v5084_v30 = vsel %vm510_vm4, %v1491_v17, -inf  ;;  %v1962_v17 = vsel %vm6882_vm14, %v5043_v35, -1e+30 }
 0x4f1   : > { %v4966_v34 = vadd.f32 1e-05, %v1005_v44  ;;  %v1964_v44 = vsel %vm6852_vm10, %v4964_v5, -1e+30  ;;  %vm7148_vm10 = vcmp.eq.s32.totalorder %v4443_v12, 1  ;;  %v5137_v23 = vsel %vm510_vm4, %v1962_v17, -inf }
 0x4f2   : > { %v1256_v13 = vsel %vm7148_vm10, %v4964_v5, -1e+30  ;;  %vm6891_vm10 = vcmp.eq.s32.totalorder %v4441_v6, 1  ;;  %v5041_v46 = vsel %vm510_vm4, %v1964_v44, -inf }
 0x4f3   : > { %3845 = vrsqrt.f32 %v4966_v34  ;;  %v5060_v44 = vsel %vm510_vm4, %v1256_v13, -inf  ;;  %v5081_v13 = vsel %vm510_vm4, %v1433_v63, -inf  ;;  %v1668_v63 = vsel %vm7150_vm9, %v4926_v33, -1e+30 }
 0x4f4   : > { %vm6913_vm9 = vcmp.eq.s32.totalorder %v4771_v54, 1  ;;  %v5129_v49 = vsel %vm510_vm4, %v1668_v63, -inf }
 0x4f5   : > { %7154 = vst [vmem:[#allocation122_spill] sm:$0xff] %v5129_v49  ;;  %v7168_v49 = vld [vmem:[#allocation38_spill] sm:$0xff] }
 0x4f6   : > { %v998_v52 = vpop.xlane.xlu0 %997  ;;  %vm6938_vm2 = vcmp.eq.s32.totalorder %v7168_v49, 1  ;;  %v7195_v49 = vld [vmem:[#allocation112_spill] sm:$0xff] }
 0x4f7   : > { %v1006_v1 = vmul.f32 %v998_v52, %v4485_v15  ;;  %v5046_v52 = vsel %vm510_vm4, %v1138_v21, -inf }
 0x4f9   : > { %v5051_v12 = vpop.eup %3845  ;;  %v5054_v22 = vadd.f32 1e-05, %v1006_v1  ;;  %v1492_v1 = vsel %vm7149_vm1, %v4964_v5, -1e+30  ;;  %vm6910_vm1 = vcmp.eq.s32.totalorder %v4750_v59, 1  ;;  %v5213_v59 = vsel %vm510_vm4, %v1490_v47, -inf }
 0x4fa   : > { %v1045_v21 = vmul.f32 %v5051_v12, %v4966_v34  ;;  %vm1051_vm14 = vweird.f32 %v5051_v12 }
 0x4fb   : > { %3847 = vrsqrt.f32 %v5054_v22 }
 0x4fc   : > { %v1046_v45 = vmul.f32 %v5051_v12, %v1045_v21  ;;  %v5106_v21 = vsel %vm510_vm4, %v1492_v1, -inf  ;;  %v1195_v1 = vsel %vm6888_vm11, %v5043_v35, -1e+30  ;;  %vm1050_vm11 = vweird.f32 %v4966_v34 }
 0x4fd   : > { %v5150_v41 = vsel %vm510_vm4, %v1195_v1, -inf  ;;  %v7155_v1 = vld [vmem:[#allocation76_spill] sm:$0xff]  ;;  %vm1052_vm12 = vmor %vm1050_vm11, %vm1051_vm14  ;;  %v1431_v34 = vsel %vm6914_vm5, %v5043_v35, -1e+30  ;;  %vm7159_vm11 = vcmp.eq.s32.totalorder %v4578_v36, 1  ;;  %vm7175_vm5 = vcmp.eq.s32.totalorder %v4783_v55, 1 }
 0x4fe   : > { %v1047_v4 = vmul.f32 0.5, %v1046_v45  ;;  %v1001_v0 = vpop.xlane.xlu1 %1000  ;;  %v1727_v45 = vsel %vm6885_vm3, %v4926_v33, -1e+30  ;;  %vm6934_vm3 = vcmp.eq.s32.totalorder %v4767_v60, 1  ;;  %vm6930_vm6 = vcmp.eq.s32.totalorder %v7155_v1, 1  ;;  %v7186_v1 = vld [vmem:[#allocation35_spill] sm:$0xff] }
 0x4ff   : > { %v1007_v42 = vmul.f32 %v1001_v0, %v4485_v15  ;;  %v5202_v36 = vsel %vm510_vm4, %v1431_v34, -inf  ;;  %v1845_v34 = vsel %vm6913_vm9, %v4926_v33, -1e+30 }
 0x500   : > { %v1048_v19 = vsub.f32 1.5, %v1047_v4  ;;  %v1313_v4 = vsel %vm6891_vm10, %v5043_v35, -1e+30  ;;  %vm6925_vm10 = vcmp.eq.s32.totalorder %v7156_v48, 1  ;;  %v5253_v62 = vsel %vm510_vm4, %v1845_v34, -inf }
 0x501   : > { %v5142_v0 = vpop.eup %3847  ;;  %v5144_v63 = vadd.f32 1e-05, %v1007_v42  ;;  %v1372_v42 = vsel %vm6894_vm7, %v5043_v35, -1e+30  ;;  %vm6923_vm7 = vcmp.eq.s32.totalorder %v7158_v16, 1  ;;  %v5192_v7 = vsel %vm510_vm4, %v1313_v4, -inf }
 0x502   : > { %v1049_v17 = vmul.f32 %v5051_v12, %v1048_v19  ;;  %v1055_v50 = vmul.f32 %v5142_v0, %v5054_v22  ;;  %v5171_v19 = vsel %vm510_vm4, %v1254_v61, -inf  ;;  %v1549_v61 = vsel %vm7159_vm11, %v5043_v35, -1e+30  ;;  %v7163_v4 = vld [vmem:[#allocation106_spill] sm:$0xff]  ;;  %7174 = vst [vmem:[#allocation129_spill] sm:$0xff] %v5253_v62 }
 0x503   : > { %3849 = vrsqrt.f32 %v5144_v63  ;;  %v5195_v15 = vsel %vm510_vm4, %v1372_v42, -inf  ;;  %vm6929_vm14 = vcmp.eq.s32.totalorder %v7163_v4, 1  ;;  %vm6933_vm11 = vcmp.eq.s32.totalorder %v7164_v38, 1 }
 0x504   : > { %v1053_v32 = vsel %vm1052_vm12, %v5051_v12, %v1049_v17  ;;  %v1056_v6 = vmul.f32 %v5142_v0, %v1055_v50  ;;  %v1669_v12 = vsel %vm6910_vm1, %v4964_v5, -1e+30  ;;  %v7162_v17 = vld [vmem:[#allocation100_spill] sm:$0xff]  ;;  %vm1060_vm1 = vweird.f32 %v5054_v22 }
 0x505   : > { %v1077_v39 = vmul.f32 %v1053_v32, %v7161_v53  ;;  %vm6927_vm12 = vcmp.eq.s32.totalorder %v7162_v17, 1  ;;  %v1728_v32 = vsel %vm6906_vm15, %v4964_v5, -1e+30  ;;  %v1786_v53 = vsel %vm6908_vm8, %v4926_v33, -1e+30 }
 0x506   : > { %v1057_v50 = vmul.f32 0.5, %v1056_v6  ;;  %v5216_v6 = vsel %vm510_vm4, %v1549_v61, -inf  ;;  %vm6931_vm15 = vcmp.eq.s32.totalorder %v5188_v43, 1  ;;  %vm1061_vm8 = vweird.f32 %v5142_v0  ;;  %v7167_v61 = vld [vmem:[#allocation43_spill] sm:$0xff] }
 0x507   : > { %v1084_v42 = vmul.f32 %v4910_v9, %v1077_v39  ;;  %v5225_v11 = vsel %vm510_vm4, %v1669_v12, -inf  ;;  %v5228_v39 = vsel %vm510_vm4, %v1727_v45, -inf  ;;  %v5241_v12 = vsel %vm510_vm4, %v1728_v32, -inf }
 0x508   : > { %v1058_v56 = vsub.f32 1.5, %v1057_v50  ;;  %7165 = vst [vmem:[#allocation113_spill] sm:$0xff] %v5225_v11  ;;  %v1608_v50 = vsel %vm6916_vm0, %v5043_v35, -1e+30  ;;  %v5244_v45 = vsel %vm510_vm4, %v1786_v53, -inf  ;;  %v7173_v11 = vld [vmem:[#allocation55_spill] sm:$0xff]  ;;  %vm1062_vm0 = vmor %vm1060_vm1, %vm1061_vm8 }
 0x509   : > { %7166 = vst [vmem:[#allocation125_spill] sm:$0xff] %v5228_v39  ;;  %v5230_v47 = vpop.eup %3849  ;;  %v1091_v54 = vadd.f32 %v4916_v51, %v1084_v42  ;;  %v5235_v27 = vpop.permute.xlu0 %2013  ;;  %v7172_v39 = vld [vmem:[#allocation49_spill] sm:$0xff]  ;;  %v1667_v32 = vsel %vm6934_vm3, %v5043_v35, -1e+30  ;;  %v1787_v53 = vsel %vm7175_vm5, %v4964_v5, -1e+30 }
 0x50a   : > { %7169 = vst [vmem:[#allocation126_spill] sm:$0xff] %v5235_v27  ;;  %vm6952_vm9 = vcmp.eq.s32.totalorder %v7172_v39, 1  ;;  %v1059_v26 = vmul.f32 %v5142_v0, %v1058_v56  ;;  %v1065_v42 = vmul.f32 %v5230_v47, %v5144_v63  ;;  %v1904_v22 = vsel %vm6924_vm13, %v4926_v33, -1e+30 }
 0x50b   : > { %7170 = vst [vmem:[#allocation127_spill] sm:$0xff] %v5241_v12  ;;  %v1726_v62 = vsel %vm6930_vm6, %v5043_v35, -1e+30  ;;  %v1846_v60 = vsel %vm6925_vm10, %v4964_v5, -1e+30  ;;  %v5275_v55 = vmax.f32 %v1091_v54, 0.0  ;;  %vm1071_vm13 = vweird.f32 %v5230_v47 }
 0x50c   : > { %7171 = vst [vmem:[#allocation128_spill] sm:$0xff] %v5244_v45  ;;  %v1063_v56 = vsel %vm1062_vm0, %v5142_v0, %v1059_v26  ;;  %v1066_v34 = vmul.f32 %v5230_v47, %v1065_v42  ;;  %v7176_v45 = vld [vmem:[#allocation107_spill] sm:$0xff]  ;;  %v7177_v12 = vld [vmem:[#allocation114_spill] sm:$0xff]  ;;  %v5279_v33 = vsel %vm510_vm4, %v1608_v50, -inf  ;;  %v1905_v26 = vsel %vm6923_vm7, %v4964_v5, -1e+30 }
 0x50d   : > { %vm6950_vm8 = vcmp.eq.s32.totalorder %v7176_v45, 1  ;;  %v1078_v25 = vmul.f32 %v1063_v56, %v7177_v12  ;;  %v7178_v0 = vld [vmem:[#allocation61_spill] sm:$0xff]  ;;  %v7179_v42 = vld [vmem:[#allocation26_spill] sm:$0xff]  ;;  %v5287_v48 = vsel %vm510_vm4, %v1667_v32, -inf  ;;  %v5290_v54 = vsel %vm510_vm4, %v1787_v53, -inf }
 0x50e   : > { %vm6951_vm5 = vcmp.eq.s32.totalorder %v7178_v0, 1  ;;  %vm6984_vm1 = vcmp.eq.s32.totalorder %v7179_v42, 1  ;;  %v1067_v14 = vmul.f32 0.5, %v1066_v34  ;;  %7180 = vst [vmem:[#allocation114_spill] sm:$0xff] %v5287_v48  ;;  %v5293_v12 = vsel %vm510_vm4, %v1904_v22, -inf  ;;  %v7183_v50 = vld [vmem:[#allocation34_spill] sm:$0xff] }
 0x50f   : > { %7181 = vst [vmem:[#allocation130_spill] sm:$0xff] %v5290_v54  ;;  %vm6983_vm0 = vcmp.eq.s32.totalorder %v7183_v50, 1  ;;  %v1085_v56 = vmul.f32 %v4910_v9, %v1078_v25  ;;  %v5298_v16 = vsel %vm510_vm4, %v1726_v62, -inf  ;;  %v1785_v34 = vsel %vm6927_vm12, %v5043_v35, -1e+30  ;;  %v7203_v45 = vld [vmem:[#allocation50_spill] sm:$0xff] }
 0x510   : > { %7182 = vst [vmem:[#allocation131_spill] sm:$0xff] %v5293_v12  ;;  %v5304_v32 = vsel %vm510_vm4, %v1846_v60, -inf  ;;  %vm6953_vm7 = vcmp.eq.s32.totalorder %v7186_v1, 1  ;;  %v1068_v53 = vsub.f32 1.5, %v1067_v14  ;;  %v1844_v22 = vsel %vm6929_vm14, %v5043_v35, -1e+30 }
 0x511   : > { %7184 = vst [vmem:[#allocation132_spill] sm:$0xff] %v5298_v16  ;;  %v5312_v25 = vsel %vm510_vm4, %v1905_v26, -inf  ;;  %v1092_v62 = vadd.f32 %v4916_v51, %v1085_v56  ;;  %vm1070_vm10 = vweird.f32 %v5144_v63  ;;  %v5316_v17 = vpop.permute.xlu0 %2004  ;;  %v2024_v60 = vsel %vm6931_vm15, %v5275_v55, -1e+30  ;;  %v7189_v12 = vld [vmem:[#allocation46_spill] sm:$0xff]  ;;  %v7191_v56 = vld [vmem:[#allocation52_spill] sm:$0xff] }
 0x512   : > { %7185 = vst [vmem:[#allocation133_spill] sm:$0xff] %v5304_v32  ;;  %v1903_v14 = vsel %vm6933_vm11, %v5043_v35, -1e+30  ;;  %vm6978_vm12 = vcmp.eq.s32.totalorder %v7189_v12, 1  ;;  %v1069_v4 = vmul.f32 %v5230_v47, %v1068_v53  ;;  %vm6943_vm14 = vcmp.eq.s32.totalorder %v5316_v17, 1  ;;  %vm1072_vm11 = vmor %vm1070_vm10, %vm1071_vm13  ;;  %v7198_v32 = vld [vmem:[#allocation115_spill] sm:$0xff] }
 0x513   : > { %7187 = vst [vmem:[#allocation134_spill] sm:$0xff] %v5312_v25  ;;  %v1139_v63 = vsel %vm6938_vm2, %v5275_v55, -1e+30  ;;  %vm7190_vm6 = vcmp.eq.s32.totalorder %v7167_v61, 1  ;;  %v5334_v43 = vmax.f32 %v1092_v62, 0.0  ;;  %vm7192_vm3 = vcmp.eq.s32.totalorder %v7173_v11, 1 }
 0x514   : > { %7188 = vst [vmem:[#allocation135_spill] sm:$0xff] %v5316_v17  ;;  %v1198_v26 = vsel %vm7190_vm6, %v5275_v55, -1e+30  ;;  %v1257_v35 = vsel %vm6952_vm9, %v5275_v55, -1e+30  ;;  %v5345_v38 = vsel %vm510_vm4, %v1785_v34, -inf  ;;  %v1073_v62 = vsel %vm1072_vm11, %v5230_v47, %v1069_v4 }
 0x515   : > { %v1316_v53 = vsel %vm7192_vm3, %v5275_v55, -1e+30  ;;  %7193 = vst [vmem:[#allocation136_spill] sm:$0xff] %v5345_v38  ;;  %v7194_v61 = vld [vmem:[#allocation31_spill] sm:$0xff]  ;;  %vm6959_vm2 = vcmp.eq.s32.totalorder %v7195_v49, 1  ;;  %vm6958_vm15 = vcmp.eq.s32.totalorder %v5235_v27, 1  ;;  %v1079_v11 = vmul.f32 %v1073_v62, %v7198_v32 }
 0x516   : > { %vm6974_vm6 = vcmp.eq.s32.totalorder %v7194_v61, 1  ;;  %v5352_v25 = vsel %vm510_vm4, %v1844_v22, -inf  ;;  %v5355_v39 = vsel %vm510_vm4, %v1903_v14, -inf  ;;  %v2023_v34 = vsel %vm6943_vm14, %v4964_v5, -1e+30  ;;  %v7199_v4 = vld [vmem:[#allocation32_spill] sm:$0xff]  ;;  %v5371_v22 = vpop.permute.xlu1 %2010 }
 0x517   : > { %7196 = vst [vmem:[#allocation31_spill] sm:$0xff] %v5352_v25  ;;  %v5362_v54 = vsel %vm510_vm4, %v1139_v63, -inf  ;;  %v5365_v38 = vsel %vm510_vm4, %v1198_v26, -inf  ;;  %vm6973_vm13 = vcmp.eq.s32.totalorder %v7199_v4, 1  ;;  %v5369_v47 = vsel %vm510_vm4, %v2024_v60, -inf  ;;  %v7201_v63 = vld [vmem:[#allocation33_spill] sm:$0xff] }
 0x518   : > { %7197 = vst [vmem:[#allocation137_spill] sm:$0xff] %v5355_v39  ;;  %v1966_v32 = vsel %vm6950_vm8, %v5334_v43, -1e+30  ;;  %v5377_v14 = vsel %vm510_vm4, %v1257_v35, -inf  ;;  %v5380_v5 = vsel %vm510_vm4, %v1316_v53, -inf  ;;  %vm6972_vm3 = vcmp.eq.s32.totalorder %v7201_v63, 1 }
 0x519   : > { %7200 = vst [vmem:[#allocation115_spill] sm:$0xff] %v5371_v22  ;;  %v7202_v26 = vld [vmem:[#allocation44_spill] sm:$0xff]  ;;  %v1086_v62 = vmul.f32 %v4910_v9, %v1079_v11  ;;  %vm6947_vm11 = vcmp.eq.s32.totalorder %v5371_v22, 1  ;;  %v1140_v60 = vsel %vm6984_vm1, %v5334_v43, -1e+30  ;;  %v5393_v17 = vsel %vm510_vm4, %v2023_v34, -inf }
 0x51a   : > { %vm6971_vm10 = vcmp.eq.s32.totalorder %v7202_v26, 1  ;;  %v1375_v35 = vsel %vm6951_vm5, %v5275_v55, -1e+30  ;;  %v1199_v11 = vsel %vm6983_vm0, %v5334_v43, -1e+30  ;;  %vm6970_vm14 = vcmp.eq.s32.totalorder %v7203_v45, 1 }
 0x51b   : > { %v1093_v42 = vadd.f32 %v4916_v51, %v1086_v62  ;;  %v2025_v0 = vsel %vm6947_vm11, %v5334_v43, -1e+30  ;;  %v5408_v34 = vsel %vm510_vm4, %v1966_v32, -inf  ;;  %v1258_v53 = vsel %vm6953_vm7, %v5334_v43, -1e+30  ;;  %v7204_v62 = vld [vmem:[#allocation66_spill] sm:$0xff] }
 0x51c   : > { %v1146_v50 = vsel %vm510_vm4, %v1140_v60, -inf  ;;  %v5419_v51 = vsel %vm510_vm4, %v1375_v35, -inf  ;;  %vm6969_vm11 = vcmp.eq.s32.totalorder %v7204_v62, 1  ;;  %v2036_v32 = vmax.f32 %v5393_v17, %v5369_v47  ;;  %v7205_v9 = vld [vmem:[#allocation58_spill] sm:$0xff]  ;;  %v7206_v25 = vld [vmem:[#allocation73_spill] sm:$0xff]  ;;  %v7208_v47 = vld [vmem:[#allocation56_spill] sm:$0xff] }
 0x51d   : > { %v5422_v22 = vmax.f32 %v1093_v42, 0.0  ;;  %v1205_v1 = vsel %vm510_vm4, %v1199_v11, -inf  ;;  %v1317_v60 = vsel %vm6978_vm12, %v5334_v43, -1e+30  ;;  %vm6976_vm8 = vcmp.eq.s32.totalorder %v7205_v9, 1 }
 0x51e   : > { %vm6967_vm5 = vcmp.eq.s32.totalorder %v7206_v25, 1  ;;  %v2031_v35 = vsel %vm510_vm4, %v2025_v0, -inf  ;;  %v1973_v39 = vmax.f32 %v5137_v23, %v5408_v34  ;;  %v1264_v42 = vsel %vm510_vm4, %v1258_v53, -inf  ;;  %v5451_v34 = vpop.permute.xlu1 %1948 }
 0x51f   : > { %vm7207_vm9 = vcmp.eq.s32.totalorder %v7191_v56, 1  ;;  %vm6968_vm7 = vcmp.eq.s32.totalorder %v7208_v47, 1  ;;  %v2026_v11 = vsel %vm6958_vm15, %v5422_v22, -1e+30  ;;  %v1967_v12 = vsel %vm6959_vm2, %v5422_v22, -1e+30 }
 0x520   : > { %v1376_v17 = vsel %vm7207_vm9, %v5334_v43, -1e+30  ;;  %v1141_v23 = vsel %vm6974_vm6, %v5422_v22, -1e+30  ;;  %v1147_v0 = vmax.f32 %v5147_v58, %v1146_v50  ;;  %v2033_v53 = vsel %vm510_vm4, %v2026_v11, -inf  ;;  %7209 = vst [vmem:[#allocation44_spill] sm:$0xff] %v5451_v34 }
 0x521   : > { %v1148_v56 = vsel %vm510_vm4, %v1141_v23, -inf  ;;  %v1206_v16 = vmax.f32 %v5150_v41, %v1205_v1  ;;  %v1323_v27 = vsel %vm510_vm4, %v1317_v60, -inf  ;;  %v1974_v48 = vsel %vm510_vm4, %v1967_v12, -inf  ;;  %v7210_v50 = vld [vmem:[#allocation63_spill] sm:$0xff] }
 0x522   : > { %vm6963_vm9 = vcmp.eq.s32.totalorder %v5451_v34, 1  ;;  %v1200_v49 = vsel %vm6973_vm13, %v5422_v22, -1e+30  ;;  %v1382_v58 = vsel %vm510_vm4, %v1376_v17, -inf  ;;  %vm6965_vm15 = vcmp.eq.s32.totalorder %v7210_v50, 1 }
 0x523   : > { %v2034_v11 = vmax.f32 %v4984_v20, %v2033_v53  ;;  %v1259_v41 = vsel %vm6972_vm3, %v5422_v22, -1e+30  ;;  %v1318_v1 = vsel %vm6971_vm10, %v5422_v22, -1e+30  ;;  %v1149_v12 = vmax.f32 %v4990_v40, %v1148_v56  ;;  %v7211_v53 = vld [vmem:[#allocation68_spill] sm:$0xff] }
 0x524   : > { %v2032_v60 = vmax.f32 %v5126_v10, %v2031_v35  ;;  %v1965_v17 = vsel %vm6963_vm9, %v5275_v55, -1e+30  ;;  %v1265_v23 = vmax.f32 %v5171_v19, %v1264_v42  ;;  %v1324_v20 = vmax.f32 %v5192_v7, %v1323_v27 }
 0x525   : > { %vm6966_vm2 = vcmp.eq.s32.totalorder %v7211_v53, 1  ;;  %v1207_v63 = vsel %vm510_vm4, %v1200_v49, -inf  ;;  %v1266_v4 = vsel %vm510_vm4, %v1259_v41, -inf  ;;  %v1377_v40 = vsel %vm6970_vm14, %v5422_v22, -1e+30 }
 0x526   : > { %v1387_v10 = vmax.f32 %v5069_v8, %v5419_v51  ;;  %v1975_v56 = vmax.f32 %v4987_v28, %v1974_v48  ;;  %v1325_v35 = vsel %vm510_vm4, %v1318_v1, -inf  ;;  %v1384_v19 = vsel %vm510_vm4, %v1377_v40, -inf  ;;  %v7212_v28 = vld [vmem:[#allocation64_spill] sm:$0xff] }
 0x527   : > { %v1383_v27 = vmax.f32 %v5195_v15, %v1382_v58  ;;  %v2035_v7 = vmax.f32 %v2032_v60, %v2034_v11  ;;  %v1971_v49 = vsel %vm510_vm4, %v1965_v17, -inf  ;;  %v1150_v42 = vmax.f32 %v1147_v0, %v1149_v12 }
 0x528   : > { %v1434_v41 = vsel %vm6969_vm11, %v5275_v55, -1e+30  ;;  %v1208_v34 = vmax.f32 %v4996_v24, %v1207_v63  ;;  %v1267_v8 = vmax.f32 %v4999_v57, %v1266_v4  ;;  %v1435_v48 = vsel %vm6976_vm8, %v5334_v43, -1e+30 }
 0x529   : > { %v5501_v15 = vsel %vm6967_vm5, %v5275_v55, -1e+30  ;;  %vm6975_vm9 = vcmp.eq.s32.totalorder %v7212_v28, 1  ;;  %v1436_v51 = vsel %vm6968_vm7, %v5422_v22, -1e+30  ;;  %v7213_v24 = vmax.f32 %v5046_v52, %v5362_v54 }
 0x52a   : > { %v1326_v57 = vmax.f32 %v5002_v37, %v1325_v35  ;;  %v1385_v4 = vmax.f32 %v5013_v2, %v1384_v19  ;;  %v1976_v0 = vmax.f32 %v1973_v39, %v1975_v56  ;;  %v1977_v58 = vmax.f32 %v5041_v46, %v1971_v49 }
 0x52b   : > { %v1152_v63 = vmax.f32 %v1150_v42, %v7213_v24  ;;  %v1209_v11 = vmax.f32 %v1206_v16, %v1208_v34  ;;  %v1268_v1 = vmax.f32 %v1265_v23, %v1267_v8  ;;  %v5513_v12 = vmax.f32 %v2035_v7, %v2036_v32 }
 0x52c   : > { %v1327_v17 = vmax.f32 %v1324_v20, %v1326_v57  ;;  %v1386_v40 = vmax.f32 %v1383_v27, %v1385_v4  ;;  %v1443_v25 = vsel %vm510_vm4, %v1436_v51, -inf  ;;  %v1495_v52 = vsel %vm6965_vm15, %v5422_v22, -1e+30 }
 0x52d   : > { %v1153_v60 = vrot.slane %v1152_v63, 4  ;;  %v7214_v37 = vmax.f32 %v5057_v29, %v5365_v38  ;;  %v7215_v46 = vmax.f32 %v5060_v44, %v5377_v14  ;;  %v7216_v54 = vmax.f32 %v5063_v18, %v5380_v5  ;;  %v7217_v38 = vld [vmem:[#allocation70_spill] sm:$0xff]  ;;  %v2079_v5 = vld [vmem:[%s6751_s5 + $0x80] sm:$0xff] }
 0x52e   : > { %v1388_v34 = vmax.f32 %v1386_v40, %v1387_v10  ;;  %v1441_v23 = vsel %vm510_vm4, %v1435_v48, -inf  ;;  %v1554_v20 = vsel %vm6966_vm2, %v5422_v22, -1e+30  ;;  %v1440_v29 = vsel %vm510_vm4, %v1434_v41, -inf  ;;  %v2080_v18 = vld [vmem:[%s6751_s5 + $0x88] sm:$0xff]  ;;  %v7218_v10 = vld [vmem:[#allocation71_spill] sm:$0xff] }
 0x52f   : > { %v1211_v2 = vmax.f32 %v1209_v11, %v7214_v37  ;;  %v1270_v16 = vmax.f32 %v1268_v1, %v7215_v46  ;;  %v1154_v39 = vmax.f32 %v1152_v63, %v1153_v60  ;;  %v1329_v32 = vmax.f32 %v1327_v17, %v7216_v54  ;;  %2099 = vmatpush.msrb.mxu3 %v2080_v18  ;;  %v2078_v63 = vld [vmem:[%s6751_s5 + $0x78] sm:$0xff]  ;;  %v2077_v1 = vld [vmem:[%s6751_s5 + $0x70] sm:$0xff]  ;;  %v7221_v46 = vld [vmem:[#allocation77_spill] sm:$0xff] }
 0x530   : > { %vm6977_vm15 = vcmp.eq.s32.totalorder %v7217_v38, 1  ;;  %v5534_v44 = vmax.f32 %v1976_v0, %v1977_v58  ;;  %v1389_v27 = vrot.slane %v1388_v34, 4  ;;  %vm6979_vm2 = vcmp.eq.s32.totalorder %v7218_v10, 1  ;;  %v7220_v60 = vld [vmem:[#allocation72_spill] sm:$0xff] }
 0x531   : > { %v1212_v56 = vrot.slane %v1211_v2, 4  ;;  %v1271_v35 = vrot.slane %v1270_v16, 4  ;;  %v1155_v14 = vrot.slane %v1154_v39, 2  ;;  %v1330_v19 = vrot.slane %v1329_v32, 4  ;;  %2100 = vmatpush.msrb.mxu3 %v2079_v5 }
 0x532   : > { %vm2044_vm5 = vcmask 1040384   ;;  %v1442_v42 = vmax.f32 %v5202_v36, %v1441_v23  ;;  %v1444_v41 = vmax.f32 %v5016_v31, %v1443_v25  ;;  %vm2046_vm7 = vcmask 1041408   ;;  %v7219_v31 = vld [vmem:[#allocation97_spill] sm:$0xff] }
 0x533   : > { %v1213_v7 = vmax.f32 %v1211_v2, %v1212_v56  ;;  %v1272_v49 = vmax.f32 %v1270_v16, %v1271_v35  ;;  %v1156_v8 = vmax.f32 %v1154_v39, %v1155_v14  ;;  %v1331_v48 = vmax.f32 %v1329_v32, %v1330_v19  ;;  %2101 = vmatpush.msrb.mxu3 %v2078_v63  ;;  %v7222_v19 = vld [vmem:[#allocation79_spill] sm:$0xff] }
 0x534   : > { %v1390_v51 = vmax.f32 %v1388_v34, %v1389_v27  ;;  %v1446_v24 = vmax.f32 %v5081_v13, %v1440_v29  ;;  %vm2048_vm11 = vcmask 1042432   ;;  %v1445_v0 = vmax.f32 %v1442_v42, %v1444_v41  ;;  %v7223_v27 = vld [vmem:[#allocation87_spill] sm:$0xff] }
 0x535   : > { %v1214_v57 = vrot.slane %v1213_v7, 2  ;;  %v1273_v4 = vrot.slane %v1272_v49, 2  ;;  %v1494_v36 = vsel %vm6975_vm9, %v5334_v43, -1e+30  ;;  %vm6980_vm14 = vcmp.eq.s32.totalorder %v7219_v31, 1  ;;  %2102 = vmatpush.msrb.mxu3 %v2077_v1 }
 0x536   : > { %v1502_v25 = vsel %vm510_vm4, %v1495_v52, -inf  ;;  %vm2050_vm10 = vcmask 1043456   ;;  %v1157_v58 = vrot.slane %v1156_v8, 1  ;;  %v1332_v13 = vrot.slane %v1331_v48, 2 }
 0x537   : > { %v1391_v11 = vrot.slane %v1390_v51, 2  ;;  %vm6981_vm3 = vcmp.eq.s32.totalorder %v7220_v60, 1  ;;  %v1561_v17 = vsel %vm510_vm4, %v1554_v20, -inf  ;;  %v1215_v40 = vmax.f32 %v1213_v7, %v1214_v57 }
 0x538   : > { %v1274_v37 = vmax.f32 %v1272_v49, %v1273_v4  ;;  %v1447_v2 = vmax.f32 %v1445_v0, %v1446_v24  ;;  %vm6982_vm13 = vcmp.eq.s32.totalorder %v7221_v46, 1  ;;  %v1333_v16 = vmax.f32 %v1331_v48, %v1332_v13  ;;  %v7224_v49 = vld [vmem:[#allocation91_spill] sm:$0xff] }
 0x539   : > { %v1392_v52 = vmax.f32 %v1390_v51, %v1391_v11  ;;  %v1499_v39 = vsel %vm510_vm4, %v5501_v15, -inf  ;;  %v1500_v54 = vsel %vm510_vm4, %v1494_v36, -inf  ;;  %v1158_v32 = vmax.f32 %v1156_v8, %v1157_v58  ;;  %v7225_v36 = vld [vmem:[#allocation94_spill] sm:$0xff]  ;;  %v7227_v58 = vld [vmem:[#allocation121_spill] sm:$0xff] }
 0x53a   : > { %v1216_v34 = vrot.slane %v1215_v40, 1  ;;  %v1275_v23 = vrot.slane %v1274_v37, 1  ;;  %v1448_v56 = vrot.slane %v1447_v2, 4  ;;  %v1334_v35 = vrot.slane %v1333_v16, 1 }
 0x53b   : > { %v1393_v20 = vrot.slane %v1392_v52, 1  ;;  %v1501_v29 = vmax.f32 %v5213_v59, %v1500_v54  ;;  %v1503_v14 = vmax.f32 %v5084_v30, %v1502_v25  ;;  %vm6986_vm6 = vcmp.eq.s32.totalorder %v7222_v19, 1 }
 0x53c   : > { %vm6990_vm9 = vcmp.eq.s32.totalorder %v7223_v27, 1  ;;  %v1217_v18 = vmax.f32 %v1215_v40, %v1216_v34  ;;  %v1276_v5 = vmax.f32 %v1274_v37, %v1275_v23  ;;  %v1449_v15 = vmax.f32 %v1447_v2, %v1448_v56  ;;  %v7229_v56 = vld [vmem:[#allocation99_spill] sm:$0xff] }
 0x53d   : > { %v1552_v7 = vsel %vm6977_vm15, %v5275_v55, -1e+30  ;;  %vm6985_vm8 = vcmp.eq.s32.totalorder %v7224_v49, 1  ;;  %v1335_v42 = vmax.f32 %v1333_v16, %v1334_v35  ;;  %v1504_v41 = vmax.f32 %v1501_v29, %v1503_v14  ;;  %v7230_v29 = vld [vmem:[#allocation120_spill] sm:$0xff] }
 0x53e   : > { %v1505_v8 = vmax.f32 %v5106_v21, %v1499_v39  ;;  %v1553_v59 = vsel %vm6979_vm2, %v5334_v43, -1e+30  ;;  %v1450_v30 = vrot.slane %v1449_v15, 2  ;;  %v1558_v48 = vsel %vm510_vm4, %v1552_v7, -inf  ;;  %v7226_v21 = vld [vmem:[#allocation93_spill] sm:$0xff] }
 0x53f   : > { %v1559_v51 = vsel %vm510_vm4, %v1553_v59, -inf  ;;  %v1562_v24 = vmax.f32 %v5095_v3, %v1561_v17  ;;  %v1394_v63 = vmax.f32 %v1392_v52, %v1393_v20  ;;  %v2045_v0 = vsel %vm2044_vm5, %v1158_v32, %v1217_v18  ;;  %v7228_v3 = vld [vmem:[#allocation78_spill] sm:$0xff]  ;;  %v7231_v18 = vld [vmem:[#allocation123_spill] sm:$0xff] }
 0x540   : > { %v1506_v57 = vmax.f32 %v1504_v41, %v1505_v8  ;;  %v1560_v4 = vmax.f32 %v5216_v6, %v1559_v51  ;;  %vm6987_vm15 = vcmp.eq.s32.totalorder %v7225_v36, 1  ;;  %vm6989_vm12 = vcmp.eq.s32.totalorder %v7226_v21, 1  ;;  %v7233_v59 = vld [vmem:[#allocation103_spill] sm:$0xff] }
 0x541   : > { %v1451_v25 = vmax.f32 %v1449_v15, %v1450_v30  ;;  %v1564_v13 = vmax.f32 %v7227_v58, %v1558_v48  ;;  %v2047_v11 = vsel %vm2046_vm7, %v2045_v0, %v1276_v5  ;;  %v1611_v1 = vsel %vm6980_vm14, %v5275_v55, -1e+30  ;;  %v7232_v15 = vld [vmem:[#allocation90_spill] sm:$0xff] }
 0x542   : > { %vm6988_vm2 = vcmp.eq.s32.totalorder %v7228_v3, 1  ;;  %v1507_v17 = vrot.slane %v1506_v57, 4  ;;  %v1563_v40 = vmax.f32 %v1560_v4, %v1562_v24  ;;  %v2049_v6 = vsel %vm2048_vm11, %v2047_v11, %v1335_v42 }
 0x543   : > { %v1612_v37 = vsel %vm6981_vm3, %v5334_v43, -1e+30  ;;  %v1452_v2 = vrot.slane %v1451_v25, 1  ;;  %v2051_v16 = vsel %vm2050_vm10, %v2049_v6, %v1394_v63  ;;  %v1613_v52 = vsel %vm6982_vm13, %v5422_v22, -1e+30 }
 0x544   : > { %v1617_v39 = vsel %vm510_vm4, %v1611_v1, -inf  ;;  %v1508_v54 = vmax.f32 %v1506_v57, %v1507_v17  ;;  %v1565_v32 = vmax.f32 %v1563_v40, %v1564_v13  ;;  %v1618_v34 = vsel %vm510_vm4, %v1612_v37, -inf  ;;  %v7236_v13 = vld [vmem:[#allocation122_spill] sm:$0xff]  ;;  %v7237_v1 = vld [vmem:[#allocation113_spill] sm:$0xff] }
 0x545   : > { %v1620_v23 = vsel %vm510_vm4, %v1613_v52, -inf  ;;  %vm1782_vm14 = vcmp.eq.s32.totalorder %v7229_v56, 1  ;;  %v1453_v35 = vmax.f32 %v1451_v25, %v1452_v2  ;;  %v1619_v20 = vmax.f32 %v5279_v33, %v1618_v34  ;;  %v7235_v25 = vld [vmem:[#allocation114_spill] sm:$0xff]  ;;  %v7238_v40 = vld [vmem:[#allocation105_spill] sm:$0xff]  ;;  %v7239_v52 = vld [vmem:[#allocation108_spill] sm:$0xff] }
 0x546   : > { %v1621_v14 = vmax.f32 %v7230_v29, %v1620_v23  ;;  %v1623_v5 = vmax.f32 %v7231_v18, %v1617_v39  ;;  %vm1783_vm3 = vcmp.eq.s32.totalorder %v7232_v15, 1  ;;  %v1509_v7 = vrot.slane %v1508_v54, 2  ;;  %v7240_v39 = vld [vmem:[#allocation96_spill] sm:$0xff] }
 0x547   : > { %v1566_v42 = vrot.slane %v1565_v32, 4  ;;  %v1670_v41 = vsel %vm6990_vm9, %v5275_v55, -1e+30  ;;  %v1671_v8 = vsel %vm6986_vm6, %v5334_v43, -1e+30  ;;  %vm7018_vm13 = vcmp.eq.s32.totalorder %v7233_v59, 1 }
 0x548   : > { %vm7016_vm0 = vcmask 1046528   ;;  %vm7234_vm1 = vcmask 1044480   ;;  %v1622_v30 = vmax.f32 %v1619_v20, %v1621_v14  ;;  %v1672_v48 = vsel %vm6985_vm8, %v5422_v22, -1e+30  ;;  %v7337_v59 = vld [vmem:[#allocation54_spill] sm:$0xff] }
 0x549   : > { %v2052_v33 = vsel %vm7234_vm1, %v2051_v16, %v1453_v35  ;;  %v1676_v51 = vsel %vm510_vm4, %v1670_v41, -inf  ;;  %v1510_v24 = vmax.f32 %v1508_v54, %v1509_v7  ;;  %v1567_v63 = vmax.f32 %v1565_v32, %v1566_v42  ;;  %v7241_v7 = vld [vmem:[#allocation132_spill] sm:$0xff]  ;;  %v7242_v41 = vld [vmem:[#allocation125_spill] sm:$0xff] }
 0x54a   : > { %v1677_v57 = vsel %vm510_vm4, %v1671_v8, -inf  ;;  %v1679_v4 = vsel %vm510_vm4, %v1672_v48, -inf  ;;  %v1624_v0 = vmax.f32 %v1622_v30, %v1623_v5  ;;  %v1682_v17 = vmax.f32 %v7237_v1, %v1676_v51  ;;  %v5638_v30 = vpop.permute.xlu1 %2066 }
 0x54b   : > { %v1678_v58 = vmax.f32 %v7235_v25, %v1677_v57  ;;  %v1680_v11 = vmax.f32 %v7236_v13, %v1679_v4  ;;  %vm6999_vm1 = vcmp.eq.s32.totalorder %v7238_v40, 1  ;;  %v1511_v6 = vrot.slane %v1510_v24, 1  ;;  %7243 = vst [vmem:[#allocation50_spill] sm:$0xff] %v5638_v30  ;;  %v7245_v57 = vld [vmem:[#allocation127_spill] sm:$0xff]  ;;  %v7247_v25 = vld [vmem:[#allocation102_spill] sm:$0xff] }
 0x54c   : > { %v1568_v37 = vrot.slane %v1567_v63, 2  ;;  %v1729_v2 = vsel %vm6989_vm12, %v5275_v55, -1e+30  ;;  %v1730_v16 = vsel %vm6987_vm15, %v5334_v43, -1e+30  ;;  %vm6997_vm8 = vcmp.eq.s32.totalorder %v7239_v52, 1 }
 0x54d   : > { %vm6998_vm6 = vcmp.eq.s32.totalorder %v7240_v39, 1  ;;  %v1625_v54 = vrot.slane %v1624_v0, 4  ;;  %v1681_v32 = vmax.f32 %v1678_v58, %v1680_v11  ;;  %v1731_v34 = vsel %vm6988_vm2, %v5422_v22, -1e+30 }
 0x54e   : > { %v1735_v23 = vsel %vm510_vm4, %v1729_v2, -inf  ;;  %v1512_v35 = vmax.f32 %v1510_v24, %v1511_v6  ;;  %v1569_v20 = vmax.f32 %v1567_v63, %v1568_v37  ;;  %v1736_v29 = vsel %vm510_vm4, %v1730_v16, -inf  ;;  %v7246_v63 = vld [vmem:[#allocation110_spill] sm:$0xff] }
 0x54f   : > { %v1738_v14 = vsel %vm510_vm4, %v1731_v34, -inf  ;;  %v1626_v18 = vmax.f32 %v1624_v0, %v1625_v54  ;;  %v1683_v5 = vmax.f32 %v1681_v32, %v1682_v17  ;;  %v1737_v42 = vmax.f32 %v7241_v7, %v1736_v29  ;;  %v7248_v0 = vld [vmem:[#allocation117_spill] sm:$0xff] }
 0x550   : > { %v1739_v8 = vmax.f32 %v7242_v41, %v1738_v14  ;;  %v1570_v48 = vrot.slane %v1569_v20, 1  ;;  %vm7244_vm15 = vcmask 1045504   ;;  %v1741_v4 = vmax.f32 %v7245_v57, %v1735_v23  ;;  %v7249_v23 = vld [vmem:[#allocation136_spill] sm:$0xff] }
 0x551   : > { %v2053_v51 = vsel %vm7244_vm15, %v2052_v33, %v1512_v35  ;;  %v1788_v24 = vsel %vm1782_vm14, %v5275_v55, -1e+30  ;;  %vm6993_vm2 = vcmp.eq.s32.totalorder %v7246_v63, 1  ;;  %vm6994_vm12 = vcmp.eq.s32.totalorder %v7247_v25, 1 }
 0x552   : > { %vm6995_vm9 = vcmp.eq.s32.totalorder %v7248_v0, 1  ;;  %v1627_v58 = vrot.slane %v1626_v18, 2  ;;  %v1684_v13 = vrot.slane %v1683_v5, 4  ;;  %v1740_v11 = vmax.f32 %v1737_v42, %v1739_v8  ;;  %v7252_v8 = vld [vmem:[#allocation128_spill] sm:$0xff] }
 0x553   : > { %v1789_v1 = vsel %vm1783_vm3, %v5334_v43, -1e+30  ;;  %v2038_v33 = vrot.slane %v5513_v12, 4  ;;  %v1571_v17 = vmax.f32 %v1569_v20, %v1570_v48  ;;  %v1790_v6 = vsel %vm7018_vm13, %v5422_v22, -1e+30 }
 0x554   : > { %v1795_v37 = vsel %vm510_vm4, %v1789_v1, -inf  ;;  %vm7015_vm15 = vcmp.eq.s32.totalorder %v5638_v30, 1  ;;  %v1685_v2 = vmax.f32 %v1683_v5, %v1684_v13  ;;  %v1742_v16 = vmax.f32 %v1740_v11, %v1741_v4  ;;  %v7250_v5 = vld [vmem:[#allocation5_spill] sm:$0xff]  ;;  %v7335_v30 = vld [vmem:[#allocation48_spill] sm:$0xff] }
 0x555   : > { %v1794_v54 = vsel %vm510_vm4, %v1788_v24, -inf  ;;  %v2055_v32 = vsel %vm7016_vm0, %v2053_v51, %v1571_v17  ;;  %v1628_v34 = vmax.f32 %v1626_v18, %v1627_v58  ;;  %v1796_v35 = vmax.f32 %v7249_v23, %v1795_v37  ;;  %v7253_v58 = vld [vmem:[#allocation130_spill] sm:$0xff]  ;;  %v7254_v23 = vld [vmem:[#allocation31_spill] sm:$0xff] }
 0x556   : > { %v1797_v29 = vsel %vm510_vm4, %v1790_v6, -inf  ;;  %v2073_v20 = vsel %vm7015_vm15, %v2055_v32, 0.0  ;;  %v1686_v14 = vrot.slane %v1685_v2, 2  ;;  %v1743_v7 = vrot.slane %v1742_v16, 4 }
 0x557   : > { %v1847_v42 = vsel %vm6999_vm1, %v5275_v55, -1e+30  ;;  %v5667_v41 = vadd.f32 %v2073_v20, %v7250_v5  ;;  %v1798_v48 = vmax.f32 %v7252_v8, %v1797_v29  ;;  %v1848_v18 = vsel %vm6998_vm6, %v5334_v43, -1e+30  ;;  %v7255_v20 = vld [vmem:[#allocation129_spill] sm:$0xff] }
 0x558   : > { %v1849_v51 = vsel %vm6997_vm8, %v5422_v22, -1e+30  ;;  %v1979_v57 = vrot.slane %v5534_v44, 4  ;;  %v1687_v4 = vmax.f32 %v1685_v2, %v1686_v14  ;;  %v1744_v24 = vmax.f32 %v1742_v16, %v1743_v7  ;;  %v7256_v8 = vld [vmem:[#allocation133_spill] sm:$0xff] }
 0x559   : > { %7251 = vst [vmem:[#allocation66_spill] sm:$0xff] %v5667_v41  ;;  %v1800_v13 = vmax.f32 %v7253_v58, %v1794_v54  ;;  %3682 = vmatmul.msk.f32.vlgmr.msrb.gmra.mxu3 %vm510_vm4, %v5667_v41  ;;  %v1799_v11 = vmax.f32 %v1796_v35, %v1798_v48  ;;  %v1853_v1 = vsel %vm510_vm4, %v1847_v42, -inf  ;;  %v1854_v17 = vsel %vm510_vm4, %v1848_v18, -inf  ;;  %v7333_v41 = vld [vmem:[#allocation67_spill] sm:$0xff] }
 0x55a   : > { %v1856_v6 = vsel %vm510_vm4, %v1849_v51, -inf  ;;  %v1629_v37 = vrot.slane %v1628_v34, 1  ;;  %v1745_v32 = vrot.slane %v1744_v24, 2  ;;  %v1855_v29 = vmax.f32 %v7254_v23, %v1854_v17 }
 0x55b   : > { %v1857_v5 = vmax.f32 %v7255_v20, %v1856_v6  ;;  %v1801_v2 = vmax.f32 %v1799_v11, %v1800_v13  ;;  %v1906_v16 = vsel %vm6995_vm9, %v5275_v55, -1e+30  ;;  %v1907_v54 = vsel %vm6994_vm12, %v5334_v43, -1e+30  ;;  %v7257_v43 = vld [vmem:[#allocation137_spill] sm:$0xff]  ;;  %v7258_v6 = vld [vmem:[#allocation131_spill] sm:$0xff] }
 0x55c   : > { %v1908_v35 = vsel %vm6993_vm2, %v5422_v22, -1e+30  ;;  %v1688_v14 = vrot.slane %v1687_v4, 1  ;;  %v1746_v7 = vmax.f32 %v1744_v24, %v1745_v32  ;;  %v1859_v48 = vmax.f32 %v7256_v8, %v1853_v1 }
 0x55d   : > { %v1858_v42 = vmax.f32 %v1855_v29, %v1857_v5  ;;  %v1802_v18 = vrot.slane %v1801_v2, 4  ;;  %v1912_v51 = vsel %vm510_vm4, %v1906_v16, -inf  ;;  %v1913_v58 = vsel %vm510_vm4, %v1907_v54, -inf  ;;  %v7259_v16 = vld [vmem:[#allocation134_spill] sm:$0xff] }
 0x55e   : > { %v1915_v55 = vsel %vm510_vm4, %v1908_v35, -inf  ;;  %v2039_v13 = vmax.f32 %v5513_v12, %v2038_v33  ;;  %v1914_v17 = vmax.f32 %v7257_v43, %v1913_v58  ;;  %v1980_v22 = vmax.f32 %v5534_v44, %v1979_v57 }
 0x55f   : > { %v1860_v11 = vmax.f32 %v1858_v42, %v1859_v48  ;;  %v1916_v23 = vmax.f32 %v7258_v6, %v1915_v55  ;;  %v1630_v24 = vmax.f32 %v1628_v34, %v1629_v37  ;;  %v1747_v32 = vrot.slane %v1746_v7, 1 }
 0x560   : > { %v1803_v29 = vmax.f32 %v1801_v2, %v1802_v18  ;;  %v1689_v1 = vmax.f32 %v1687_v4, %v1688_v14  ;;  %v1918_v8 = vmax.f32 %v7259_v16, %v1912_v51  ;;  %v1981_v25 = vrot.slane %v1980_v22, 2 }
 0x561   : > { %v1861_v20 = vrot.slane %v1860_v11, 4  ;;  %v1917_v5 = vmax.f32 %v1914_v17, %v1916_v23  ;;  %v1748_v12 = vmax.f32 %v1746_v7, %v1747_v32  ;;  %v2040_v42 = vrot.slane %v2039_v13, 2 }
 0x562   : > { %v1804_v54 = vrot.slane %v1803_v29, 2  ;;  %v2056_v55 = vsel %vm2044_vm5, %v1630_v24, %v1689_v1  ;;  %v1982_v37 = vmax.f32 %v1980_v22, %v1981_v25  ;;  %vm7261_vm2 = vcmask 1044480  }
 0x563   : > { %v1862_v63 = vmax.f32 %v1860_v11, %v1861_v20  ;;  %v1919_v35 = vmax.f32 %v1917_v5, %v1918_v8  ;;  %v2057_v4 = vsel %vm2046_vm7, %v2056_v55, %v1748_v12  ;;  %v2041_v2 = vmax.f32 %v2039_v13, %v2040_v42  ;;  %v7263_v5 = vld [vmem:[#allocation6_spill] sm:$0xff]  ;;  %v7265_v12 = vld [vmem:[#allocation13_spill] sm:$0xff]  ;;  %v7269_v42 = vld [vmem:[#allocation15_spill] sm:$0xff] }
 0x564   : > { %v1805_v33 = vmax.f32 %v1803_v29, %v1804_v54  ;;  %v1983_v7 = vrot.slane %v1982_v37, 1  ;;  %v5707_v29 = vpop.permute.xlu0 %2069  ;;  %vm7262_vm12 = vcmask 1045504   ;;  %v7275_v55 = vld [vmem:[#allocation21_spill] sm:$0xff] }
 0x565   : > { %v1863_v48 = vrot.slane %v1862_v63, 2  ;;  %v1920_v58 = vrot.slane %v1919_v35, 4  ;;  %v2042_v23 = vrot.slane %v2041_v2, 1  ;;  %7260 = vst [vmem:[#allocation58_spill] sm:$0xff] %v5707_v29  ;;  %vm6996_vm9 = vcmp.eq.s32.totalorder %v5707_v29, 1 }
 0x566   : > { %v1806_v44 = vrot.slane %v1805_v33, 1 }
 0x567   : > { %v1864_v34 = vmax.f32 %v1862_v63, %v1863_v48  ;;  %v1921_v57 = vmax.f32 %v1919_v35, %v1920_v58  ;;  %v1984_v63 = vmax.f32 %v1982_v37, %v1983_v7  ;;  %v2043_v25 = vmax.f32 %v2041_v2, %v2042_v23  ;;  %v7271_v48 = vld [vmem:[#allocation17_spill] sm:$0xff]  ;;  %v7273_v58 = vld [vmem:[#allocation19_spill] sm:$0xff]  ;;  %v7277_v37 = vld [vmem:[#allocation16_spill] sm:$0xff] }
 0x568   : > { %v1807_v14 = vmax.f32 %v1805_v33, %v1806_v44  ;;  %v7267_v33 = vld [vmem:[#allocation14_spill] sm:$0xff]  ;;  %v7281_v2 = vld [vmem:[#allocation20_spill] sm:$0xff] }
 0x569   : > { %v1865_v18 = vrot.slane %v1864_v34, 1  ;;  %v1922_v51 = vrot.slane %v1921_v57, 2  ;;  %v3811_v23 = vld [vmem:[%s6751_s5 + $0x178] ss:$0 sm:$0xff] }
 0x56a   : > { %v2058_v43 = vsel %vm2048_vm11, %v2057_v4, %v1807_v14  ;;  %v7279_v4 = vld [vmem:[#allocation18_spill] sm:$0xff] }
 0x56b   : > { %v1923_v11 = vmax.f32 %v1921_v57, %v1922_v51  ;;  %v1866_v17 = vmax.f32 %v1864_v34, %v1865_v18  ;;  %v7283_v14 = vld [vmem:[#allocation22_spill] sm:$0xff]  ;;  %v7285_v18 = vld [vmem:[#allocation23_spill] sm:$0xff]  ;;  %v7287_v51 = vld [vmem:[#allocation24_spill] sm:$0xff] }
 0x56d   : > { %v1924_v6 = vrot.slane %v1923_v11, 1  ;;  %v2059_v32 = vsel %vm2050_vm10, %v2058_v43, %v1866_v17  ;;  %v2209_v43 = vpop.f32.mrf.mxu2 }
 0x56f   : > { %v1925_v24 = vmax.f32 %v1923_v11, %v1924_v6 }
 0x571   : > { %v2060_v22 = vsel %vm7261_vm2, %v2059_v32, %v1925_v24  ;;  %vm7266_vm2 = vcmask 130048  }
 0x572   : > { %v2061_v13 = vsel %vm7262_vm12, %v2060_v22, %v1984_v63  ;;  %vm7268_vm12 = vmmov %vm7266_vm2 }
 0x573   : > { %v2062_v1 = vsel %vm7016_vm0, %v2061_v13, %v2043_v25  ;;  %vm7272_vm8 = vmmov %vm7266_vm2 }
 0x574   : > { %v2074_v20 = vsel %vm6996_vm9, %v2062_v1, 0.0  ;;  %vm7270_vm9 = vmmov %vm7266_vm2 }
 0x575   : > { %v5716_v16 = vadd.f32 %v2074_v20, %v7263_v5  ;;  %vm7274_vm6 = vmmov %vm7266_vm2  ;;  %v2212_v32 = vpop.f32.mrf.mxu2 }
 0x576   : > { %vm7276_vm1 = vmmov %vm7266_vm2 }
 0x577   : > { %7264 = vst [vmem:[#allocation56_spill] sm:$0xff] %v5716_v16  ;;  %3683 = vmatmul.msk.f32.gmra.mxu3 %vm510_vm4, %v5716_v16 }
 0x57d   : > { %v2215_v5 = vpop.f32.mrf.mxu2 }
 0x5dc   : > { %v2104_v8 = vpop.f32.mrf.mxu3 }
 0x5fa   : > { %v2107_v54 = vpop.f32.mrf.mxu3 }
 0x5fb   : > { %v3798_v35 = vpack.i.bf16 %v2104_v8, %v2107_v54  ;;  %2167 = vmatpush.msra.mxu3 %v2107_v54 }
 0x5fd   : > { %3799 = vrot.lane.b32.xlu2 %v3798_v35, %s3962_s14  ;;  %2168 = vmatpush.msra.mxu3 %v2104_v8  ;;  %s3519_s14 = scalar_lea.hbm %s6752_s6, %s3742_s9 }
 0x5fe   : > { %3690 = vmatmul.msk.f32.vlgmr.msra.gmra.mxu3 %vm7266_vm2, %v7265_v12  ;;  %vm7278_vm2 = vmmov %vm7276_vm1  ;;  %v7314_v12 = vld [vmem:[#allocation37_spill] sm:$0xff]  ;;  %s3522_s17 = sshll.u32 %s3519_s14, 4  ;;  %s3523_s17 = int_to_ptr.hbm [resolvable:$true] %s3522_s17 }
 0x5ff   : > { %s3911_s21 = sshra.s32 %s3523_s17, 4  ;;  %s3912_s21 = int_to_ptr.hbm [resolvable:$true] %s3911_s21 }
 0x600   : > { %s3913_s22 = scalar_lea.hbm %s3912_s21, 16  ;;  %p3918_p0 = scmp.lt.s32.totalorder %s3912_s21, %s6752_s6 }
 0x601   : > { %p3914_p11 = scmp.ne.s32.totalorder %s3912_s21, %s3913_s22  ;;  %p3919_p1 = scmp.lt.s32.totalorder %s3917_s23, %s3913_s22 }
 0x603   : > { %p3915_p12 = pnand %p3914_p11, %p4045_p5  ;;  %p3920_p2 = por %p3919_p1, %p3918_p0 }
 0x605   : > { %p3916_p13 = pneg %p3915_p12 }
 0x606   : > { %3691 = vmatmul.msk.f32.gmra.mxu3 %vm7268_vm12, %v7267_v33  ;;  %vm7280_vm12 = vmmov %vm7276_vm1 }
 0x607   : > { %p3921_p3 = pnand %p3920_p2, %p3916_p13 }
 0x60e   : > { %3692 = vmatmul.msk.f32.gmra.mxu3 %vm7270_vm9, %v7269_v42  ;;  %vm7282_vm9 = vmmov %vm7276_vm1 }
 0x616   : > { %3693 = vmatmul.msk.f32.gmra.mxu3 %vm7272_vm8, %v7271_v48  ;;  %vm7284_vm8 = vmmov %vm7276_vm1 }
 0x61e   : > { %3694 = vmatmul.msk.f32.gmra.mxu3 %vm7274_vm6, %v7273_v58  ;;  %vm7286_vm6 = vmmov %vm7276_vm1 }
 0x626   : > { %3695 = vmatmul.msk.f32.gmra.mxu3 %vm7276_vm1, %v7275_v55 }
 0x657   : > { %v3800_v44 = vpop.permute.xlu2 %3799 }
 0x658   : > { %v3801_v34 = vunpack.i.l.bf16 %v3800_v44  ;;  %v3802_v57 = vunpack.i.h.bf16 %v3800_v44 }
 0x65a   : > { %2132 = vmatpush.msra.mxu0 %v3801_v34 }
 0x65c   : > { %2133 = vmatpush.msra.mxu0 %v3802_v57 }
 0x65d   : > { %3684 = vmatmul.msk.f32.vlgmr.msra.gmra.mxu0 %vm7278_vm2, %v7277_v37 }
 0x665   : > { %3685 = vmatmul.msk.f32.gmra.mxu0 %vm7280_vm12, %v7279_v4 }
 0x66d   : > { %3686 = vmatmul.msk.f32.gmra.mxu0 %vm7282_vm9, %v7281_v2 }
 0x675   : > { %3687 = vmatmul.msk.f32.gmra.mxu0 %vm7284_vm8, %v7283_v14 }
 0x67d   : > { %3688 = vmatmul.msk.f32.gmra.mxu0 %vm7286_vm6, %v7285_v18 }
 0x681   : > { %v2170_v11 = vpop.f32.mrf.mxu3 }
 0x685   : > { %3689 = vmatmul.msk.f32.gmra.mxu0 %vm7276_vm1, %v7287_v51 }
 0x689   : > { %v2173_v7 = vpop.f32.mrf.mxu3 }
 0x691   : > { %v2176_v1 = vpop.f32.mrf.mxu3 }
 0x699   : > { %v2179_v57 = vpop.f32.mrf.mxu3 }
 0x6da   : > { %v2135_v17 = vpop.f32.mrf.mxu0 }
 0x6db   : > { %v2171_v6 = vadd.f32 %v2170_v11, %v2135_v17  ;;  %v2218_v17 = vpop.f32.mrf.mxu2 }
 0x6dd   : > { %v2227_v24 = vadd.f32 %v2209_v43, %v2171_v6 }
 0x6df   : > { %v2235_v63 = vadd.f32 %v3811_v23, %v2227_v24 }
 0x6e1   : > { %v2243_v25 = vsel %vm510_vm4, %v2235_v63, 0.0 }
 0x6e2   : > { %v2138_v22 = vpop.f32.mrf.mxu0  ;;  %2244 = vadd.xlane.f32.xlu1 %v2243_v25 }
 0x6e3   : > { %v2174_v13 = vadd.f32 %v2173_v7, %v2138_v22  ;;  %v2182_v22 = vpop.f32.mrf.mxu3 }
 0x6e5   : > { %v2228_v20 = vadd.f32 %v2212_v32, %v2174_v13  ;;  %v2221_v13 = vpop.f32.mrf.mxu2 }
 0x6e7   : > { %v2236_v8 = vadd.f32 %v3811_v23, %v2228_v20 }
 0x6e9   : > { %v2246_v54 = vsel %vm510_vm4, %v2236_v8, 0.0 }
 0x6ea   : > { %v2141_v35 = vpop.f32.mrf.mxu0  ;;  %2247 = vadd.xlane.f32.xlu0 %v2246_v54 }
 0x6eb   : > { %v2177_v44 = vadd.f32 %v2176_v1, %v2141_v35  ;;  %v2185_v35 = vpop.f32.mrf.mxu3 }
 0x6ed   : > { %v2229_v34 = vadd.f32 %v2215_v5, %v2177_v44  ;;  %v2224_v55 = vpop.f32.mrf.mxu2 }
 0x6ef   : > { %v2237_v11 = vadd.f32 %v3811_v23, %v2229_v34 }
 0x6f1   : > { %v2249_v43 = vsel %vm510_vm4, %v2237_v11, 0.0 }
 0x6f2   : > { %v2144_v6 = vpop.f32.mrf.mxu0  ;;  %2250 = vadd.xlane.f32.xlu2 %v2249_v43 }
 0x6f3   : > { %v2180_v24 = vadd.f32 %v2179_v57, %v2144_v6 }
 0x6f5   : > { %v2230_v25 = vadd.f32 %v2218_v17, %v2180_v24  ;;  %v7288_v24 = vld [vmem:[#allocation62_spill] sm:$0xff] }
 0x6f7   : > { %v2238_v7 = vadd.f32 %v3811_v23, %v2230_v25 }
 0x6f9   : > { %v2252_v32 = vsel %vm510_vm4, %v2238_v7, 0.0 }
 0x6fa   : > { %v2147_v20 = vpop.f32.mrf.mxu0  ;;  %2253 = vadd.xlane.f32.xlu1 %v2252_v32 }
 0x6fb   : > { %v2183_v51 = vadd.f32 %v2182_v22, %v2147_v20 }
 0x6fd   : > { %v2231_v54 = vadd.f32 %v2221_v13, %v2183_v51 }
 0x6ff   : > { %v2239_v1 = vadd.f32 %v3811_v23, %v2231_v54 }
 0x701   : > { %v2255_v5 = vsel %vm510_vm4, %v2239_v1, 0.0 }
 0x702   : > { %v2150_v44 = vpop.f32.mrf.mxu0  ;;  %2256 = vadd.xlane.f32.xlu0 %v2255_v5 }
 0x703   : > { %v2186_v34 = vadd.f32 %v2185_v35, %v2150_v44 }
 0x705   : > { %v2232_v43 = vadd.f32 %v2224_v55, %v2186_v34 }
 0x707   : > { %v2240_v57 = vadd.f32 %v3811_v23, %v2232_v43 }
 0x709   : > { %v2258_v17 = vsel %vm510_vm4, %v2240_v57, 0.0 }
 0x70a   : > { %2259 = vadd.xlane.f32.xlu2 %v2258_v17 }
 0x755   : > { %v2245_v6 = vpop.xlane.xlu1 %2244 }
 0x756   : > { %v2261_v25 = vmul.f32 %v2245_v6, %v7288_v24 }
 0x758   : > { %v5755_v18 = vsub.f32 %v2235_v63, %v2261_v25 }
 0x75a   : > { %v2273_v51 = vmul.f32 %v5755_v18, %v5755_v18 }
 0x75c   : > { %v2279_v22 = vsel %vm510_vm4, %v2273_v51, 0.0 }
 0x75d   : > { %v2248_v32 = vpop.xlane.xlu0 %2247  ;;  %2280 = vadd.xlane.f32.xlu1 %v2279_v22 }
 0x75e   : > { %v2262_v13 = vmul.f32 %v2248_v32, %v7288_v24 }
 0x760   : > { %v5761_v20 = vsub.f32 %v2236_v8, %v2262_v13 }
 0x762   : > { %v2274_v55 = vmul.f32 %v5761_v20, %v5761_v20 }
 0x764   : > { %v2282_v23 = vsel %vm510_vm4, %v2274_v55, 0.0 }
 0x765   : > { %v2251_v54 = vpop.xlane.xlu2 %2250  ;;  %2283 = vadd.xlane.f32.xlu0 %v2282_v23 }
 0x766   : > { %v2263_v63 = vmul.f32 %v2251_v54, %v7288_v24 }
 0x768   : > { %v5767_v5 = vsub.f32 %v2237_v11, %v2263_v63 }
 0x76a   : > { %v2275_v35 = vmul.f32 %v5767_v5, %v5767_v5 }
 0x76c   : > { %v2285_v44 = vsel %vm510_vm4, %v2275_v35, 0.0 }
 0x76d   : > { %2286 = vadd.xlane.f32.xlu2 %v2285_v44  ;;  %v2254_v34 = vpop.xlane.xlu1 %2253  ;;  %v2398_v44 = vld [vmem:[%s6751_s5 + $0xc8] sm:$0xff] }
 0x76e   : > { %v2264_v8 = vmul.f32 %v2254_v34, %v7288_v24  ;;  %2431 = vmatpush.msra.mxu1 %v2398_v44 }
 0x770   : > { %v5773_v43 = vsub.f32 %v2238_v7, %v2264_v8 }
 0x772   : > { %v2276_v17 = vmul.f32 %v5773_v43, %v5773_v43 }
 0x774   : > { %v2288_v6 = vsel %vm510_vm4, %v2276_v17, 0.0 }
 0x775   : > { %v2257_v25 = vpop.xlane.xlu0 %2256  ;;  %2289 = vadd.xlane.f32.xlu1 %v2288_v6 }
 0x776   : > { %v2265_v11 = vmul.f32 %v2257_v25, %v7288_v24 }
 0x778   : > { %v5779_v51 = vsub.f32 %v2239_v1, %v2265_v11  ;;  %v2397_v11 = vld [vmem:[%s6751_s5 + $0xc0] sm:$0xff] }
 0x779   : > { %2432 = vmatpush.msra.mxu1 %v2397_v11 }
 0x77a   : > { %v2277_v22 = vmul.f32 %v5779_v51, %v5779_v51 }
 0x77c   : > { %v2291_v32 = vsel %vm510_vm4, %v2277_v22, 0.0  ;;  %v2396_v22 = vld [vmem:[%s6751_s5 + $0xb8] sm:$0xff] }
 0x77d   : > { %v2260_v13 = vpop.xlane.xlu2 %2259  ;;  %2292 = vadd.xlane.f32.xlu0 %v2291_v32  ;;  %2433 = vmatpush.msra.mxu1 %v2396_v22  ;;  %v5814_v22 = vld [vmem:[%s6751_s5 + $0x17a] ss:$0 sm:$0xff] }
 0x77e   : > { %v2266_v7 = vmul.f32 %v2260_v13, %v7288_v24 }
 0x780   : > { %v5785_v55 = vsub.f32 %v2240_v57, %v2266_v7  ;;  %v2395_v7 = vld [vmem:[%s6751_s5 + $0xb0] sm:$0xff] }
 0x781   : > { %2434 = vmatpush.msra.mxu1 %v2395_v7 }
 0x782   : > { %v2278_v23 = vmul.f32 %v5785_v55, %v5785_v55 }
 0x784   : > { %v2294_v54 = vsel %vm510_vm4, %v2278_v23, 0.0 }
 0x785   : > { %2295 = vadd.xlane.f32.xlu2 %v2294_v54 }
 0x7d0   : > { %v2281_v63 = vpop.xlane.xlu1 %2280 }
 0x7d1   : > { %v2297_v1 = vmul.f32 %v2281_v63, %v7288_v24 }
 0x7d3   : > { %v2303_v35 = vadd.f32 1e-05, %v2297_v1 }
 0x7d5   : > { %3851 = vrsqrt.f32 %v2303_v35  ;;  %vm2315_vm12 = vweird.f32 %v2303_v35 }
 0x7d8   : > { %v2284_v34 = vpop.xlane.xlu0 %2283 }
 0x7d9   : > { %v2298_v57 = vmul.f32 %v2284_v34, %v7288_v24 }
 0x7db   : > { %v3852_v8 = vpop.eup %3851  ;;  %v2304_v17 = vadd.f32 1e-05, %v2298_v57  ;;  %v5808_v57 = vld [vmem:[%s6751_s5 + $0x179] ss:$0 sm:$0xff] }
 0x7dc   : > { %v2310_v6 = vmul.f32 %v3852_v8, %v2303_v35  ;;  %vm2316_vm2 = vweird.f32 %v3852_v8 }
 0x7dd   : > { %3853 = vrsqrt.f32 %v2304_v17  ;;  %vm2317_vm9 = vmor %vm2315_vm12, %vm2316_vm2  ;;  %vm2325_vm6 = vweird.f32 %v2304_v17 }
 0x7de   : > { %v2311_v25 = vmul.f32 %v3852_v8, %v2310_v6 }
 0x7e0   : > { %v2312_v32 = vmul.f32 0.5, %v2311_v25  ;;  %v2287_v13 = vpop.xlane.xlu2 %2286 }
 0x7e1   : > { %v2299_v23 = vmul.f32 %v2287_v13, %v7288_v24 }
 0x7e2   : > { %v2313_v54 = vsub.f32 1.5, %v2312_v32 }
 0x7e3   : > { %v3854_v63 = vpop.eup %3853  ;;  %v2305_v1 = vadd.f32 1e-05, %v2299_v23 }
 0x7e4   : > { %v2314_v44 = vmul.f32 %v3852_v8, %v2313_v54  ;;  %v2320_v34 = vmul.f32 %v3854_v63, %v2304_v17  ;;  %vm2326_vm8 = vweird.f32 %v3854_v63 }
 0x7e5   : > { %3855 = vrsqrt.f32 %v2305_v1  ;;  %vm2327_vm1 = vmor %vm2325_vm6, %vm2326_vm8  ;;  %vm2335_vm12 = vweird.f32 %v2305_v1 }
 0x7e6   : > { %v2318_v6 = vsel %vm2317_vm9, %v3852_v8, %v2314_v44  ;;  %v2321_v25 = vmul.f32 %v3854_v63, %v2320_v34 }
 0x7e7   : > { %v2369_v11 = vmul.f32 %v2318_v6, %v5755_v18 }
 0x7e8   : > { %v2322_v32 = vmul.f32 0.5, %v2321_v25  ;;  %v2290_v13 = vpop.xlane.xlu1 %2289 }
 0x7e9   : > { %v2376_v35 = vmul.f32 %v5808_v57, %v2369_v11  ;;  %v2300_v7 = vmul.f32 %v2290_v13, %v7288_v24 }
 0x7ea   : > { %v2323_v23 = vsub.f32 1.5, %v2322_v32 }
 0x7eb   : > { %v3856_v54 = vpop.eup %3855  ;;  %v2306_v58 = vadd.f32 1e-05, %v2300_v7  ;;  %v2383_v8 = vadd.f32 %v5814_v22, %v2376_v35 }
 0x7ec   : > { %v2324_v44 = vmul.f32 %v3854_v63, %v2323_v23  ;;  %v2330_v18 = vmul.f32 %v3856_v54, %v2305_v1  ;;  %vm2336_vm2 = vweird.f32 %v3856_v54 }
 0x7ed   : > { %3857 = vrsqrt.f32 %v2306_v58  ;;  %v2389_v34 = vmax.f32 %v2383_v8, 0.0  ;;  %vm2337_vm9 = vmor %vm2335_vm12, %vm2336_vm2  ;;  %vm2345_vm6 = vweird.f32 %v2306_v58 }
 0x7ee   : > { %v2328_v6 = vsel %vm2327_vm1, %v3854_v63, %v2324_v44  ;;  %v2331_v14 = vmul.f32 %v3856_v54, %v2330_v18 }
 0x7ef   : > { %3702 = vmatmul.msk.f32.vlgmr.msra.gmra.mxu1 %vm510_vm4, %v2389_v34  ;;  %v2370_v25 = vmul.f32 %v2328_v6, %v5761_v20 }
 0x7f0   : > { %v2332_v11 = vmul.f32 0.5, %v2331_v14  ;;  %v2293_v13 = vpop.xlane.xlu0 %2292 }
 0x7f1   : > { %v2301_v32 = vmul.f32 %v2293_v13, %v7288_v24  ;;  %v2377_v7 = vmul.f32 %v5808_v57, %v2370_v25 }
 0x7f2   : > { %v2333_v48 = vsub.f32 1.5, %v2332_v11 }
 0x7f3   : > { %v3858_v35 = vpop.eup %3857  ;;  %v2307_v17 = vadd.f32 1e-05, %v2301_v32  ;;  %v2384_v23 = vadd.f32 %v5814_v22, %v2377_v7 }
 0x7f4   : > { %v2334_v2 = vmul.f32 %v3856_v54, %v2333_v48  ;;  %v2340_v63 = vmul.f32 %v3858_v35, %v2306_v58  ;;  %vm2346_vm8 = vweird.f32 %v3858_v35 }
 0x7f5   : > { %3859 = vrsqrt.f32 %v2307_v17  ;;  %v2390_v8 = vmax.f32 %v2384_v23, 0.0  ;;  %vm2347_vm1 = vmor %vm2345_vm6, %vm2346_vm8  ;;  %vm2355_vm12 = vweird.f32 %v2307_v17 }
 0x7f6   : > { %v2338_v44 = vsel %vm2337_vm9, %v3856_v54, %v2334_v2  ;;  %v2341_v20 = vmul.f32 %v3858_v35, %v2340_v63 }
 0x7f7   : > { %3703 = vmatmul.msk.f32.gmra.mxu1 %vm510_vm4, %v2390_v8  ;;  %v2371_v14 = vmul.f32 %v2338_v44, %v5767_v5 }
 0x7f8   : > { %v2342_v18 = vmul.f32 0.5, %v2341_v20  ;;  %v2296_v34 = vpop.xlane.xlu2 %2295 }
 0x7f9   : > { %v2302_v6 = vmul.f32 %v2296_v34, %v7288_v24  ;;  %v2378_v25 = vmul.f32 %v5808_v57, %v2371_v14 }
 0x7fa   : > { %v2343_v11 = vsub.f32 1.5, %v2342_v18 }
 0x7fb   : > { %v3860_v48 = vpop.eup %3859  ;;  %v2308_v1 = vadd.f32 1e-05, %v2302_v6  ;;  %v2385_v13 = vadd.f32 %v5814_v22, %v2378_v25 }
 0x7fc   : > { %v2344_v32 = vmul.f32 %v3858_v35, %v2343_v11  ;;  %v2350_v2 = vmul.f32 %v3860_v48, %v2307_v17  ;;  %vm2356_vm2 = vweird.f32 %v3860_v48 }
 0x7fd   : > { %3861 = vrsqrt.f32 %v2308_v1  ;;  %v2391_v54 = vmax.f32 %v2385_v13, 0.0  ;;  %vm2357_vm9 = vmor %vm2355_vm12, %vm2356_vm2  ;;  %vm2365_vm6 = vweird.f32 %v2308_v1 }
 0x7fe   : > { %v2348_v7 = vsel %vm2347_vm1, %v3858_v35, %v2344_v32  ;;  %v2351_v5 = vmul.f32 %v3860_v48, %v2350_v2 }
 0x7ff   : > { %3704 = vmatmul.msk.f32.gmra.mxu1 %vm510_vm4, %v2391_v54  ;;  %v2372_v23 = vmul.f32 %v2348_v7, %v5773_v43 }
 0x800   : > { %v2352_v63 = vmul.f32 0.5, %v2351_v5 }
 0x801   : > { %v2379_v8 = vmul.f32 %v5808_v57, %v2372_v23  ;;  %v3814_v23 = vld [vmem:[%s6751_s5 + $0x17b] ss:$0 sm:$0xff] }
 0x802   : > { %v2353_v44 = vsub.f32 1.5, %v2352_v63 }
 0x803   : > { %v3862_v20 = vpop.eup %3861  ;;  %v2386_v14 = vadd.f32 %v5814_v22, %v2379_v8 }
 0x804   : > { %v2354_v18 = vmul.f32 %v3860_v48, %v2353_v44  ;;  %v2360_v58 = vmul.f32 %v3862_v20, %v2308_v1  ;;  %vm2366_vm8 = vweird.f32 %v3862_v20 }
 0x805   : > { %v2392_v34 = vmax.f32 %v2386_v14, 0.0  ;;  %vm2367_vm1 = vmor %vm2365_vm6, %vm2366_vm8 }
 0x806   : > { %v2358_v6 = vsel %vm2357_vm9, %v3860_v48, %v2354_v18  ;;  %v2361_v35 = vmul.f32 %v3862_v20, %v2360_v58 }
 0x807   : > { %3705 = vmatmul.msk.f32.gmra.mxu1 %vm510_vm4, %v2392_v34  ;;  %v2373_v25 = vmul.f32 %v2358_v6, %v5779_v51 }
 0x808   : > { %v2362_v43 = vmul.f32 0.5, %v2361_v35 }
 0x809   : > { %v2380_v11 = vmul.f32 %v5808_v57, %v2373_v25 }
 0x80a   : > { %v2363_v13 = vsub.f32 1.5, %v2362_v43 }
 0x80b   : > { %v2387_v32 = vadd.f32 %v5814_v22, %v2380_v11 }
 0x80c   : > { %v2364_v2 = vmul.f32 %v3862_v20, %v2363_v13 }
 0x80d   : > { %v2393_v17 = vmax.f32 %v2387_v32, 0.0 }
 0x80e   : > { %v2368_v54 = vsel %vm2367_vm1, %v3862_v20, %v2364_v2 }
 0x80f   : > { %3706 = vmatmul.msk.f32.gmra.mxu1 %vm510_vm4, %v2393_v17  ;;  %v2374_v48 = vmul.f32 %v2368_v54, %v5785_v55 }
 0x811   : > { %v2381_v7 = vmul.f32 %v5808_v57, %v2374_v48 }
 0x813   : > { %v2388_v51 = vadd.f32 %v5814_v22, %v2381_v7 }
 0x815   : > { %v2394_v5 = vmax.f32 %v2388_v51, 0.0 }
 0x817   : > { %3707 = vmatmul.msk.f32.gmra.mxu1 %vm510_vm4, %v2394_v5 }
 0x86c   : > { %v2436_v63 = vpop.f32.mrf.mxu1 }
 0x86d   : > { %v2437_v1 = vadd.f32 %v3814_v23, %v2436_v63 }
 0x86f   : > { %v2456_v8 = vsel %vm510_vm4, %v2437_v1, 0.0 }
 0x870   : > { %2457 = vadd.xlane.f32.xlu1 %v2456_v8 }
 0x874   : > { %v2439_v44 = vpop.f32.mrf.mxu1 }
 0x875   : > { %v2440_v20 = vadd.f32 %v3814_v23, %v2439_v44 }
 0x877   : > { %v2459_v55 = vsel %vm510_vm4, %v2440_v20, 0.0 }
 0x878   : > { %2460 = vadd.xlane.f32.xlu0 %v2459_v55 }
 0x87c   : > { %v2442_v57 = vpop.f32.mrf.mxu1 }
 0x87d   : > { %v2443_v14 = vadd.f32 %v3814_v23, %v2442_v57 }
 0x87f   : > { %v2462_v22 = vsel %vm510_vm4, %v2443_v14, 0.0 }
 0x880   : > { %2463 = vadd.xlane.f32.xlu0 %v2462_v22 }
 0x884   : > { %v2445_v18 = vpop.f32.mrf.mxu1 }
 0x885   : > { %v2446_v35 = vadd.f32 %v3814_v23, %v2445_v18 }
 0x887   : > { %v2465_v13 = vsel %vm510_vm4, %v2446_v35, 0.0 }
 0x88c   : > { %v2448_v58 = vpop.f32.mrf.mxu1 }
 0x88d   : > { %v2449_v34 = vadd.f32 %v3814_v23, %v2448_v58 }
 0x88f   : > { %v2468_v6 = vsel %vm510_vm4, %v2449_v34, 0.0 }
 0x890   : > { %2469 = vadd.xlane.f32.xlu2 %v2468_v6 }
 0x894   : > { %v2451_v25 = vpop.f32.mrf.mxu1 }
 0x895   : > { %v2452_v43 = vadd.f32 %v3814_v23, %v2451_v25 }
 0x897   : > { %v2471_v11 = vsel %vm510_vm4, %v2452_v43, 0.0 }
 0x898   : > { %2472 = vadd.xlane.f32.xlu1 %v2471_v11  ;;  %2466 = vadd.xlane.f32.xlu2 %v2465_v13 }
 0x8e3   : > { %v2458_v32 = vpop.xlane.xlu1 %2457 }
 0x8e4   : > { %v2474_v2 = vmul.f32 %v2458_v32, %v7288_v24 }
 0x8e6   : > { %v2480_v17 = vsub.f32 %v2437_v1, %v2474_v2 }
 0x8e8   : > { %v2486_v54 = vmul.f32 %v2480_v17, %v2480_v17 }
 0x8ea   : > { %v2492_v48 = vsel %vm510_vm4, %v2486_v54, 0.0 }
 0x8eb   : > { %v2461_v7 = vpop.xlane.xlu0 %2460  ;;  %2493 = vadd.xlane.f32.xlu1 %v2492_v48 }
 0x8ec   : > { %v2475_v51 = vmul.f32 %v2461_v7, %v7288_v24 }
 0x8ee   : > { %v5854_v5 = vsub.f32 %v2440_v20, %v2475_v51 }
 0x8f0   : > { %v2487_v23 = vmul.f32 %v5854_v5, %v5854_v5 }
 0x8f2   : > { %v2495_v63 = vsel %vm510_vm4, %v2487_v23, 0.0 }
 0x8f3   : > { %2496 = vadd.xlane.f32.xlu0 %v2495_v63  ;;  %v2464_v8 = vpop.xlane.xlu0 %2463 }
 0x8f4   : > { %v2476_v44 = vmul.f32 %v2464_v8, %v7288_v24 }
 0x8f6   : > { %v5860_v55 = vsub.f32 %v2443_v14, %v2476_v44 }
 0x8f8   : > { %v2488_v1 = vmul.f32 %v5860_v55, %v5860_v55 }
 0x8fa   : > { %v2498_v57 = vsel %vm510_vm4, %v2488_v1, 0.0 }
 0x8fb   : > { %2499 = vadd.xlane.f32.xlu0 %v2498_v57 }
 0x903   : > { %v2470_v22 = vpop.xlane.xlu2 %2469 }
 0x904   : > { %v2478_v20 = vmul.f32 %v2470_v22, %v7288_v24 }
 0x906   : > { %v5866_v18 = vsub.f32 %v2449_v34, %v2478_v20 }
 0x908   : > { %v2490_v58 = vmul.f32 %v5866_v18, %v5866_v18 }
 0x90a   : > { %v2504_v6 = vsel %vm510_vm4, %v2490_v58, 0.0 }
 0x90b   : > { %2505 = vadd.xlane.f32.xlu2 %v2504_v6  ;;  %v2467_v25 = vpop.xlane.xlu2 %2466  ;;  %v2473_v14 = vpop.xlane.xlu1 %2472 }
 0x90c   : > { %v2477_v11 = vmul.f32 %v2467_v25, %v7288_v24  ;;  %v2479_v13 = vmul.f32 %v2473_v14, %v7288_v24 }
 0x90e   : > { %v5873_v32 = vsub.f32 %v2446_v35, %v2477_v11  ;;  %v5875_v2 = vsub.f32 %v2452_v43, %v2479_v13 }
 0x910   : > { %v2489_v34 = vmul.f32 %v5873_v32, %v5873_v32  ;;  %v2491_v54 = vmul.f32 %v5875_v2, %v5875_v2 }
 0x912   : > { %v2501_v48 = vsel %vm510_vm4, %v2489_v34, 0.0  ;;  %v2507_v7 = vsel %vm510_vm4, %v2491_v54, 0.0  ;;  %v5889_v34 = vld [vmem:[%s6751_s5 + $0x17c] ss:$0 sm:$0xff] }
 0x913   : > { %2502 = vadd.xlane.f32.xlu2 %v2501_v48  ;;  %2508 = vadd.xlane.f32.xlu1 %v2507_v7  ;;  %v5894_v7 = vld [vmem:[%s6751_s5 + $0x17d] ss:$0 sm:$0xff] }
 0x95e   : > { %v2494_v51 = vpop.xlane.xlu1 %2493 }
 0x95f   : > { %v2510_v23 = vmul.f32 %v2494_v51, %v7288_v24 }
 0x961   : > { %v2516_v63 = vadd.f32 1e-05, %v2510_v23 }
 0x963   : > { %3863 = vrsqrt.f32 %v2516_v63  ;;  %vm2528_vm12 = vweird.f32 %v2516_v63 }
 0x966   : > { %v2497_v35 = vpop.xlane.xlu0 %2496 }
 0x967   : > { %v2511_v43 = vmul.f32 %v2497_v35, %v7288_v24 }
 0x969   : > { %v3864_v8 = vpop.eup %3863  ;;  %v2517_v44 = vadd.f32 1e-05, %v2511_v43 }
 0x96a   : > { %v2523_v1 = vmul.f32 %v3864_v8, %v2516_v63  ;;  %vm2529_vm2 = vweird.f32 %v3864_v8 }
 0x96b   : > { %3865 = vrsqrt.f32 %v2517_v44  ;;  %vm2530_vm9 = vmor %vm2528_vm12, %vm2529_vm2  ;;  %vm2538_vm6 = vweird.f32 %v2517_v44 }
 0x96c   : > { %v2524_v57 = vmul.f32 %v3864_v8, %v2523_v1 }
 0x96e   : > { %v2525_v22 = vmul.f32 0.5, %v2524_v57  ;;  %v2500_v20 = vpop.xlane.xlu0 %2499 }
 0x96f   : > { %v2512_v58 = vmul.f32 %v2500_v20, %v7288_v24 }
 0x970   : > { %v2526_v6 = vsub.f32 1.5, %v2525_v22 }
 0x971   : > { %v3866_v25 = vpop.eup %3865  ;;  %v2518_v14 = vadd.f32 1e-05, %v2512_v58 }
 0x972   : > { %v2527_v11 = vmul.f32 %v3864_v8, %v2526_v6  ;;  %v2533_v13 = vmul.f32 %v3866_v25, %v2517_v44  ;;  %vm2539_vm8 = vweird.f32 %v3866_v25  ;;  %v7292_v44 = vld [vmem:[#allocation29_spill] sm:$0xff] }
 0x973   : > { %3867 = vrsqrt.f32 %v2518_v14  ;;  %vm2540_vm1 = vmor %vm2538_vm6, %vm2539_vm8  ;;  %vm7293_vm12 = vcmp.eq.s32.totalorder %v7292_v44, 1 }
 0x974   : > { %v2531_v54 = vsel %vm2530_vm9, %v3864_v8, %v2527_v11  ;;  %v2534_v48 = vmul.f32 %v3866_v25, %v2533_v13 }
 0x975   : > { %v2582_v51 = vmul.f32 %v2531_v54, %v2480_v17 }
 0x976   : > { %v2535_v23 = vmul.f32 0.5, %v2534_v48  ;;  %v7290_v48 = vld [vmem:[#allocation28_spill] sm:$0xff] }
 0x977   : > { %v2589_v35 = vmul.f32 %v5889_v34, %v2582_v51  ;;  %vm7291_vm2 = vcmp.eq.s32.totalorder %v7290_v48, 1 }
 0x978   : > { %v2536_v63 = vsub.f32 1.5, %v2535_v23 }
 0x979   : > { %v3868_v43 = vpop.eup %3867  ;;  %v2596_v1 = vadd.f32 %v5894_v7, %v2589_v35 }
 0x97a   : > { %v2537_v57 = vmul.f32 %v3866_v25, %v2536_v63  ;;  %v2543_v22 = vmul.f32 %v3868_v43, %v2518_v14  ;;  %vm2549_vm9 = vweird.f32 %v3868_v43  ;;  %v7296_v63 = vld [vmem:[#allocation41_spill] sm:$0xff] }
 0x97b   : > { %v5898_v20 = vmax.f32 %v2596_v1, 0.0  ;;  %vm7297_vm6 = vcmp.eq.s32.totalorder %v7296_v63, 1 }
 0x97c   : > { %v2541_v8 = vsel %vm2540_vm1, %v3866_v25, %v2537_v57  ;;  %v2544_v58 = vmul.f32 %v3868_v43, %v2543_v22  ;;  %v7294_v25 = vld [vmem:[#allocation30_spill] sm:$0xff] }
 0x97d   : > { %7289 = vst [vmem:[#allocation63_spill] sm:$0xff] %v5898_v20  ;;  %v2583_v6 = vmul.f32 %v2541_v8, %v5854_v5  ;;  %v2608_v51 = vsel %vm7291_vm2, %v5898_v20, -1e+30  ;;  %v2631_v23 = vsel %vm7293_vm12, %v5898_v20, -1e+30  ;;  %vm7295_vm8 = vcmp.eq.s32.totalorder %v7294_v25, 1 }
 0x97e   : > { %v2545_v11 = vmul.f32 0.5, %v2544_v58  ;;  %v2506_v17 = vpop.xlane.xlu2 %2505  ;;  %v2654_v5 = vsel %vm7295_vm8, %v5898_v20, -1e+30  ;;  %v2677_v1 = vsel %vm7297_vm6, %v5898_v20, -1e+30  ;;  %v7298_v8 = vld [vmem:[#allocation47_spill] sm:$0xff]  ;;  %vm2548_vm12 = vweird.f32 %v2518_v14 }
 0x97f   : > { %v2590_v13 = vmul.f32 %v5889_v34, %v2583_v6  ;;  %v2514_v54 = vmul.f32 %v2506_v17, %v7288_v24  ;;  %vm7299_vm1 = vcmp.eq.s32.totalorder %v7298_v8, 1  ;;  %v7300_v6 = vld [vmem:[#allocation53_spill] sm:$0xff]  ;;  %v5925_v48 = vsel %vm510_vm4, %v2608_v51, -inf  ;;  %vm2550_vm8 = vmor %vm2548_vm12, %vm2549_vm9  ;;  %v2997_v14 = vld [vmem:[%s6751_s5 + $0xe8] sm:$0xff] }
 0x980   : > { %v2546_v35 = vsub.f32 1.5, %v2545_v11  ;;  %v2700_v58 = vsel %vm7299_vm1, %v5898_v20, -1e+30  ;;  %vm7301_vm2 = vcmp.eq.s32.totalorder %v7300_v6, 1  ;;  %v5928_v44 = vsel %vm510_vm4, %v2631_v23, -inf  ;;  %v2996_v51 = vld [vmem:[%s6751_s5 + $0xe0] sm:$0xff]  ;;  %3018 = vmatpush.msrb.mxu0 %v2997_v14 }
 0x981   : > { %v2597_v57 = vadd.f32 %v5894_v7, %v2590_v13  ;;  %v5916_v22 = vadd.f32 1e-05, %v2514_v54  ;;  %v2723_v11 = vsel %vm7301_vm2, %v5898_v20, -1e+30  ;;  %v5934_v13 = vsel %vm510_vm4, %v2654_v5, -inf  ;;  %v7302_v54 = vld [vmem:[#allocation59_spill] sm:$0xff] }
 0x982   : > { %v2547_v17 = vmul.f32 %v3868_v43, %v2546_v35  ;;  %vm7303_vm6 = vcmp.eq.s32.totalorder %v7302_v54, 1  ;;  %v5946_v23 = vsel %vm510_vm4, %v2677_v1, -inf  ;;  %v5952_v5 = vsel %vm510_vm4, %v2723_v11, -inf  ;;  %v7308_v1 = vld [vmem:[#allocation88_spill] sm:$0xff]  ;;  %v7312_v14 = vld [vmem:[#allocation27_spill] sm:$0xff]  ;;  %3019 = vmatpush.msrb.mxu0 %v2996_v51 }
 0x983   : > { %v5930_v25 = vmax.f32 %v2597_v57, 0.0  ;;  %3869 = vrsqrt.f32 %v5916_v22  ;;  %v2746_v63 = vsel %vm7303_vm6, %v5898_v20, -1e+30  ;;  %v5949_v57 = vsel %vm510_vm4, %v2700_v58, -inf  ;;  %v2995_v11 = vld [vmem:[%s6751_s5 + $0xd8] sm:$0xff] }
 0x984   : > { %v2551_v35 = vsel %vm2550_vm8, %v3868_v43, %v2547_v17  ;;  %v7304_v43 = vld [vmem:[#allocation65_spill] sm:$0xff]  ;;  %v7306_v17 = vld [vmem:[#allocation75_spill] sm:$0xff]  ;;  %vm7309_vm2 = vcmp.eq.s32.totalorder %v7308_v1, 1  ;;  %vm7313_vm8 = vcmp.eq.s32.totalorder %v7312_v14, 1  ;;  %vm7315_vm6 = vcmp.eq.s32.totalorder %v7314_v12, 1  ;;  %3020 = vmatpush.msrb.mxu0 %v2995_v11 }
 0x985   : > { %v2584_v8 = vmul.f32 %v2551_v35, %v5860_v55  ;;  %vm7305_vm9 = vcmp.eq.s32.totalorder %v7304_v43, 1  ;;  %vm7307_vm1 = vcmp.eq.s32.totalorder %v7306_v17, 1  ;;  %v2815_v42 = vsel %vm7309_vm2, %v5898_v20, -1e+30  ;;  %v7310_v55 = vld [vmem:[#allocation25_spill] sm:$0xff]  ;;  %v7316_v14 = vld [vmem:[#allocation39_spill] sm:$0xff] }
 0x986   : > { %v2769_v6 = vsel %vm7305_vm9, %v5898_v20, -1e+30  ;;  %v2792_v54 = vsel %vm7307_vm1, %v5898_v20, -1e+30  ;;  %v2503_v58 = vpop.xlane.xlu2 %2502  ;;  %v2509_v4 = vpop.xlane.xlu1 %2508  ;;  %vm7311_vm12 = vcmp.eq.s32.totalorder %v7310_v55, 1  ;;  %v5974_v17 = vsel %vm510_vm4, %v2746_v63, -inf }
 0x987   : > { %v2609_v35 = vsel %vm7311_vm12, %v5930_v25, -1e+30  ;;  %v2632_v43 = vsel %vm7313_vm8, %v5930_v25, -1e+30  ;;  %v2591_v1 = vmul.f32 %v5889_v34, %v2584_v8  ;;  %v2513_v33 = vmul.f32 %v2503_v58, %v7288_v24  ;;  %v2994_v55 = vld [vmem:[%s6751_s5 + $0xd0] sm:$0xff] }
 0x988   : > { %v2515_v37 = vmul.f32 %v2509_v4, %v7288_v24  ;;  %v2655_v16 = vsel %vm7315_vm6, %v5930_v25, -1e+30  ;;  %vm7317_vm9 = vcmp.eq.s32.totalorder %v7316_v14, 1  ;;  %v5989_v29 = vsel %vm510_vm4, %v2769_v6, -inf  ;;  %v7320_v14 = vld [vmem:[#allocation45_spill] sm:$0xff]  ;;  %3021 = vmatpush.msrb.mxu0 %v2994_v55  ;;  %v7327_v55 = vld [vmem:[#allocation40_spill] sm:$0xff] }
 0x989   : > { %v2678_v63 = vsel %vm7317_vm9, %v5930_v25, -1e+30  ;;  %v5992_v8 = vsel %vm510_vm4, %v2792_v54, -inf  ;;  %v5995_v4 = vsel %vm510_vm4, %v2815_v42, -inf  ;;  %v3870_v51 = vpop.eup %3869  ;;  %v2598_v12 = vadd.f32 %v5894_v7, %v2591_v1  ;;  %v7325_v1 = vld [vmem:[#allocation57_spill] sm:$0xff] }
 0x98a   : > { %7318 = vst [vmem:[#allocation68_spill] sm:$0xff] %v5992_v8  ;;  %v5998_v58 = vadd.f32 1e-05, %v2513_v33  ;;  %v6000_v24 = vadd.f32 1e-05, %v2515_v37  ;;  %vm7321_vm1 = vcmp.eq.s32.totalorder %v7320_v14, 1  ;;  %v2563_v6 = vmul.f32 %v3870_v51, %v5916_v22 }
 0x98b   : > { %7319 = vst [vmem:[#allocation64_spill] sm:$0xff] %v5995_v4  ;;  %v2701_v0 = vsel %vm7321_vm1, %v5930_v25, -1e+30  ;;  %v6007_v54 = vsel %vm510_vm4, %v2609_v35, -inf  ;;  %v6010_v42 = vsel %vm510_vm4, %v2632_v43, -inf  ;;  %v6013_v52 = vsel %vm510_vm4, %v2655_v16, -inf }
 0x98c   : > { %v6015_v33 = vmax.f32 %v2598_v12, 0.0  ;;  %3871 = vrsqrt.f32 %v5998_v58  ;;  %v7323_v37 = vld [vmem:[#allocation51_spill] sm:$0xff]  ;;  %vm7326_vm12 = vcmp.eq.s32.totalorder %v7325_v1, 1  ;;  %v2564_v14 = vmul.f32 %v3870_v51, %v2563_v6  ;;  %v7331_v6 = vld [vmem:[#allocation42_spill] sm:$0xff] }
 0x98d   : > { %vm7324_vm2 = vcmp.eq.s32.totalorder %v7323_v37, 1  ;;  %v2747_v35 = vsel %vm7326_vm12, %v5930_v25, -1e+30  ;;  %3873 = vrsqrt.f32 %v6000_v24  ;;  %v6026_v43 = vsel %vm510_vm4, %v2678_v63, -inf  ;;  %v7329_v37 = vld [vmem:[#allocation36_spill] sm:$0xff] }
 0x98e   : > { %7322 = vst [vmem:[#allocation70_spill] sm:$0xff] %v6015_v33  ;;  %v2724_v11 = vsel %vm7324_vm2, %v5930_v25, -1e+30  ;;  %v6029_v16 = vsel %vm510_vm4, %v2701_v0, -inf  ;;  %vm2568_vm8 = vweird.f32 %v5916_v22  ;;  %vm7328_vm6 = vcmp.eq.s32.totalorder %v7327_v55, 1 }
 0x98f   : > { %v2610_v12 = vsel %vm7328_vm6, %v6015_v33, -1e+30  ;;  %vm7330_vm9 = vcmp.eq.s32.totalorder %v7329_v37, 1  ;;  %vm7332_vm1 = vcmp.eq.s32.totalorder %v7331_v6, 1  ;;  %v2565_v40 = vmul.f32 0.5, %v2564_v14  ;;  %v7339_v14 = vld [vmem:[#allocation60_spill] sm:$0xff] }
 0x990   : > { %v2633_v1 = vsel %vm7330_vm9, %v6015_v33, -1e+30  ;;  %v2656_v39 = vsel %vm7332_vm1, %v6015_v33, -1e+30  ;;  %v6042_v63 = vsel %vm510_vm4, %v2724_v11, -inf  ;;  %v6045_v0 = vsel %vm510_vm4, %v2747_v35, -inf }
 0x991   : > { %vm7334_vm2 = vcmp.eq.s32.totalorder %v7333_v41, 1  ;;  %vm2569_vm12 = vweird.f32 %v3870_v51  ;;  %vm7336_vm6 = vcmp.eq.s32.totalorder %v7335_v30, 1  ;;  %vm7338_vm9 = vcmp.eq.s32.totalorder %v7337_v59, 1 }
 0x992   : > { %v2770_v55 = vsel %vm7334_vm2, %v5930_v25, -1e+30  ;;  %v2679_v37 = vsel %vm7336_vm6, %v6015_v33, -1e+30  ;;  %v2702_v6 = vsel %vm7338_vm9, %v6015_v33, -1e+30  ;;  %v3872_v30 = vpop.eup %3871  ;;  %vm2558_vm6 = vweird.f32 %v5998_v58 }
 0x993   : > { %vm7340_vm1 = vcmp.eq.s32.totalorder %v7339_v14, 1  ;;  %v2566_v15 = vsub.f32 1.5, %v2565_v40  ;;  %v6060_v35 = vsel %vm510_vm4, %v2610_v12, -inf  ;;  %v6063_v41 = vsel %vm510_vm4, %v2633_v1, -inf  ;;  %v7341_v40 = vld [vmem:[#allocation69_spill] sm:$0xff]  ;;  %v3874_v36 = vpop.eup %3873 }
 0x994   : > { %v2725_v11 = vsel %vm7340_vm1, %v6015_v33, -1e+30  ;;  %v6066_v56 = vsel %vm510_vm4, %v2656_v39, -inf  ;;  %v6069_v3 = vsel %vm510_vm4, %v2679_v37, -inf  ;;  %v6072_v59 = vsel %vm510_vm4, %v2702_v6, -inf  ;;  %v7343_v39 = vld [vmem:[#allocation82_spill] sm:$0xff]  ;;  %vm2570_vm1 = vmor %vm2568_vm8, %vm2569_vm12 }
 0x995   : > { %v6075_v14 = vsel %vm510_vm4, %v2725_v11, -inf  ;;  %vm7342_vm2 = vcmp.eq.s32.totalorder %v7341_v40, 1  ;;  %v2567_v1 = vmul.f32 %v3870_v51, %v2566_v15  ;;  %v2553_v21 = vmul.f32 %v3872_v30, %v5998_v58  ;;  %v7345_v40 = vld [vmem:[#allocation85_spill] sm:$0xff]  ;;  %v7368_v58 = vld [vmem:[#allocation106_spill] sm:$0xff] }
 0x996   : > { %v2748_v12 = vsel %vm7342_vm2, %v6015_v33, -1e+30  ;;  %vm7344_vm9 = vcmp.eq.s32.totalorder %v7343_v39, 1  ;;  %v6086_v6 = vsel %vm510_vm4, %v2770_v55, -inf  ;;  %vm2559_vm15 = vweird.f32 %v3872_v30  ;;  %v7347_v55 = vld [vmem:[#allocation84_spill] sm:$0xff] }
 0x997   : > { %v2771_v37 = vsel %vm7344_vm9, %v6015_v33, -1e+30  ;;  %v2573_v11 = vmul.f32 %v3874_v36, %v6000_v24  ;;  %vm2578_vm2 = vweird.f32 %v6000_v24  ;;  %v6094_v15 = vsel %vm510_vm4, %v2748_v12, -inf  ;;  %v7349_v12 = vld [vmem:[#allocation74_spill] sm:$0xff] }
 0x998   : > { %vm7346_vm0 = vcmp.eq.s32.totalorder %v7345_v40, 1  ;;  %v2571_v4 = vsel %vm2570_vm1, %v3870_v51, %v2567_v1  ;;  %v2554_v49 = vmul.f32 %v3872_v30, %v2553_v21  ;;  %vm2579_vm9 = vweird.f32 %v3874_v36  ;;  %v7352_v21 = vld [vmem:[#allocation80_spill] sm:$0xff]  ;;  %v7372_v24 = vld [vmem:[#allocation34_spill] sm:$0xff] }
 0x999   : > { %v2793_v39 = vsel %vm7346_vm0, %v5930_v25, -1e+30  ;;  %vm7348_vm13 = vcmp.eq.s32.totalorder %v7347_v55, 1  ;;  %v2586_v19 = vmul.f32 %v2571_v4, %v5866_v18  ;;  %v2574_v27 = vmul.f32 %v3874_v36, %v2573_v11  ;;  %v7354_v1 = vld [vmem:[#allocation76_spill] sm:$0xff]  ;;  %v7357_v55 = vld [vmem:[#allocation81_spill] sm:$0xff] }
 0x99a   : > { %v2794_v22 = vsel %vm7348_vm13, %v6015_v33, -1e+30  ;;  %v6104_v8 = vsel %vm510_vm4, %v2771_v37, -inf  ;;  %vm7350_vm8 = vcmp.eq.s32.totalorder %v7349_v12, 1  ;;  %v2555_v31 = vmul.f32 0.5, %v2554_v49 }
 0x99b   : > { %v2816_v46 = vsel %vm7350_vm8, %v5930_v25, -1e+30  ;;  %v6110_v40 = vsel %vm510_vm4, %v2793_v39, -inf  ;;  %vm7353_vm0 = vcmp.eq.s32.totalorder %v7352_v21, 1  ;;  %vm7355_vm13 = vcmp.eq.s32.totalorder %v7354_v1, 1  ;;  %v7360_v1 = vld [vmem:[#allocation86_spill] sm:$0xff] }
 0x99c   : > { %7351 = vst [vmem:[#allocation71_spill] sm:$0xff] %v6110_v40  ;;  %v2817_v51 = vsel %vm7353_vm0, %v6015_v33, -1e+30  ;;  %v2838_v18 = vsel %vm7355_vm13, %v5898_v20, -1e+30  ;;  %v2593_v4 = vmul.f32 %v5889_v34, %v2586_v19  ;;  %v2575_v37 = vmul.f32 0.5, %v2574_v27 }
 0x99d   : > { %v6120_v11 = vsel %vm510_vm4, %v2794_v22, -inf  ;;  %vm7358_vm12 = vcmp.eq.s32.totalorder %v7357_v55, 1  ;;  %v2556_v39 = vsub.f32 1.5, %v2555_v31  ;;  %v6126_v12 = vsel %vm510_vm4, %v2816_v46, -inf  ;;  %v7362_v55 = vld [vmem:[#allocation100_spill] sm:$0xff] }
 0x99e   : > { %7356 = vst [vmem:[#allocation72_spill] sm:$0xff] %v6120_v11  ;;  %v2839_v49 = vsel %vm7358_vm12, %v5930_v25, -1e+30  ;;  %v6129_v21 = vsel %vm510_vm4, %v2817_v51, -inf  ;;  %vm7361_vm1 = vcmp.eq.s32.totalorder %v7360_v1, 1  ;;  %v2600_v19 = vadd.f32 %v5894_v7, %v2593_v4  ;;  %v7364_v51 = vld [vmem:[#allocation83_spill] sm:$0xff]  ;;  %vm2560_vm12 = vmor %vm2558_vm6, %vm2559_vm15 }
 0x99f   : > { %7359 = vst [vmem:[#allocation121_spill] sm:$0xff] %v6129_v21  ;;  %v2840_v40 = vsel %vm7361_vm1, %v6015_v33, -1e+30  ;;  %v2576_v27 = vsub.f32 1.5, %v2575_v37  ;;  %v6136_v22 = vsel %vm510_vm4, %v2838_v18, -inf  ;;  %vm7363_vm8 = vcmp.eq.s32.totalorder %v7362_v55, 1  ;;  %vm2580_vm1 = vmor %vm2578_vm2, %vm2579_vm9 }
 0x9a0   : > { %v2861_v31 = vsel %vm7363_vm8, %v5898_v20, -1e+30  ;;  %v2557_v11 = vmul.f32 %v3872_v30, %v2556_v39  ;;  %v6142_v46 = vsel %vm510_vm4, %v2839_v49, -inf  ;;  %vm7365_vm0 = vcmp.eq.s32.totalorder %v7364_v51, 1  ;;  %v7366_v1 = vld [vmem:[#allocation92_spill] sm:$0xff] }
 0x9a1   : > { %v2862_v21 = vsel %vm7365_vm0, %v5930_v25, -1e+30  ;;  %vm7367_vm13 = vcmp.eq.s32.totalorder %v7366_v1, 1  ;;  %v6150_v37 = vmax.f32 %v2600_v19, 0.0  ;;  %v2577_v18 = vmul.f32 %v3874_v36, %v2576_v27 }
 0x9a2   : > { %v2863_v4 = vsel %vm7367_vm13, %v6015_v33, -1e+30  ;;  %v6156_v39 = vsel %vm510_vm4, %v2840_v40, -inf  ;;  %v6159_v49 = vsel %vm510_vm4, %v2861_v31, -inf  ;;  %v2561_v55 = vsel %vm2560_vm12, %v3872_v30, %v2557_v11  ;;  %v7370_v30 = vld [vmem:[#allocation26_spill] sm:$0xff] }
 0x9a3   : > { %v6165_v51 = vsel %vm510_vm4, %v2862_v21, -inf  ;;  %v6168_v19 = vsel %vm510_vm4, %v2863_v4, -inf  ;;  %vm7369_vm15 = vcmp.eq.s32.totalorder %v7368_v58, 1  ;;  %v2585_v40 = vmul.f32 %v2561_v55, %v5873_v32  ;;  %v7374_v58 = vld [vmem:[#allocation35_spill] sm:$0xff] }
 0x9a4   : > { %v6173_v27 = vsel %vm7369_vm15, %v5898_v20, -1e+30  ;;  %v2581_v31 = vsel %vm2580_vm1, %v3874_v36, %v2577_v18  ;;  %vm7371_vm6 = vcmp.eq.s32.totalorder %v7370_v30, 1  ;;  %vm7373_vm2 = vcmp.eq.s32.totalorder %v7372_v24, 1  ;;  %v7378_v24 = vld [vmem:[#allocation52_spill] sm:$0xff] }
 0x9a5   : > { %v2612_v11 = vsel %vm7371_vm6, %v6150_v37, -1e+30  ;;  %v2635_v21 = vsel %vm7373_vm2, %v6150_v37, -1e+30  ;;  %v2587_v1 = vmul.f32 %v2581_v31, %v5875_v2  ;;  %vm7375_vm9 = vcmp.eq.s32.totalorder %v7374_v58, 1  ;;  %v7376_v31 = vld [vmem:[#allocation46_spill] sm:$0xff] }
 0x9a6   : > { %v2618_v4 = vsel %vm510_vm4, %v2612_v11, -inf  ;;  %v2641_v33 = vsel %vm510_vm4, %v2635_v21, -inf  ;;  %v2658_v20 = vsel %vm7375_vm9, %v6150_v37, -1e+30  ;;  %v2592_v36 = vmul.f32 %v5889_v34, %v2585_v40 }
 0x9a7   : > { %v2619_v32 = vmax.f32 %v5925_v48, %v2618_v4  ;;  %v2642_v18 = vmax.f32 %v5928_v44, %v2641_v33  ;;  %v2664_v55 = vsel %vm510_vm4, %v2658_v20, -inf  ;;  %v2594_v30 = vmul.f32 %v5889_v34, %v2587_v1 }
 0x9a8   : > { %v2665_v2 = vmax.f32 %v5934_v13, %v2664_v55  ;;  %vm7377_vm8 = vcmp.eq.s32.totalorder %v7376_v31, 1  ;;  %vm7379_vm0 = vcmp.eq.s32.totalorder %v7378_v24, 1  ;;  %v2599_v40 = vadd.f32 %v5894_v7, %v2592_v36 }
 0x9a9   : > { %v2681_v11 = vsel %vm7377_vm8, %v6150_v37, -1e+30  ;;  %v2704_v21 = vsel %vm7379_vm0, %v6150_v37, -1e+30  ;;  %vm7380_vm13 = vcmp.eq.s32.totalorder %v7205_v9, 1  ;;  %v2601_v20 = vadd.f32 %v5894_v7, %v2594_v30 }
 0x9aa   : > { %v2687_v48 = vsel %vm510_vm4, %v2681_v11, -inf  ;;  %v6203_v44 = vsel %vm510_vm4, %v2704_v21, -inf  ;;  %v2727_v34 = vsel %vm7380_vm13, %v6150_v37, -1e+30  ;;  %v6215_v4 = vmax.f32 %v2599_v40, 0.0  ;;  %v7388_v11 = vld [vmem:[#allocation49_spill] sm:$0xff] }
 0x9ab   : > { %v2688_v13 = vmax.f32 %v5946_v23, %v2687_v48  ;;  %v2711_v33 = vmax.f32 %v5949_v57, %v6203_v44  ;;  %v6213_v1 = vsel %vm510_vm4, %v2727_v34, -inf  ;;  %vm7381_vm12 = vcmp.eq.s32.totalorder %v7212_v28, 1  ;;  %v7384_v28 = vld [vmem:[#allocation38_spill] sm:$0xff]  ;;  %v7391_v48 = vld [vmem:[#allocation32_spill] sm:$0xff] }
 0x9ac   : > { %v2734_v58 = vmax.f32 %v5952_v5, %v6213_v1  ;;  %v2750_v9 = vsel %vm7381_vm12, %v6150_v37, -1e+30  ;;  %vm7382_vm1 = vcmp.eq.s32.totalorder %v7218_v10, 1  ;;  %v6225_v23 = vmax.f32 %v2601_v20, 0.0  ;;  %v7386_v10 = vld [vmem:[#allocation43_spill] sm:$0xff] }
 0x9ad   : > { %v2773_v7 = vsel %vm7382_vm1, %v6150_v37, -1e+30  ;;  %v6228_v57 = vsel %vm510_vm4, %v2750_v9, -inf  ;;  %vm7383_vm15 = vcmp.eq.s32.totalorder %v7220_v60, 1  ;;  %vm7385_vm6 = vcmp.eq.s32.totalorder %v7384_v28, 1 }
 0x9ae   : > { %v6231_v36 = vsel %vm510_vm4, %v2773_v7, -inf  ;;  %v6236_v55 = vsel %vm7383_vm15, %v6150_v37, -1e+30  ;;  %v2611_v30 = vsel %vm7385_vm6, %v6215_v4, -1e+30  ;;  %vm7387_vm2 = vcmp.eq.s32.totalorder %v7386_v10, 1 }
 0x9af   : > { %v2634_v31 = vsel %vm7387_vm2, %v6215_v4, -1e+30  ;;  %vm7389_vm9 = vcmp.eq.s32.totalorder %v7388_v11, 1  ;;  %v2757_v21 = vmax.f32 %v5974_v17, %v6228_v57  ;;  %vm7390_vm8 = vcmp.eq.s32.totalorder %v7194_v61, 1 }
 0x9b0   : > { %v2657_v24 = vsel %vm7389_vm9, %v6215_v4, -1e+30  ;;  %v2613_v60 = vsel %vm7390_vm8, %v6225_v23, -1e+30  ;;  %v2617_v40 = vsel %vm510_vm4, %v2611_v30, -inf  ;;  %vm7392_vm0 = vcmp.eq.s32.totalorder %v7391_v48, 1 }
 0x9b1   : > { %v2636_v44 = vsel %vm7392_vm0, %v6225_v23, -1e+30  ;;  %v2640_v34 = vsel %vm510_vm4, %v2634_v31, -inf  ;;  %v2620_v20 = vsel %vm510_vm4, %v2613_v60, -inf  ;;  %v2623_v9 = vmax.f32 %v6060_v35, %v2617_v40  ;;  %v7393_v30 = vld [vmem:[#allocation33_spill] sm:$0xff]  ;;  %v7395_v35 = vld [vmem:[#allocation55_spill] sm:$0xff] }
 0x9b2   : > { %v2643_v7 = vsel %vm510_vm4, %v2636_v44, -inf  ;;  %v2646_v28 = vmax.f32 %v6063_v41, %v2640_v34  ;;  %v2621_v10 = vmax.f32 %v6007_v54, %v2620_v20  ;;  %vm7394_vm13 = vcmp.eq.s32.totalorder %v7393_v30, 1 }
 0x9b3   : > { %v2644_v61 = vmax.f32 %v6010_v42, %v2643_v7  ;;  %v2659_v11 = vsel %vm7394_vm13, %v6225_v23, -1e+30  ;;  %v2663_v48 = vsel %vm510_vm4, %v2657_v24, -inf  ;;  %vm7396_vm12 = vcmp.eq.s32.totalorder %v7395_v35, 1 }
 0x9b4   : > { %v2666_v31 = vsel %vm510_vm4, %v2659_v11, -inf  ;;  %v2669_v60 = vmax.f32 %v6066_v56, %v2663_v48  ;;  %v2680_v40 = vsel %vm7396_vm12, %v6215_v4, -1e+30  ;;  %vm7397_vm1 = vcmp.eq.s32.totalorder %v7202_v26, 1  ;;  %v7398_v56 = vld [vmem:[#allocation61_spill] sm:$0xff] }
 0x9b5   : > { %v2682_v54 = vsel %vm7397_vm1, %v6225_v23, -1e+30  ;;  %v2622_v41 = vmax.f32 %v2619_v32, %v2621_v10  ;;  %v2645_v42 = vmax.f32 %v2642_v18, %v2644_v61  ;;  %v2667_v44 = vmax.f32 %v6013_v52, %v2666_v31 }
 0x9b6   : > { %v2686_v34 = vsel %vm510_vm4, %v2680_v40, -inf  ;;  %v2689_v24 = vsel %vm510_vm4, %v2682_v54, -inf  ;;  %vm7399_vm15 = vcmp.eq.s32.totalorder %v7398_v56, 1  ;;  %vm7400_vm6 = vcmp.eq.s32.totalorder %v7203_v45, 1 }
 0x9b7   : > { %v2692_v20 = vmax.f32 %v6069_v3, %v2686_v34  ;;  %v2703_v7 = vsel %vm7399_vm15, %v6215_v4, -1e+30  ;;  %v2705_v30 = vsel %vm7400_vm6, %v6225_v23, -1e+30  ;;  %v2624_v26 = vmax.f32 %v2622_v41, %v2623_v9 }
 0x9b8   : > { %v2647_v11 = vmax.f32 %v2645_v42, %v2646_v28  ;;  %v2668_v32 = vmax.f32 %v2665_v2, %v2667_v44  ;;  %v2690_v18 = vmax.f32 %v6026_v43, %v2689_v24  ;;  %v2709_v52 = vsel %vm510_vm4, %v2703_v7, -inf }
 0x9b9   : > { %v2712_v10 = vsel %vm510_vm4, %v2705_v30, -inf  ;;  %vm7401_vm2 = vcmp.eq.s32.totalorder %v7204_v62, 1  ;;  %vm7402_vm9 = vcmp.eq.s32.totalorder %v7208_v47, 1  ;;  %v2625_v48 = vrot.slane %v2624_v26, 4 }
 0x9ba   : > { %v2726_v3 = vsel %vm7401_vm2, %v6215_v4, -1e+30  ;;  %v2728_v61 = vsel %vm7402_vm9, %v6225_v23, -1e+30  ;;  %v2648_v45 = vrot.slane %v2647_v11, 4  ;;  %v2670_v31 = vmax.f32 %v2668_v32, %v2669_v60  ;;  %v7403_v60 = vld [vmem:[#allocation73_spill] sm:$0xff] }
 0x9bb   : > { %v2691_v9 = vmax.f32 %v2688_v13, %v2690_v18  ;;  %v2713_v2 = vmax.f32 %v6029_v16, %v2712_v10  ;;  %v2715_v43 = vmax.f32 %v6072_v59, %v2709_v52  ;;  %v2732_v28 = vsel %vm510_vm4, %v2726_v3, -inf }
 0x9bc   : > { %v2735_v35 = vsel %vm510_vm4, %v2728_v61, -inf  ;;  %v2626_v40 = vmax.f32 %v2624_v26, %v2625_v48  ;;  %v2649_v54 = vmax.f32 %v2647_v11, %v2648_v45  ;;  %v2671_v62 = vrot.slane %v2670_v31, 4 }
 0x9bd   : > { %v2693_v41 = vmax.f32 %v2691_v9, %v2692_v20  ;;  %v2714_v42 = vmax.f32 %v2711_v33, %v2713_v2  ;;  %v2736_v47 = vmax.f32 %v6042_v63, %v2735_v35  ;;  %v2738_v44 = vmax.f32 %v6075_v14, %v2732_v28 }
 0x9be   : > { %vm7404_vm8 = vcmp.eq.s32.totalorder %v7403_v60, 1  ;;  %v2627_v16 = vrot.slane %v2626_v40, 2  ;;  %v2650_v34 = vrot.slane %v2649_v54, 2  ;;  %v2672_v59 = vmax.f32 %v2670_v31, %v2671_v62 }
 0x9bf   : > { %v2749_v13 = vsel %vm7404_vm8, %v6215_v4, -1e+30  ;;  %v2694_v24 = vrot.slane %v2693_v41, 4  ;;  %v2716_v56 = vmax.f32 %v2714_v42, %v2715_v43  ;;  %v2737_v7 = vmax.f32 %v2734_v58, %v2736_v47 }
 0x9c0   : > { %vm7405_vm0 = vcmp.eq.s32.totalorder %v7210_v50, 1  ;;  %v2755_v63 = vsel %vm510_vm4, %v2749_v13, -inf  ;;  %v2628_v14 = vmax.f32 %v2626_v40, %v2627_v16  ;;  %v2651_v20 = vmax.f32 %v2649_v54, %v2650_v34 }
 0x9c1   : > { %v2751_v33 = vsel %vm7405_vm0, %v6225_v23, -1e+30  ;;  %v2673_v30 = vrot.slane %v2672_v59, 2  ;;  %v2695_v26 = vmax.f32 %v2693_v41, %v2694_v24  ;;  %v2717_v11 = vrot.slane %v2716_v56, 4  ;;  %v7410_v24 = vld [vmem:[#allocation77_spill] sm:$0xff] }
 0x9c2   : > { %v2739_v32 = vmax.f32 %v2737_v7, %v2738_v44  ;;  %v2758_v18 = vsel %vm510_vm4, %v2751_v33, -inf  ;;  %v2761_v52 = vmax.f32 %v6094_v15, %v2755_v63  ;;  %v2629_v10 = vrot.slane %v2628_v14, 1 }
 0x9c3   : > { %v2652_v3 = vrot.slane %v2651_v20, 1  ;;  %v2674_v5 = vmax.f32 %v2672_v59, %v2673_v30  ;;  %v2696_v1 = vrot.slane %v2695_v26, 2  ;;  %v2718_v58 = vmax.f32 %v2716_v56, %v2717_v11  ;;  %v7412_v30 = vld [vmem:[#allocation72_spill] sm:$0xff] }
 0x9c4   : > { %v2740_v61 = vrot.slane %v2739_v32, 4  ;;  %v2759_v50 = vmax.f32 %v6045_v0, %v2758_v18  ;;  %vm7406_vm13 = vcmp.eq.s32.totalorder %v7217_v38, 1  ;;  %v2630_v45 = vmax.f32 %v2628_v14, %v2629_v10 }
 0x9c5   : > { %v2772_v48 = vsel %vm7406_vm13, %v6215_v4, -1e+30  ;;  %v2653_v31 = vmax.f32 %v2651_v20, %v2652_v3  ;;  %v2675_v9 = vrot.slane %v2674_v5, 1  ;;  %v2697_v2 = vmax.f32 %v2695_v26, %v2696_v1 }
 0x9c6   : > { %v2719_v43 = vrot.slane %v2718_v58, 2  ;;  %v2741_v28 = vmax.f32 %v2739_v32, %v2740_v61  ;;  %v2760_v15 = vmax.f32 %v2757_v21, %v2759_v50  ;;  %vm7407_vm12 = vcmp.eq.s32.totalorder %v7211_v53, 1  ;;  %v7417_v50 = vld [vmem:[#allocation79_spill] sm:$0xff] }
 0x9c7   : > { %v2774_v35 = vsel %vm7407_vm12, %v6225_v23, -1e+30  ;;  %v2676_v40 = vmax.f32 %v2674_v5, %v2675_v9  ;;  %v2698_v0 = vrot.slane %v2697_v2, 1  ;;  %v2778_v54 = vsel %vm510_vm4, %v2772_v48, -inf  ;;  %v7414_v5 = vld [vmem:[#allocation71_spill] sm:$0xff] }
 0x9c8   : > { %v2780_v38 = vmax.f32 %v5989_v29, %v6231_v36  ;;  %v2720_v62 = vmax.f32 %v2718_v58, %v2719_v43  ;;  %v2742_v41 = vrot.slane %v2741_v28, 2  ;;  %v2762_v42 = vmax.f32 %v2760_v15, %v2761_v52  ;;  %v7408_v36 = vld [vmem:[#allocation97_spill] sm:$0xff]  ;;  %v7413_v52 = vld [vmem:[#allocation68_spill] sm:$0xff]  ;;  %v7415_v58 = vld [vmem:[#allocation87_spill] sm:$0xff] }
 0x9c9   : > { %v2781_v47 = vsel %vm510_vm4, %v2774_v35, -inf  ;;  %v2699_v44 = vmax.f32 %v2697_v2, %v2698_v0  ;;  %v2784_v57 = vmax.f32 %v6104_v8, %v2778_v54  ;;  %v2976_v53 = vsel %vm2044_vm5, %v2630_v45, %v2653_v31  ;;  %v7420_v31 = vld [vmem:[#allocation91_spill] sm:$0xff]  ;;  %v7422_v0 = vld [vmem:[#allocation64_spill] sm:$0xff] }
 0x9ca   : > { %v2782_v17 = vmax.f32 %v6086_v6, %v2781_v47  ;;  %v2721_v21 = vrot.slane %v2720_v62, 1  ;;  %v2743_v60 = vmax.f32 %v2741_v28, %v2742_v41  ;;  %v2763_v13 = vrot.slane %v2762_v42, 4 }
 0x9cb   : > { %v2977_v16 = vsel %vm2046_vm7, %v2976_v53, %v2676_v40  ;;  %vm7409_vm1 = vcmp.eq.s32.totalorder %v7408_v36, 1  ;;  %vm7411_vm15 = vcmp.eq.s32.totalorder %v7410_v24, 1  ;;  %v2802_v14 = vsel %vm510_vm4, %v6236_v55, -inf }
 0x9cc   : > { %v2783_v34 = vmax.f32 %v2780_v38, %v2782_v17  ;;  %v2978_v29 = vsel %vm2048_vm11, %v2977_v16, %v2699_v44  ;;  %v2795_v59 = vsel %vm7409_vm1, %v6215_v4, -1e+30  ;;  %v2797_v6 = vsel %vm7411_vm15, %v6225_v23, -1e+30  ;;  %v7424_v44 = vld [vmem:[#allocation93_spill] sm:$0xff] }
 0x9cd   : > { %v2722_v56 = vmax.f32 %v2720_v62, %v2721_v21  ;;  %v2744_v8 = vrot.slane %v2743_v60, 1  ;;  %v2764_v7 = vmax.f32 %v2762_v42, %v2763_v13  ;;  %v2801_v33 = vsel %vm510_vm4, %v2795_v59, -inf  ;;  %v7423_v62 = vld [vmem:[#allocation121_spill] sm:$0xff]  ;;  %v7428_v13 = vld [vmem:[#allocation78_spill] sm:$0xff] }
 0x9ce   : > { %v2785_v63 = vmax.f32 %v2783_v34, %v2784_v57  ;;  %v2804_v20 = vsel %vm510_vm4, %v2797_v6, -inf  ;;  %v2807_v26 = vmax.f32 %v7412_v30, %v2801_v33  ;;  %v2803_v10 = vmax.f32 %v7413_v52, %v2802_v14  ;;  %v7426_v57 = vld [vmem:[#allocation94_spill] sm:$0xff] }
 0x9cf   : > { %v2745_v11 = vmax.f32 %v2743_v60, %v2744_v8  ;;  %v2765_v32 = vrot.slane %v2764_v7, 2  ;;  %v2979_v18 = vsel %vm2050_vm10, %v2978_v29, %v2722_v56  ;;  %v2805_v1 = vmax.f32 %v7414_v5, %v2804_v20 }
 0x9d0   : > { %v2786_v3 = vrot.slane %v2785_v63, 4  ;;  %vm7416_vm6 = vcmp.eq.s32.totalorder %v7415_v58, 1  ;;  %vm7418_vm2 = vcmp.eq.s32.totalorder %v7417_v50, 1  ;;  %vm7419_vm9 = vcmask 1044480   ;;  %v7435_v58 = vld [vmem:[#allocation89_spill] sm:$0xff] }
 0x9d1   : > { %v2818_v61 = vsel %vm7416_vm6, %v6215_v4, -1e+30  ;;  %v2819_v55 = vsel %vm7418_vm2, %v6150_v37, -1e+30  ;;  %v2766_v48 = vmax.f32 %v2764_v7, %v2765_v32  ;;  %v2980_v45 = vsel %vm7419_vm9, %v2979_v18, %v2745_v11  ;;  %v7433_v18 = vld [vmem:[#allocation103_spill] sm:$0xff]  ;;  %v7459_v11 = vld [vmem:[#allocation102_spill] sm:$0xff] }
 0x9d2   : > { %vm7421_vm8 = vcmp.eq.s32.totalorder %v7420_v31, 1  ;;  %v2824_v2 = vsel %vm510_vm4, %v2818_v61, -inf  ;;  %v2787_v43 = vmax.f32 %v2785_v63, %v2786_v3  ;;  %v2806_v28 = vmax.f32 %v2803_v10, %v2805_v1  ;;  %v7438_v31 = vld [vmem:[#allocation50_spill] sm:$0xff] }
 0x9d3   : > { %v2820_v9 = vsel %vm7421_vm8, %v6225_v23, -1e+30  ;;  %v2825_v15 = vsel %vm510_vm4, %v2819_v55, -inf  ;;  %v2767_v40 = vrot.slane %v2766_v48, 1  ;;  %v2830_v41 = vmax.f32 %v7423_v62, %v2824_v2  ;;  %v7445_v62 = vld [vmem:[#allocation70_spill] sm:$0xff] }
 0x9d4   : > { %v2827_v35 = vsel %vm510_vm4, %v2820_v9, -inf  ;;  %v2826_v54 = vmax.f32 %v7422_v0, %v2825_v15  ;;  %v2788_v42 = vrot.slane %v2787_v43, 2  ;;  %v2808_v47 = vmax.f32 %v2806_v28, %v2807_v26  ;;  %v7440_v15 = vld [vmem:[#allocation66_spill] sm:$0xff]  ;;  %v7441_v0 = vld [vmem:[#allocation105_spill] sm:$0xff] }
 0x9d5   : > { %v2828_v38 = vmax.f32 %v6126_v12, %v2827_v35  ;;  %vm7425_vm0 = vcmp.eq.s32.totalorder %v7424_v44, 1  ;;  %vm7427_vm13 = vcmp.eq.s32.totalorder %v7426_v57, 1  ;;  %v2768_v21 = vmax.f32 %v2766_v48, %v2767_v40 }
 0x9d6   : > { %v2841_v17 = vsel %vm7425_vm0, %v6215_v4, -1e+30  ;;  %v2842_v53 = vsel %vm7427_vm13, %v6150_v37, -1e+30  ;;  %vm7429_vm12 = vcmp.eq.s32.totalorder %v7428_v13, 1  ;;  %v2789_v34 = vmax.f32 %v2787_v43, %v2788_v42 }
 0x9d7   : > { %v2829_v60 = vmax.f32 %v2826_v54, %v2828_v38  ;;  %v2843_v16 = vsel %vm7429_vm12, %v6225_v23, -1e+30  ;;  %v2847_v12 = vsel %vm510_vm4, %v2841_v17, -inf  ;;  %v2809_v29 = vrot.slane %v2808_v47, 4  ;;  %v7443_v38 = vld [vmem:[#allocation96_spill] sm:$0xff] }
 0x9d8   : > { %v2848_v36 = vsel %vm510_vm4, %v2842_v53, -inf  ;;  %v2850_v59 = vsel %vm510_vm4, %v2843_v16, -inf  ;;  %vm7430_vm1 = vcmask 1045504   ;;  %v2790_v7 = vrot.slane %v2789_v34, 1 }
 0x9d9   : > { %v2981_v24 = vsel %vm7430_vm1, %v2980_v45, %v2768_v21  ;;  %v2831_v6 = vmax.f32 %v2829_v60, %v2830_v41  ;;  %v2849_v56 = vmax.f32 %v6136_v22, %v2848_v36  ;;  %v2851_v8 = vmax.f32 %v6142_v46, %v2850_v59  ;;  %v7446_v41 = vld [vmem:[#allocation98_spill] sm:$0xff] }
 0x9da   : > { %v2810_v33 = vmax.f32 %v2808_v47, %v2809_v29  ;;  %v2853_v63 = vmax.f32 %v6156_v39, %v2847_v12  ;;  %v2864_v20 = vsel %vm1782_vm14, %v6215_v4, -1e+30  ;;  %v2865_v32 = vsel %vm1783_vm3, %v6150_v37, -1e+30  ;;  %v7448_v47 = vld [vmem:[#allocation108_spill] sm:$0xff] }
 0x9db   : > { %v2832_v30 = vrot.slane %v2831_v6, 4  ;;  %v2852_v26 = vmax.f32 %v2849_v56, %v2851_v8  ;;  %vm7434_vm15 = vcmp.eq.s32.totalorder %v7433_v18, 1  ;;  %v2791_v52 = vmax.f32 %v2789_v34, %v2790_v7  ;;  %v7450_v56 = vld [vmem:[#allocation63_spill] sm:$0xff]  ;;  %v7451_v8 = vld [vmem:[#allocation109_spill] sm:$0xff]  ;;  %v7461_v18 = vld [vmem:[#allocation110_spill] sm:$0xff] }
 0x9dc   : > { %v2866_v22 = vsel %vm7434_vm15, %v6225_v23, -1e+30  ;;  %v2811_v46 = vrot.slane %v2810_v33, 2  ;;  %v2870_v10 = vsel %vm510_vm4, %v2864_v20, -inf  ;;  %v2871_v39 = vsel %vm510_vm4, %v2865_v32, -inf  ;;  %v7453_v7 = vld [vmem:[#allocation95_spill] sm:$0xff] }
 0x9dd   : > { %v2833_v3 = vmax.f32 %v2831_v6, %v2832_v30  ;;  %v2854_v5 = vmax.f32 %v2852_v26, %v2853_v63  ;;  %v2873_v1 = vsel %vm510_vm4, %v2866_v22, -inf  ;;  %vm7436_vm14 = vcmp.eq.s32.totalorder %v7435_v58, 1  ;;  %v7455_v63 = vld [vmem:[#allocation117_spill] sm:$0xff]  ;;  %v7457_v30 = vld [vmem:[#allocation104_spill] sm:$0xff] }
 0x9de   : > { %v2885_v61 = vsel %vm7436_vm14, %v5930_v25, -1e+30  ;;  %vm7437_vm6 = vcmask 1046528   ;;  %v2812_v55 = vmax.f32 %v2810_v33, %v2811_v46  ;;  %v2872_v48 = vmax.f32 %v6159_v49, %v2871_v39 }
 0x9df   : > { %v2982_v50 = vsel %vm7437_vm6, %v2981_v24, %v2791_v52  ;;  %v2874_v45 = vmax.f32 %v6165_v51, %v2873_v1  ;;  %vm7439_vm3 = vcmp.eq.s32.totalorder %v7438_v31, 1  ;;  %v2834_v2 = vrot.slane %v2833_v3, 2 }
 0x9e0   : > { %v2990_v9 = vsel %vm7439_vm3, %v2982_v50, 0.0  ;;  %v2855_v43 = vrot.slane %v2854_v5, 4  ;;  %v2876_v28 = vmax.f32 %v6168_v19, %v2870_v10  ;;  %vm7442_vm2 = vcmp.eq.s32.totalorder %v7441_v0, 1  ;;  %v7467_v0 = vld [vmem:[#allocation119_spill] sm:$0xff] }
 0x9e1   : > { %v6399_v35 = vadd.f32 %v2990_v9, %v7440_v15  ;;  %v2875_v40 = vmax.f32 %v2872_v48, %v2874_v45  ;;  %v2887_v54 = vsel %vm7442_vm2, %v6215_v4, -1e+30  ;;  %vm7444_vm9 = vcmp.eq.s32.totalorder %v7443_v38, 1  ;;  %v7469_v38 = vld [vmem:[#allocation44_spill] sm:$0xff] }
 0x9e2   : > { %v2888_v49 = vsel %vm7444_vm9, %v6150_v37, -1e+30  ;;  %v2856_v51 = vmax.f32 %v2854_v5, %v2855_v43  ;;  %vm7447_vm8 = vcmp.eq.s32.totalorder %v7446_v41, 1  ;;  %vm7449_vm0 = vcmp.eq.s32.totalorder %v7448_v47, 1  ;;  %v7465_v43 = vld [vmem:[#allocation101_spill] sm:$0xff] }
 0x9e3   : > { %v2886_v42 = vsel %vm7447_vm8, %v7445_v62, -1e+30  ;;  %v2889_v19 = vsel %vm7449_vm0, %v6225_v23, -1e+30  ;;  %3708 = vmatmul.msk.f32.vlgmr.msrb.gmra.mxu0 %vm510_vm4, %v6399_v35  ;;  %v2813_v44 = vrot.slane %v2812_v55, 1  ;;  %v2835_v17 = vmax.f32 %v2833_v3, %v2834_v2 }
 0x9e4   : > { %v2877_v57 = vmax.f32 %v2875_v40, %v2876_v28  ;;  %v2890_v53 = vsel %vm510_vm4, %v6173_v27, -inf  ;;  %v2891_v21 = vsel %vm510_vm4, %v2885_v61, -inf  ;;  %v2893_v60 = vsel %vm510_vm4, %v2887_v54, -inf }
 0x9e5   : > { %v2894_v13 = vsel %vm510_vm4, %v2888_v49, -inf  ;;  %v2857_v16 = vrot.slane %v2856_v51, 2  ;;  %v2892_v34 = vsel %vm510_vm4, %v2886_v42, -inf  ;;  %v2896_v29 = vsel %vm510_vm4, %v2889_v19, -inf  ;;  %v7471_v42 = vld [vmem:[#allocation107_spill] sm:$0xff]  ;;  %v7473_v19 = vld [vmem:[#allocation112_spill] sm:$0xff] }
 0x9e6   : > { %v2878_v12 = vrot.slane %v2877_v57, 4  ;;  %v2895_v36 = vmax.f32 %v2890_v53, %v2894_v13  ;;  %v2897_v59 = vmax.f32 %v2891_v21, %v2896_v29  ;;  %v2899_v24 = vmax.f32 %v2892_v34, %v2893_v60  ;;  %v3186_v29 = vld [vmem:[%s6751_s5 + $0x148] sm:$0xff] }
 0x9e7   : > { %vm7452_vm13 = vcmp.eq.s32.totalorder %v7451_v8, 1  ;;  %vm7454_vm12 = vcmp.eq.s32.totalorder %v7453_v7, 1  ;;  %vm7456_vm1 = vcmp.eq.s32.totalorder %v7455_v63, 1  ;;  %vm7458_vm15 = vcmp.eq.s32.totalorder %v7457_v30, 1  ;;  %3199 = vmatpush.msra.mxu0 %v3186_v29  ;;  %v7475_v7 = vld [vmem:[#allocation118_spill] sm:$0xff]  ;;  %v7477_v63 = vld [vmem:[#allocation116_spill] sm:$0xff] }
 0x9e8   : > { %v2879_v6 = vmax.f32 %v2877_v57, %v2878_v12  ;;  %v2907_v27 = vsel %vm7452_vm13, %v7450_v56, -1e+30  ;;  %v2908_v33 = vsel %vm7454_vm12, %v5930_v25, -1e+30  ;;  %v2910_v14 = vsel %vm7456_vm1, %v6215_v4, -1e+30 }
 0x9e9   : > { %v2898_v20 = vmax.f32 %v2895_v36, %v2897_v59  ;;  %v2909_v26 = vsel %vm7458_vm15, %v7445_v62, -1e+30  ;;  %vm7460_vm14 = vcmp.eq.s32.totalorder %v7459_v11, 1  ;;  %vm7462_vm6 = vcmp.eq.s32.totalorder %v7461_v18, 1  ;;  %v7479_v30 = vld [vmem:[#allocation124_spill] sm:$0xff] }
 0x9ea   : > { %v2911_v32 = vsel %vm7460_vm14, %v6150_v37, -1e+30  ;;  %v2912_v22 = vsel %vm7462_vm6, %v6225_v23, -1e+30  ;;  %v2814_v52 = vmax.f32 %v2812_v55, %v2813_v44  ;;  %v2836_v46 = vrot.slane %v2835_v17, 1  ;;  %v7463_v55 = vld [vmem:[#allocation111_spill] sm:$0xff] }
 0x9eb   : > { %v2858_v10 = vmax.f32 %v2856_v51, %v2857_v16  ;;  %v2880_v39 = vrot.slane %v2879_v6, 2  ;;  %v2900_v3 = vmax.f32 %v2898_v20, %v2899_v24  ;;  %v2913_v5 = vsel %vm510_vm4, %v2907_v27, -inf }
 0x9ec   : > { %v2916_v1 = vsel %vm510_vm4, %v2910_v14, -inf  ;;  %v2917_v58 = vsel %vm510_vm4, %v2911_v32, -inf  ;;  %v2914_v61 = vsel %vm510_vm4, %v2908_v33, -inf  ;;  %v2915_v50 = vsel %vm510_vm4, %v2909_v26, -inf  ;;  %v7481_v26 = vld [vmem:[#allocation115_spill] sm:$0xff]  ;;  %v7483_v32 = vld [vmem:[#allocation126_spill] sm:$0xff] }
 0x9ed   : > { %v2918_v48 = vmax.f32 %v2913_v5, %v2917_v58  ;;  %v2919_v45 = vsel %vm510_vm4, %v2912_v22, -inf  ;;  %v2901_v31 = vrot.slane %v2900_v3, 4  ;;  %vm7464_vm3 = vcmp.eq.s32.totalorder %v7463_v55, 1 }
 0x9ee   : > { %v2920_v9 = vmax.f32 %v2914_v61, %v2919_v45  ;;  %v2930_v2 = vsel %vm7464_vm3, %v7450_v56, -1e+30  ;;  %vm7466_vm2 = vcmp.eq.s32.totalorder %v7465_v43, 1  ;;  %v2859_v15 = vrot.slane %v2858_v10, 1 }
 0x9ef   : > { %v2931_v28 = vsel %vm7466_vm2, %v5930_v25, -1e+30  ;;  %v2922_v40 = vmax.f32 %v2915_v50, %v2916_v1  ;;  %vm7468_vm9 = vcmp.eq.s32.totalorder %v7467_v0, 1  ;;  %vm7470_vm8 = vcmp.eq.s32.totalorder %v7469_v38, 1 }
 0x9f0   : > { %v2932_v54 = vsel %vm7468_vm9, %v7445_v62, -1e+30  ;;  %v2933_v49 = vsel %vm7470_vm8, %v6215_v4, -1e+30  ;;  %v2902_v51 = vmax.f32 %v2900_v3, %v2901_v31  ;;  %v2921_v41 = vmax.f32 %v2918_v48, %v2920_v9  ;;  %v3184_v9 = vld [vmem:[%s6751_s5 + $0x138] sm:$0xff] }
 0x9f1   : > { %vm7472_vm0 = vcmp.eq.s32.totalorder %v7471_v42, 1  ;;  %vm7474_vm13 = vcmp.eq.s32.totalorder %v7473_v19, 1  ;;  %v2881_v57 = vmax.f32 %v2879_v6, %v2880_v39  ;;  %v2936_v53 = vsel %vm510_vm4, %v2930_v2, -inf }
 0x9f2   : > { %v2934_v47 = vsel %vm7472_vm0, %v6150_v37, -1e+30  ;;  %v2935_v44 = vsel %vm7474_vm13, %v6225_v23, -1e+30  ;;  %v2937_v21 = vsel %vm510_vm4, %v2931_v28, -inf  ;;  %v2939_v60 = vsel %vm510_vm4, %v2933_v49, -inf }
 0x9f3   : > { %v2903_v13 = vrot.slane %v2902_v51, 2  ;;  %v2923_v16 = vmax.f32 %v2921_v41, %v2922_v40  ;;  %v2940_v12 = vsel %vm510_vm4, %v2934_v47, -inf  ;;  %v2942_v34 = vsel %vm510_vm4, %v2935_v44, -inf }
 0x9f4   : > { %v2837_v36 = vmax.f32 %v2835_v17, %v2836_v46  ;;  %v2938_v59 = vsel %vm510_vm4, %v2932_v54, -inf  ;;  %v2941_v24 = vmax.f32 %v2936_v53, %v2940_v12  ;;  %v2943_v6 = vmax.f32 %v2937_v21, %v2942_v34 }
 0x9f5   : > { %v2924_v8 = vrot.slane %v2923_v16, 4  ;;  %v2945_v27 = vmax.f32 %v2938_v59, %v2939_v60  ;;  %vm7476_vm12 = vcmp.eq.s32.totalorder %v7475_v7, 1  ;;  %vm7478_vm1 = vcmp.eq.s32.totalorder %v7477_v63, 1  ;;  %v7490_v59 = vld [vmem:[#allocation58_spill] sm:$0xff]  ;;  %v7494_v7 = vld [vmem:[#allocation16_spill] sm:$0xff]  ;;  %v7496_v63 = vld [vmem:[#allocation7_spill] sm:$0xff] }
 0x9f6   : > { %v2953_v33 = vsel %vm7476_vm12, %v7450_v56, -1e+30  ;;  %v2954_v14 = vsel %vm7478_vm1, %v5930_v25, -1e+30  ;;  %v2944_v20 = vmax.f32 %v2941_v24, %v2943_v6  ;;  %vm7480_vm15 = vcmp.eq.s32.totalorder %v7479_v30, 1  ;;  %v7485_v25 = vld [vmem:[#allocation135_spill] sm:$0xff] }
 0x9f7   : > { %v2956_v17 = vsel %vm7480_vm15, %v6215_v4, -1e+30  ;;  %vm7482_vm14 = vcmp.eq.s32.totalorder %v7481_v26, 1  ;;  %vm7484_vm6 = vcmp.eq.s32.totalorder %v7483_v32, 1  ;;  %v2860_v22 = vmax.f32 %v2858_v10, %v2859_v15  ;;  %v7492_v6 = vld [vmem:[#allocation56_spill] sm:$0xff]  ;;  %v7501_v26 = vld [vmem:[#allocation15_spill] sm:$0xff] }
 0x9f8   : > { %v2957_v11 = vsel %vm7482_vm14, %v6150_v37, -1e+30  ;;  %v2958_v18 = vsel %vm7484_vm6, %v6225_v23, -1e+30  ;;  %v2882_v46 = vrot.slane %v2881_v57, 1  ;;  %v2904_v56 = vmax.f32 %v2902_v51, %v2903_v13 }
 0x9f9   : > { %v2925_v39 = vmax.f32 %v2923_v16, %v2924_v8  ;;  %v2946_v3 = vmax.f32 %v2944_v20, %v2945_v27  ;;  %vm7486_vm3 = vcmp.eq.s32.totalorder %v7485_v25, 1  ;;  %v2959_v1 = vsel %vm510_vm4, %v2953_v33, -inf  ;;  %v7493_v27 = vld [vmem:[#allocation13_spill] sm:$0xff]  ;;  %v7498_v20 = vld [vmem:[#allocation18_spill] sm:$0xff] }
 0x9fa   : > { %v2955_v5 = vsel %vm7486_vm3, %v7445_v62, -1e+30  ;;  %v2963_v4 = vsel %vm510_vm4, %v2957_v11, -inf  ;;  %v2960_v37 = vsel %vm510_vm4, %v2954_v14, -inf  ;;  %v2962_v61 = vsel %vm510_vm4, %v2956_v17, -inf  ;;  %v3185_v62 = vld [vmem:[%s6751_s5 + $0x140] sm:$0xff] }
 0x9fb   : > { %v2926_v58 = vrot.slane %v2925_v39, 2  ;;  %v2965_v23 = vsel %vm510_vm4, %v2958_v18, -inf  ;;  %v2947_v10 = vrot.slane %v2946_v3, 4  ;;  %v2964_v50 = vmax.f32 %v2959_v1, %v2963_v4  ;;  %3200 = vmatpush.msra.mxu0 %v3185_v62  ;;  %v7497_v14 = vld [vmem:[#allocation14_spill] sm:$0xff]  ;;  %v7500_v17 = vld [vmem:[#allocation8_spill] sm:$0xff]  ;;  %v7504_v18 = vld [vmem:[#allocation9_spill] sm:$0xff] }
 0x9fc   : > { %v2966_v48 = vmax.f32 %v2960_v37, %v2965_v23  ;;  %v2983_v45 = vsel %vm2044_vm5, %v2814_v52, %v2837_v36  ;;  %v2961_v31 = vsel %vm510_vm4, %v2955_v5, -inf  ;;  %v2905_v15 = vrot.slane %v2904_v56, 1  ;;  %v3183_v52 = vld [vmem:[%s6751_s5 + $0x130] sm:$0xff]  ;;  %v7502_v11 = vld [vmem:[#allocation20_spill] sm:$0xff]  ;;  %v7513_v1 = vld [vmem:[#allocation21_spill] sm:$0xff] }
 0x9fd   : > { %v2927_v55 = vmax.f32 %v2925_v39, %v2926_v58  ;;  %v2948_v2 = vmax.f32 %v2946_v3, %v2947_v10  ;;  %v2968_v28 = vmax.f32 %v2961_v31, %v2962_v61  ;;  %v2984_v40 = vsel %vm2046_vm7, %v2983_v45, %v2860_v22  ;;  %3201 = vmatpush.msra.mxu0 %v3184_v9  ;;  %v7506_v22 = vld [vmem:[#allocation22_spill] sm:$0xff]  ;;  %v7509_v39 = vld [vmem:[#allocation19_spill] sm:$0xff]  ;;  %v7514_v4 = vld [vmem:[#allocation24_spill] sm:$0xff] }
 0x9fe   : > { %v2967_v43 = vmax.f32 %v2964_v50, %v2966_v48  ;;  %v2883_v0 = vmax.f32 %v2881_v57, %v2882_v46  ;;  %v2906_v47 = vmax.f32 %v2904_v56, %v2905_v15  ;;  %vm7487_vm7 = vcmask 1044480   ;;  %v7508_v56 = vld [vmem:[#allocation10_spill] sm:$0xff]  ;;  %v7510_v3 = vld [vmem:[#allocation23_spill] sm:$0xff]  ;;  %v7516_v37 = vld [vmem:[#allocation12_spill] sm:$0xff] }
 0x9ff   : > { %v2949_v54 = vrot.slane %v2948_v2, 2  ;;  %v2928_v49 = vrot.slane %v2927_v55, 1  ;;  %3202 = vmatpush.msra.mxu0 %v3183_v52  ;;  %vm7488_vm5 = vcmask 1045504   ;;  %vm7489_vm2 = vcmask 1046528   ;;  %v7512_v5 = vld [vmem:[#allocation11_spill] sm:$0xff]  ;;  %v7517_v9 = vld [vmem:[#allocation62_spill] sm:$0xff] }
 0xa00   : > { %v2969_v38 = vmax.f32 %v2967_v43, %v2968_v28  ;;  %v2985_v42 = vsel %vm2048_vm11, %v2984_v40, %v2883_v0  ;;  %vm7491_vm11 = vcmp.eq.s32.totalorder %v7490_v59, 1  ;;  %v3120_v33 = vsub.f32 %v7494_v7, %v7493_v27  ;;  %v3817_v61 = vld [vmem:[%s6751_s5 + $0x17e] ss:$0 sm:$0xff]  ;;  %v3083_v59 = vld [vmem:[%s6751_s5 + $0xf0] sm:$0xff] }
 0xa01   : > { %v2950_v51 = vmax.f32 %v2948_v2, %v2949_v54  ;;  %v2986_v53 = vsel %vm2050_vm10, %v2985_v42, %v2906_v47  ;;  %v2929_v21 = vmax.f32 %v2927_v55, %v2928_v49  ;;  %vm7495_vm10 = vcmask 130048  }
 0xa02   : > { %v2970_v41 = vrot.slane %v2969_v38, 4  ;;  %v3121_v30 = vsub.f32 %v7498_v20, %v7497_v14  ;;  %vm7499_vm9 = vmmov %vm7495_vm10  ;;  %v3122_v32 = vsub.f32 %v7502_v11, %v7501_v26  ;;  %v3124_v25 = vsub.f32 %v7510_v3, %v7509_v39  ;;  %v3179_v14 = vld [vmem:[%s6751_s5 + $0x110] sm:$0xff] }
 0xa03   : > { %v2951_v44 = vrot.slane %v2950_v51, 1  ;;  %v2987_v16 = vsel %vm7487_vm7, %v2986_v53, %v2929_v21  ;;  %vm7503_vm8 = vmmov %vm7499_vm9  ;;  %v3125_v58 = vsub.f32 %v7514_v4, %v7513_v1  ;;  %v3818_v21 = vld [vmem:[%s6751_s5 + $0x17f] ss:$0 sm:$0xff] }
 0xa04   : > { %v2971_v19 = vmax.f32 %v2969_v38, %v2970_v41  ;;  %vm7507_vm0 = vmmov %vm7503_vm8 }
 0xa05   : > { %v2952_v57 = vmax.f32 %v2950_v51, %v2951_v44  ;;  %vm7511_vm13 = vmmov %vm7507_vm0 }
 0xa06   : > { %v2972_v60 = vrot.slane %v2971_v19, 2  ;;  %vm7515_vm12 = vmmov %vm7507_vm0 }
 0xa07   : > { %v2988_v34 = vsel %vm7488_vm5, %v2987_v16, %v2952_v57  ;;  %v3086_v16 = vld [vmem:[%s6751_s5 + $0x108] sm:$0xff]  ;;  %v3085_v57 = vld [vmem:[%s6751_s5 + $0x100] sm:$0xff] }
 0xa08   : > { %v2973_v13 = vmax.f32 %v2971_v19, %v2972_v60  ;;  %3107 = vmatpush.msrb.mxu3 %v3086_v16 }
 0xa0a   : > { %v2974_v12 = vrot.slane %v2973_v13, 1  ;;  %3108 = vmatpush.msrb.mxu3 %v3085_v57 }
 0xa0c   : > { %v2975_v29 = vmax.f32 %v2973_v13, %v2974_v12 }
 0xa0e   : > { %v2989_v36 = vsel %vm7489_vm2, %v2988_v34, %v2975_v29  ;;  %v3819_v34 = vld [vmem:[%s6751_s5 + $0x180] ss:$0 sm:$0xff]  ;;  %v3084_v29 = vld [vmem:[%s6751_s5 + $0xf8] sm:$0xff] }
 0xa0f   : > { %v2991_v24 = vsel %vm7491_vm11, %v2989_v36, 0.0  ;;  %3109 = vmatpush.msrb.mxu3 %v3084_v29 }
 0xa10   : > { %v2993_v8 = vadd.f32 %v2991_v24, %v7492_v6  ;;  %v3182_v6 = vld [vmem:[%s6751_s5 + $0x128] sm:$0xff] }
 0xa11   : > { %3110 = vmatpush.msrb.mxu3 %v3083_v59 }
 0xa12   : > { %3158 = vmatpush.msra.mxu2 %v2993_v8  ;;  %3709 = vmatmul.msk.f32.gmra.mxu0 %vm510_vm4, %v2993_v8  ;;  %v3181_v8 = vld [vmem:[%s6751_s5 + $0x120] sm:$0xff] }
 0xa13   : > { %3252 = vmatpush.msra.mxu3 %v3182_v6 }
 0xa14   : > { %3159 = vmatpush.msra.mxu2 %v6399_v35  ;;  %v7505_v35 = vld [vmem:[#allocation17_spill] sm:$0xff] }
 0xa15   : > { %3712 = vmatmul.msk.f32.vlgmr.msra.gmra.mxu2 %vm7495_vm10, %v3120_v33  ;;  %v3123_v46 = vsub.f32 %v7506_v22, %v7505_v35  ;;  %v3180_v33 = vld [vmem:[%s6751_s5 + $0x118] sm:$0xff]  ;;  %3253 = vmatpush.msra.mxu3 %v3181_v8 }
 0xa17   : > { %3254 = vmatpush.msra.mxu3 %v3180_v33 }
 0xa19   : > { %3255 = vmatpush.msra.mxu3 %v3179_v14 }
 0xa1a   : > { %3718 = vmatmul.msk.f32.vlgmr.msra.gmra.mxu0 %vm510_vm4, %v7496_v63 }
 0xa1d   : > { %3713 = vmatmul.msk.f32.gmra.mxu2 %vm7499_vm9, %v3121_v30 }
 0xa22   : > { %3719 = vmatmul.msk.f32.gmra.mxu0 %vm510_vm4, %v7500_v17 }
 0xa25   : > { %3714 = vmatmul.msk.f32.gmra.mxu2 %vm7503_vm8, %v3122_v32 }
 0xa2a   : > { %3720 = vmatmul.msk.f32.gmra.mxu0 %vm510_vm4, %v7504_v18 }
 0xa2d   : > { %3715 = vmatmul.msk.f32.gmra.mxu2 %vm7507_vm0, %v3123_v46 }
 0xa32   : > { %3721 = vmatmul.msk.f32.gmra.mxu0 %vm510_vm4, %v7508_v56 }
 0xa35   : > { %3716 = vmatmul.msk.f32.gmra.mxu2 %vm7511_vm13, %v3124_v25 }
 0xa3a   : > { %3722 = vmatmul.msk.f32.gmra.mxu0 %vm510_vm4, %v7512_v5 }
 0xa3d   : > { %3717 = vmatmul.msk.f32.gmra.mxu2 %vm7515_vm12, %v3125_v58  ;;  %v3820_v58 = vld [vmem:[%s6751_s5 + $0x181] ss:$0 sm:$0xff] }
 0xa42   : > { %3723 = vmatmul.msk.f32.gmra.mxu0 %vm510_vm4, %v7516_v37 }
 0xa60   : > { %v3023_v23 = vpop.f32.mrf.mxu0 }
 0xa61   : > { %v3024_v10 = vadd.f32 %v3817_v61, %v3023_v23 }
 0xa63   : > { %v3031_v50 = vsel %vm510_vm4, %v3024_v10, 0.0 }
 0xa64   : > { %3032 = vadd.xlane.f32.xlu1 %v3031_v50 }
 0xa8f   : > { %v3026_v48 = vpop.f32.mrf.mxu0 }
 0xa90   : > { %v3027_v45 = vadd.f32 %v3817_v61, %v3026_v48  ;;  %v3821_v48 = vld [vmem:[%s6751_s5 + $0x182] ss:$0 sm:$0xff] }
 0xa92   : > { %v3034_v31 = vsel %vm510_vm4, %v3027_v45, 0.0 }
 0xa93   : > { %3035 = vadd.xlane.f32.xlu0 %v3034_v31 }
 0xa97   : > { %v3204_v23 = vpop.f32.mrf.mxu0 }
 0xa98   : > { %v3161_v56 = vpop.f32.mrf.mxu2 }
 0xaa0   : > { %v3164_v3 = vpop.f32.mrf.mxu2 }
 0xaa8   : > { %v3167_v25 = vpop.f32.mrf.mxu2 }
 0xab0   : > { %v3170_v5 = vpop.f32.mrf.mxu2 }
 0xab8   : > { %v3173_v1 = vpop.f32.mrf.mxu2 }
 0xac0   : > { %v3176_v4 = vpop.f32.mrf.mxu2 }
 0xad7   : > { %v3033_v62 = vpop.xlane.xlu1 %3032 }
 0xad8   : > { %v3037_v55 = vmul.f32 %v3033_v62, %v7517_v9 }
 0xada   : > { %v3039_v2 = vsub.f32 %v3024_v10, %v3037_v55 }
 0xadc   : > { %v3041_v43 = vmul.f32 %v3039_v2, %v3039_v2 }
 0xade   : > { %v3043_v28 = vsel %vm510_vm4, %v3041_v43, 0.0 }
 0xadf   : > { %3044 = vadd.xlane.f32.xlu2 %v3043_v28 }
 0xb06   : > { %v3036_v15 = vpop.xlane.xlu0 %3035 }
 0xb07   : > { %v3038_v40 = vmul.f32 %v3036_v15, %v7517_v9 }
 0xb09   : > { %v3040_v52 = vsub.f32 %v3027_v45, %v3038_v40  ;;  %v3207_v45 = vpop.f32.mrf.mxu0 }
 0xb0b   : > { %v3042_v0 = vmul.f32 %v3040_v52, %v3040_v52 }
 0xb0d   : > { %v3046_v54 = vsel %vm510_vm4, %v3042_v0, 0.0 }
 0xb0e   : > { %3047 = vadd.xlane.f32.xlu1 %v3046_v54 }
 0xb11   : > { %v3210_v15 = vpop.f32.mrf.mxu0 }
 0xb52   : > { %v3045_v38 = vpop.xlane.xlu2 %3044 }
 0xb53   : > { %v3049_v49 = vmul.f32 %v3045_v38, %v7517_v9 }
 0xb55   : > { %v3051_v51 = vadd.f32 1e-05, %v3049_v49  ;;  %v3213_v49 = vpop.f32.mrf.mxu0 }
 0xb57   : > { %3875 = vrsqrt.f32 %v3051_v51  ;;  %vm3059_vm15 = vweird.f32 %v3051_v51 }
 0xb5d   : > { %v3876_v41 = vpop.eup %3875 }
 0xb5e   : > { %v3054_v42 = vmul.f32 %v3876_v41, %v3051_v51  ;;  %vm3060_vm1 = vweird.f32 %v3876_v41 }
 0xb5f   : > { %vm3061_vm14 = vmor %vm3059_vm15, %vm3060_vm1 }
 0xb60   : > { %v3055_v47 = vmul.f32 %v3876_v41, %v3054_v42 }
 0xb62   : > { %v3056_v19 = vmul.f32 0.5, %v3055_v47 }
 0xb64   : > { %v3057_v44 = vsub.f32 1.5, %v3056_v19 }
 0xb66   : > { %v3058_v53 = vmul.f32 %v3876_v41, %v3057_v44  ;;  %v3216_v44 = vpop.f32.mrf.mxu0 }
 0xb68   : > { %v3062_v60 = vsel %vm3061_vm14, %v3876_v41, %v3058_v53 }
 0xb69   : > { %v3073_v13 = vmul.f32 %v3062_v60, %v3039_v2 }
 0xb6b   : > { %v3076_v12 = vmul.f32 %v3818_v21, %v3073_v13 }
 0xb6d   : > { %v3079_v36 = vadd.f32 %v3819_v34, %v3076_v12 }
 0xb6e   : > { %v3219_v16 = vpop.f32.mrf.mxu0 }
 0xb6f   : > { %v3081_v24 = vmax.f32 %v3079_v36, 0.0 }
 0xb71   : > { %3710 = vmatmul.msk.f32.vlgmr.msrb.gmra.mxu3 %vm510_vm4, %v3081_v24 }
 0xb81   : > { %v3048_v27 = vpop.xlane.xlu1 %3047 }
 0xb82   : > { %v3050_v7 = vmul.f32 %v3048_v27, %v7517_v9 }
 0xb84   : > { %v3052_v63 = vadd.f32 1e-05, %v3050_v7 }
 0xb86   : > { %3877 = vrsqrt.f32 %v3052_v63  ;;  %vm3069_vm3 = vweird.f32 %v3052_v63 }
 0xb8c   : > { %v3878_v20 = vpop.eup %3877 }
 0xb8d   : > { %v3064_v30 = vmul.f32 %v3878_v20, %v3052_v63  ;;  %vm3070_vm6 = vweird.f32 %v3878_v20 }
 0xb8e   : > { %vm3071_vm7 = vmor %vm3069_vm3, %vm3070_vm6 }
 0xb8f   : > { %v3065_v17 = vmul.f32 %v3878_v20, %v3064_v30 }
 0xb91   : > { %v3066_v26 = vmul.f32 0.5, %v3065_v17 }
 0xb93   : > { %v3067_v11 = vsub.f32 1.5, %v3066_v26 }
 0xb95   : > { %v3068_v32 = vmul.f32 %v3878_v20, %v3067_v11 }
 0xb97   : > { %v3072_v18 = vsel %vm3071_vm7, %v3878_v20, %v3068_v32 }
 0xb98   : > { %v3074_v35 = vmul.f32 %v3072_v18, %v3040_v52 }
 0xb9a   : > { %v3077_v22 = vmul.f32 %v3818_v21, %v3074_v35 }
 0xb9c   : > { %v3080_v46 = vadd.f32 %v3819_v34, %v3077_v22 }
 0xb9e   : > { %v3082_v39 = vmax.f32 %v3080_v46, 0.0 }
 0xba0   : > { %3711 = vmatmul.msk.f32.gmra.mxu3 %vm510_vm4, %v3082_v39 }
 0xba8   : > { %3724 = vmatmul.msk.f32.vlgmr.msra.gmra.mxu3 %vm510_vm4, %v3161_v56 }
 0xbb0   : > { %3725 = vmatmul.msk.f32.gmra.mxu3 %vm510_vm4, %v3164_v3 }
 0xbb8   : > { %3726 = vmatmul.msk.f32.gmra.mxu3 %vm510_vm4, %v3167_v25 }
 0xbc0   : > { %3727 = vmatmul.msk.f32.gmra.mxu3 %vm510_vm4, %v3170_v5 }
 0xbc8   : > { %3728 = vmatmul.msk.f32.gmra.mxu3 %vm510_vm4, %v3173_v1 }
 0xbd0   : > { %3729 = vmatmul.msk.f32.gmra.mxu3 %vm510_vm4, %v3176_v4 }
 0xbf4   : > { %v3112_v37 = vpop.f32.mrf.mxu3 }
 0xbf5   : > { %v3113_v61 = vadd.f32 %v3820_v58, %v3112_v37 }
 0xbf7   : > { %3118 = vst [vmem:[%s6603_s18] sm:$0xff] %v3113_v61 }
 0xc23   : > { %v3115_v10 = vpop.f32.mrf.mxu3 }
 0xc24   : > { %v3116_v50 = vadd.f32 %v3820_v58, %v3115_v10 }
 0xc26   : > { %3119 = vst [vmem:[%s6603_s18 + $0x8] sm:$0xff] %v3116_v50 }
 0xc2b   : > { %v3257_v31 = vpop.f32.mrf.mxu3 }
 0xc2c   : > { %v3258_v62 = vadd.f32 %v3257_v31, %v3204_v23 }
 0xc2e   : > { %v3277_v55 = vadd.f32 %v3821_v48, %v3258_v62 }
 0xc30   : > { %v3285_v2 = vsel %vm510_vm4, %v3277_v55, 0.0 }
 0xc31   : > { %3286 = vadd.xlane.f32.xlu0 %v3285_v2 }
 0xc33   : > { %v3260_v43 = vpop.f32.mrf.mxu3 }
 0xc34   : > { %v3261_v28 = vadd.f32 %v3260_v43, %v3207_v45 }
 0xc36   : > { %v3278_v40 = vadd.f32 %v3821_v48, %v3261_v28  ;;  %v3439_v28 = vld [vmem:[%s6751_s5 + $0x160] sm:$0xff] }
 0xc38   : > { %v3288_v52 = vsel %vm510_vm4, %v3278_v40, 0.0 }
 0xc39   : > { %3289 = vadd.xlane.f32.xlu2 %v3288_v52 }
 0xc3b   : > { %v3263_v0 = vpop.f32.mrf.mxu3 }
 0xc3c   : > { %v3264_v54 = vadd.f32 %v3263_v0, %v3210_v15  ;;  %v3438_v15 = vld [vmem:[%s6751_s5 + $0x158] sm:$0xff]  ;;  %v3437_v0 = vld [vmem:[%s6751_s5 + $0x150] sm:$0xff] }
 0xc3e   : > { %v3279_v38 = vadd.f32 %v3821_v48, %v3264_v54 }
 0xc40   : > { %v3291_v51 = vsel %vm510_vm4, %v3279_v38, 0.0 }
 0xc41   : > { %3292 = vadd.xlane.f32.xlu1 %v3291_v51 }
 0xc43   : > { %v3266_v41 = vpop.f32.mrf.mxu3 }
 0xc44   : > { %v3267_v42 = vadd.f32 %v3266_v41, %v3213_v49 }
 0xc46   : > { %v3280_v47 = vadd.f32 %v3821_v48, %v3267_v42 }
 0xc48   : > { %v3294_v19 = vsel %vm510_vm4, %v3280_v47, 0.0 }
 0xc49   : > { %3295 = vadd.xlane.f32.xlu0 %v3294_v19 }
 0xc4b   : > { %v3269_v53 = vpop.f32.mrf.mxu3 }
 0xc4c   : > { %v3270_v21 = vadd.f32 %v3269_v53, %v3216_v44 }
 0xc4e   : > { %v3281_v60 = vadd.f32 %v3821_v48, %v3270_v21  ;;  %v6676_v21 = vld [vmem:[%s6751_s5 + $0x184] ss:$0 sm:$0xff] }
 0xc50   : > { %v3297_v13 = vsel %vm510_vm4, %v3281_v60, 0.0 }
 0xc51   : > { %3298 = vadd.xlane.f32.xlu2 %v3297_v13 }
 0xc53   : > { %v3272_v57 = vpop.f32.mrf.mxu3 }
 0xc54   : > { %v3273_v12 = vadd.f32 %v3272_v57, %v3219_v16 }
 0xc56   : > { %v3282_v34 = vadd.f32 %v3821_v48, %v3273_v12  ;;  %v3440_v48 = vld [vmem:[%s6751_s5 + $0x168] sm:$0xff] }
 0xc57   : > { %3473 = vmatpush.msrb.mxu1 %v3440_v48 }
 0xc58   : > { %v3300_v29 = vsel %vm510_vm4, %v3282_v34, 0.0 }
 0xc59   : > { %3301 = vadd.xlane.f32.xlu1 %v3300_v29  ;;  %3474 = vmatpush.msrb.mxu1 %v3439_v28 }
 0xc5b   : > { %3475 = vmatpush.msrb.mxu1 %v3438_v15 }
 0xc5d   : > { %3476 = vmatpush.msrb.mxu1 %v3437_v0 }
 0xca4   : > { %v3287_v36 = vpop.xlane.xlu0 %3286 }
 0xca5   : > { %v3303_v59 = vmul.f32 %v3287_v36, %v7517_v9 }
 0xca7   : > { %v6617_v24 = vsub.f32 %v3277_v55, %v3303_v59 }
 0xca9   : > { %v3315_v6 = vmul.f32 %v6617_v24, %v6617_v24 }
 0xcab   : > { %v3321_v8 = vsel %vm510_vm4, %v3315_v6, 0.0 }
 0xcac   : > { %v3290_v27 = vpop.xlane.xlu2 %3289  ;;  %3322 = vadd.xlane.f32.xlu0 %v3321_v8 }
 0xcad   : > { %v3304_v7 = vmul.f32 %v3290_v27, %v7517_v9 }
 0xcaf   : > { %v6623_v33 = vsub.f32 %v3278_v40, %v3304_v7 }
 0xcb1   : > { %v3316_v63 = vmul.f32 %v6623_v33, %v6623_v33 }
 0xcb3   : > { %v3324_v14 = vsel %vm510_vm4, %v3316_v63, 0.0 }
 0xcb4   : > { %v3293_v20 = vpop.xlane.xlu1 %3292  ;;  %3325 = vadd.xlane.f32.xlu2 %v3324_v14 }
 0xcb5   : > { %v3305_v30 = vmul.f32 %v3293_v20, %v7517_v9 }
 0xcb7   : > { %v6629_v17 = vsub.f32 %v3279_v38, %v3305_v30 }
 0xcb9   : > { %v3317_v26 = vmul.f32 %v6629_v17, %v6629_v17 }
 0xcbb   : > { %v3327_v11 = vsel %vm510_vm4, %v3317_v26, 0.0 }
 0xcbc   : > { %3328 = vadd.xlane.f32.xlu1 %v3327_v11  ;;  %v3296_v32 = vpop.xlane.xlu0 %3295 }
 0xcbd   : > { %v3306_v18 = vmul.f32 %v3296_v32, %v7517_v9 }
 0xcbf   : > { %v6635_v35 = vsub.f32 %v3280_v47, %v3306_v18  ;;  %v6670_v47 = vld [vmem:[%s6751_s5 + $0x183] ss:$0 sm:$0xff] }
 0xcc1   : > { %v3318_v22 = vmul.f32 %v6635_v35, %v6635_v35 }
 0xcc3   : > { %v3330_v46 = vsel %vm510_vm4, %v3318_v22, 0.0 }
 0xcc4   : > { %v3299_v56 = vpop.xlane.xlu2 %3298  ;;  %3331 = vadd.xlane.f32.xlu0 %v3330_v46 }
 0xcc5   : > { %v3307_v39 = vmul.f32 %v3299_v56, %v7517_v9 }
 0xcc7   : > { %v6641_v3 = vsub.f32 %v3281_v60, %v3307_v39 }
 0xcc9   : > { %v3319_v25 = vmul.f32 %v6641_v3, %v6641_v3 }
 0xccb   : > { %v3333_v5 = vsel %vm510_vm4, %v3319_v25, 0.0 }
 0xccc   : > { %v3302_v1 = vpop.xlane.xlu1 %3301  ;;  %3334 = vadd.xlane.f32.xlu2 %v3333_v5 }
 0xccd   : > { %v3308_v4 = vmul.f32 %v3302_v1, %v7517_v9 }
 0xccf   : > { %v6647_v58 = vsub.f32 %v3282_v34, %v3308_v4 }
 0xcd1   : > { %v3320_v37 = vmul.f32 %v6647_v58, %v6647_v58 }
 0xcd3   : > { %v3336_v61 = vsel %vm510_vm4, %v3320_v37, 0.0 }
 0xcd4   : > { %3337 = vadd.xlane.f32.xlu1 %v3336_v61 }
 0xd1f   : > { %v3323_v23 = vpop.xlane.xlu0 %3322 }
 0xd20   : > { %v3339_v10 = vmul.f32 %v3323_v23, %v7517_v9 }
 0xd22   : > { %v3345_v50 = vadd.f32 1e-05, %v3339_v10 }
 0xd24   : > { %3879 = vrsqrt.f32 %v3345_v50  ;;  %vm3357_vm2 = vweird.f32 %v3345_v50 }
 0xd27   : > { %v3326_v45 = vpop.xlane.xlu2 %3325 }
 0xd28   : > { %v3340_v31 = vmul.f32 %v3326_v45, %v7517_v9 }
 0xd2a   : > { %v3880_v62 = vpop.eup %3879  ;;  %v3346_v55 = vadd.f32 1e-05, %v3340_v31 }
 0xd2b   : > { %v3352_v2 = vmul.f32 %v3880_v62, %v3345_v50  ;;  %vm3358_vm5 = vweird.f32 %v3880_v62 }
 0xd2c   : > { %3881 = vrsqrt.f32 %v3346_v55  ;;  %vm3359_vm11 = vmor %vm3357_vm2, %vm3358_vm5  ;;  %vm3367_vm9 = vweird.f32 %v3346_v55 }
 0xd2d   : > { %v3353_v43 = vmul.f32 %v3880_v62, %v3352_v2 }
 0xd2f   : > { %v3354_v40 = vmul.f32 0.5, %v3353_v43  ;;  %v3329_v52 = vpop.xlane.xlu1 %3328 }
 0xd30   : > { %v3341_v54 = vmul.f32 %v3329_v52, %v7517_v9 }
 0xd31   : > { %v3355_v38 = vsub.f32 1.5, %v3354_v40 }
 0xd32   : > { %v3882_v49 = vpop.eup %3881  ;;  %v3347_v51 = vadd.f32 1e-05, %v3341_v54 }
 0xd33   : > { %v3356_v41 = vmul.f32 %v3880_v62, %v3355_v38  ;;  %v3362_v42 = vmul.f32 %v3882_v49, %v3346_v55  ;;  %vm3368_vm10 = vweird.f32 %v3882_v49 }
 0xd34   : > { %3883 = vrsqrt.f32 %v3347_v51  ;;  %vm3369_vm8 = vmor %vm3367_vm9, %vm3368_vm10  ;;  %vm3377_vm13 = vweird.f32 %v3347_v51 }
 0xd35   : > { %v3360_v19 = vsel %vm3359_vm11, %v3880_v62, %v3356_v41  ;;  %v3363_v44 = vmul.f32 %v3882_v49, %v3362_v42 }
 0xd36   : > { %v3411_v53 = vmul.f32 %v3360_v19, %v6617_v24 }
 0xd37   : > { %v3364_v60 = vmul.f32 0.5, %v3363_v44  ;;  %v3332_v13 = vpop.xlane.xlu0 %3331 }
 0xd38   : > { %v3418_v16 = vmul.f32 %v6670_v47, %v3411_v53  ;;  %v3342_v57 = vmul.f32 %v3332_v13, %v7517_v9 }
 0xd39   : > { %v3365_v12 = vsub.f32 1.5, %v3364_v60 }
 0xd3a   : > { %v3884_v34 = vpop.eup %3883  ;;  %v3348_v29 = vadd.f32 1e-05, %v3342_v57  ;;  %v3425_v36 = vadd.f32 %v6676_v21, %v3418_v16 }
 0xd3b   : > { %v3366_v59 = vmul.f32 %v3882_v49, %v3365_v12  ;;  %v3372_v24 = vmul.f32 %v3884_v34, %v3347_v51  ;;  %vm3378_vm0 = vweird.f32 %v3884_v34 }
 0xd3c   : > { %3885 = vrsqrt.f32 %v3348_v29  ;;  %v3431_v6 = vmax.f32 %v3425_v36, 0.0  ;;  %vm3379_vm12 = vmor %vm3377_vm13, %vm3378_vm0  ;;  %vm3387_vm15 = vweird.f32 %v3348_v29 }
 0xd3d   : > { %v3370_v8 = vsel %vm3369_vm8, %v3882_v49, %v3366_v59  ;;  %v3373_v27 = vmul.f32 %v3884_v34, %v3372_v24 }
 0xd3e   : > { %3730 = vmatmul.msk.f32.vlgmr.msrb.gmra.mxu1 %vm510_vm4, %v3431_v6  ;;  %v3412_v7 = vmul.f32 %v3370_v8, %v6623_v33 }
 0xd3f   : > { %v3374_v63 = vmul.f32 0.5, %v3373_v27  ;;  %v3335_v14 = vpop.xlane.xlu2 %3334 }
 0xd40   : > { %v3343_v20 = vmul.f32 %v3335_v14, %v7517_v9  ;;  %v3419_v30 = vmul.f32 %v6670_v47, %v3412_v7 }
 0xd41   : > { %v3375_v26 = vsub.f32 1.5, %v3374_v63 }
 0xd42   : > { %v3886_v11 = vpop.eup %3885  ;;  %v3349_v32 = vadd.f32 1e-05, %v3343_v20  ;;  %v3426_v18 = vadd.f32 %v6676_v21, %v3419_v30 }
 0xd43   : > { %v3376_v22 = vmul.f32 %v3884_v34, %v3375_v26  ;;  %v3382_v46 = vmul.f32 %v3886_v11, %v3348_v29  ;;  %vm3388_vm1 = vweird.f32 %v3886_v11 }
 0xd44   : > { %3887 = vrsqrt.f32 %v3349_v32  ;;  %v3432_v56 = vmax.f32 %v3426_v18, 0.0  ;;  %vm3389_vm14 = vmor %vm3387_vm15, %vm3388_vm1  ;;  %vm3397_vm3 = vweird.f32 %v3349_v32 }
 0xd45   : > { %v3380_v39 = vsel %vm3379_vm12, %v3884_v34, %v3376_v22  ;;  %v3383_v33 = vmul.f32 %v3886_v11, %v3382_v46 }
 0xd46   : > { %3731 = vmatmul.msk.f32.gmra.mxu1 %vm510_vm4, %v3432_v56  ;;  %v3413_v25 = vmul.f32 %v3380_v39, %v6629_v17 }
 0xd47   : > { %v3384_v5 = vmul.f32 0.5, %v3383_v33  ;;  %v3338_v1 = vpop.xlane.xlu1 %3337 }
 0xd48   : > { %v3344_v4 = vmul.f32 %v3338_v1, %v7517_v9  ;;  %v3420_v37 = vmul.f32 %v6670_v47, %v3413_v25 }
 0xd49   : > { %v3385_v61 = vsub.f32 1.5, %v3384_v5 }
 0xd4a   : > { %v3888_v23 = vpop.eup %3887  ;;  %v3350_v10 = vadd.f32 1e-05, %v3344_v4  ;;  %v3427_v50 = vadd.f32 %v6676_v21, %v3420_v37 }
 0xd4b   : > { %v3386_v48 = vmul.f32 %v3886_v11, %v3385_v61  ;;  %v3392_v45 = vmul.f32 %v3888_v23, %v3349_v32  ;;  %vm3398_vm6 = vweird.f32 %v3888_v23 }
 0xd4c   : > { %3889 = vrsqrt.f32 %v3350_v10  ;;  %v3433_v31 = vmax.f32 %v3427_v50, 0.0  ;;  %vm3399_vm7 = vmor %vm3397_vm3, %vm3398_vm6  ;;  %vm3407_vm2 = vweird.f32 %v3350_v10 }
 0xd4d   : > { %v3390_v62 = vsel %vm3389_vm14, %v3886_v11, %v3386_v48  ;;  %v3393_v17 = vmul.f32 %v3888_v23, %v3392_v45 }
 0xd4e   : > { %3732 = vmatmul.msk.f32.gmra.mxu1 %vm510_vm4, %v3433_v31  ;;  %v3414_v9 = vmul.f32 %v3390_v62, %v6635_v35 }
 0xd4f   : > { %v3394_v55 = vmul.f32 0.5, %v3393_v17 }
 0xd50   : > { %v3421_v2 = vmul.f32 %v6670_v47, %v3414_v9 }
 0xd51   : > { %v3395_v43 = vsub.f32 1.5, %v3394_v55 }
 0xd52   : > { %v3890_v28 = vpop.eup %3889  ;;  %v3428_v15 = vadd.f32 %v6676_v21, %v3421_v2 }
 0xd53   : > { %v3396_v40 = vmul.f32 %v3888_v23, %v3395_v43  ;;  %v3402_v52 = vmul.f32 %v3890_v28, %v3350_v10  ;;  %vm3408_vm5 = vweird.f32 %v3890_v28 }
 0xd54   : > { %v3434_v0 = vmax.f32 %v3428_v15, 0.0  ;;  %vm3409_vm11 = vmor %vm3407_vm2, %vm3408_vm5 }
 0xd55   : > { %v3400_v54 = vsel %vm3399_vm7, %v3888_v23, %v3396_v40  ;;  %v3403_v38 = vmul.f32 %v3890_v28, %v3402_v52 }
 0xd56   : > { %3733 = vmatmul.msk.f32.gmra.mxu1 %vm510_vm4, %v3434_v0  ;;  %v3415_v35 = vmul.f32 %v3400_v54, %v6641_v3 }
 0xd57   : > { %v3404_v49 = vmul.f32 0.5, %v3403_v38 }
 0xd58   : > { %v3422_v51 = vmul.f32 %v6670_v47, %v3415_v35 }
 0xd59   : > { %v3405_v41 = vsub.f32 1.5, %v3404_v49 }
 0xd5a   : > { %v3429_v42 = vadd.f32 %v6676_v21, %v3422_v51 }
 0xd5b   : > { %v3406_v19 = vmul.f32 %v3890_v28, %v3405_v41 }
 0xd5c   : > { %v3435_v44 = vmax.f32 %v3429_v42, 0.0 }
 0xd5d   : > { %v3410_v53 = vsel %vm3409_vm11, %v3890_v28, %v3406_v19 }
 0xd5e   : > { %3734 = vmatmul.msk.f32.gmra.mxu1 %vm510_vm4, %v3435_v44  ;;  %v3416_v60 = vmul.f32 %v3410_v53, %v6647_v58 }
 0xd60   : > { %v3423_v3 = vmul.f32 %v6670_v47, %v3416_v60 }
 0xd62   : > { %v3430_v13 = vadd.f32 %v6676_v21, %v3423_v3 }
 0xd64   : > { %v3436_v16 = vmax.f32 %v3430_v13, 0.0 }
 0xd66   : > { %3735 = vmatmul.msk.f32.gmra.mxu1 %vm510_vm4, %v3436_v16 }
 0xd67   : > { %3924 = shalt.err (!%p3921_p3)
}
 0xd68   : > { %s3965_s15 = smov 128   ;;  %s3966_s9 = smov 8   ;;  %v3824_v58 = vld [vmem:[%s6751_s5 + $0x185] ss:$0 sm:$0xff] }
 0xd69   : > { %3745 = dma.vmem_to_hbm [thread:$0]  (%p4045_p5), %s3521_s8, 256, %s3523_s17, %s3503_s20, %s3965_s15, %s3965_s15, %s3966_s9  }
 0xd6a   : > { %s7518_s14 = smul.u32 48, %s4067_s19 }
 0xd6c   : > { %s309_s0 = scalar_lea.vmem %s6753_s7, %s7518_s14 }
 0xdbb   : > { %v3478_v47 = vpop.f32.mrf.mxu1 }
 0xdbc   : > { %v3479_v21 = vadd.f32 %v3824_v58, %v3478_v47 }
 0xdbe   : > { %3496 = vst [vmem:[%s309_s0] sm:$0xff] %v3479_v21 }
 0xdc3   : > { %v3481_v57 = vpop.f32.mrf.mxu1 }
 0xdc4   : > { %v3482_v12 = vadd.f32 %v3824_v58, %v3481_v57 }
 0xdc6   : > { %3497 = vst [vmem:[%s309_s0 + $0x8] sm:$0xff] %v3482_v12 }
 0xdcb   : > { %v3484_v34 = vpop.f32.mrf.mxu1 }
 0xdcc   : > { %v3485_v29 = vadd.f32 %v3824_v58, %v3484_v34 }
 0xdce   : > { %3498 = vst [vmem:[%s309_s0 + $0x10] sm:$0xff] %v3485_v29 }
 0xdd3   : > { %v3487_v36 = vpop.f32.mrf.mxu1 }
 0xdd4   : > { %v3488_v59 = vadd.f32 %v3824_v58, %v3487_v36 }
 0xdd6   : > { %3499 = vst [vmem:[%s309_s0 + $0x18] sm:$0xff] %v3488_v59 }
 0xddb   : > { %v3490_v24 = vpop.f32.mrf.mxu1 }
 0xddc   : > { %v3491_v6 = vadd.f32 %v3824_v58, %v3490_v24 }
 0xdde   : > { %3500 = vst [vmem:[%s309_s0 + $0x20] sm:$0xff] %v3491_v6 }
 0xde3   : > { %v3493_v8 = vpop.f32.mrf.mxu1 }
 0xde4   : > { %v3494_v27 = vadd.f32 %v3824_v58, %v3493_v8 }
 0xde6   : > { %3501 = vst [vmem:[%s309_s0 + $0x28] sm:$0xff] %v3494_v27 }
 0xde7 PF: > { %p3751_p4 = scmp.ge.s32.totalorder %s3959_s27, 2  ;;  %s3540_s11 = sand.u32 1, %s3947_s24  }
 0xde8   : > { %s3541_s19 = scalar_lea.sflag [#allocation3], %s3540_s11 }
 0xde9   : > { %p3748_p5 = pnand %p3751_p4, %p4049_p6 }
 0xdeb   : > { %p3749_p7 = pneg %p3748_p5 }
 0xded   : > { %3942 = dma.done.wait (%p3749_p7), %s3541_s19, 256  }
 0xdee   : > { %3944 = vsyncadd (%p3749_p7), %s3541_s19, 4294967040  ;;  %p18_p8 = scmp.ge.s32.totalorder %s4032_s30, 6   ;;  %s7519_s24 = smov %s3951_s25 }
 0xdef   : > { %s7520_s25 = smov %s3955_s26  ;;  %s7521_s26 = smov %s4043_s10 }
 0xdf0   : > { %s7522_s27 = smov %s4032_s30  ;;  %20 = sbr.rel (!%p18_p8) target bundleno = 5 (0x5), region = 94 }
 0xdf5   :  { %3555 = vsyncpa [#allocation3], 1 }
 0xdf6   :  { %3557 = vsyncpa [#allocation3 + $0x1], 1 }

</bundles_post_ra>
